<compile_context>
chip_gen: v7x
topology: tpu7x:2x2x1
jax: 0.10.0
libtpu: 0.0.40
codegen_flags: <defaults>
</compile_context>

<pallas_src>
import functools

import jax
import jax.numpy as jnp
from jax import lax
from jax.experimental import pallas as pl
from jax.experimental.pallas import tpu as pltpu


# ---------------------------------------------------------------------------
# Tiling constants
# ---------------------------------------------------------------------------
# Destination-row tile (also the row tile of the dense layers).
TILE_DST = 256
# Source-node tile = K dim of the attn @ hw aggregation.  Multiple of 256 keeps
# the v6e/v7x 2x256^2 MXU full width (two K passes on v5e's 4x128^2).  Per-step
# VMEM is ~1 MiB (int8 adj tile + bf16 hw tiles + f32 accumulator), far below
# the default scoped VMEM limit on every generation incl. v7x's 64 MiB physical
# VMEM, so no explicit vmem_limit_bytes is needed.
TILE_SRC = 256

_NEG_INF = -1e30   # additive edge mask; must stay f32 (would overflow in bf16)


def _round_up(x, m):
    return (x + m - 1) // m * m


# ---------------------------------------------------------------------------
# Kernels
# ---------------------------------------------------------------------------
def linear_kernel(x_ref, w_ref, b_ref, o_ref, *, relu):
    """o = [relu](x @ w + b); w is pre-cast bf16, accumulation in f32."""
    y = jnp.dot(x_ref[...].astype(jnp.bfloat16), w_ref[...],
                preferred_element_type=jnp.float32) + b_ref[...]
    if relu:
        y = jnp.maximum(y, 0.0)
    o_ref[...] = y.astype(o_ref.dtype)


def softmax_head_kernel(x_ref, w_ref, b_ref, o_ref):
    """Output layer: softmax(x @ w + b).  Padded class lanes carry bias -1e30 so
    they get exactly zero probability; normalisation is an exact division."""
    y = jnp.dot(x_ref[...].astype(jnp.bfloat16), w_ref[...],
                preferred_element_type=jnp.float32) + b_ref[...]
    y = y - jnp.max(y, axis=-1, keepdims=True)
    p = jnp.exp(y)
    o_ref[...] = p / jnp.sum(p, axis=-1, keepdims=True)


def gat_attention_kernel(adj_ref, hwd_ref, hws_ref, asrc_ref, adst_ref,
                         scale_ref, shift_ref, o_ref,
                         m_ref, l_ref, acc_ref, adst_sc):
    """One GATConv layer (single head) + folded bias/eval-BatchNorm + ReLU.

    Flash-attention style: grid = (dst tiles [parallel], src tiles [arbitrary]),
    online softmax over source tiles, adjacency streamed as int8 (TM, TS) tiles.
    """
    f32 = jnp.float32
    s_idx = pl.program_id(1)

    @pl.when(s_idx == 0)
    def _():
        m_ref[...] = jnp.full_like(m_ref, -jnp.inf)
        l_ref[...] = jnp.zeros_like(l_ref)
        acc_ref[...] = jnp.zeros_like(acc_ref)
        # a_dst depends only on the destination tile -> compute once per dst
        # tile (VPU multiply + lane reduction), keep it in a tiny VMEM scratch.
        adst_sc[...] = jnp.sum(hwd_ref[...].astype(f32) * adst_ref[...],
                               axis=-1, keepdims=True)

    hws = hws_ref[...]                                            # (TS, Hp) bf16
    # a_src lands lane-major as (1, TS) directly ([1,H] x [TS,H]^T contraction),
    # avoiding any in-kernel transpose / relayout.
    a_src = lax.dot_general(asrc_ref[...], hws,
                            dimension_numbers=(((1,), (1,)), ((), ())),
                            preferred_element_type=f32)           # (1, TS)
    e = adst_sc[...] + a_src                                      # (TM, TS)
    e = jnp.where(e >= 0.0, e, 0.2 * e)                           # LeakyReLU(0.2)
    # additive mask: non-edges and padded source columns get -1e30 (f32 path)
    e = jnp.where(adj_ref[...].astype(f32) > 0.0, e, f32(_NEG_INF))

    m_prev = m_ref[...]
    m_new = jnp.maximum(m_prev, jnp.max(e, axis=-1, keepdims=True))
    alpha = jnp.exp(m_prev - m_new)
    p = jnp.exp(e - m_new)
    l_ref[...] = alpha * l_ref[...] + jnp.sum(p, axis=-1, keepdims=True)
    acc_ref[...] = alpha * acc_ref[...] + jnp.dot(
        p.astype(jnp.bfloat16), hws, preferred_element_type=f32)
    m_ref[...] = m_new

    @pl.when(s_idx == pl.num_programs(1) - 1)
    def _():
        # exact reciprocal (approx=False default): negligible on a (TM,1) vector
        out = acc_ref[...] * pl.reciprocal(l_ref[...])
        out = out * scale_ref[...] + shift_ref[...]   # GATConv bias + eval-BN
        o_ref[...] = jnp.maximum(out, 0.0)            # ReLU; dropout = identity


# ---------------------------------------------------------------------------
# pallas_call wrappers
# ---------------------------------------------------------------------------
def _rowwise(kernel, x, w, b, out_dtype):
    """Row-tiled dense layer: grid over destination-row tiles ('parallel')."""
    n_pad, in_dim = x.shape
    out_dim = w.shape[1]
    tm = TILE_DST
    return pl.pallas_call(
        kernel,
        out_shape=jax.ShapeDtypeStruct((n_pad, out_dim), out_dtype),
        grid=(n_pad // tm,),
        in_specs=[pl.BlockSpec((tm, in_dim), lambda i: (i, 0)),
                  pl.BlockSpec((w.shape[0], w.shape[1]), lambda i: (0, 0)),
                  pl.BlockSpec((1, b.shape[1]), lambda i: (0, 0))],
        out_specs=pl.BlockSpec((tm, out_dim), lambda i: (i, 0)),
        compiler_params=pltpu.CompilerParams(dimension_semantics=("parallel",)),
    )(x, w, b)


def _gat_attention(adj, hw, att_src, att_dst, scale, shift):
    n_pad = adj.shape[0]
    h_pad = hw.shape[1]
    tm, ts = TILE_DST, TILE_SRC
    return pl.pallas_call(
        gat_attention_kernel,
        out_shape=jax.ShapeDtypeStruct((n_pad, h_pad), jnp.float32),
        grid=(n_pad // tm, n_pad // ts),
        in_specs=[
            pl.BlockSpec((tm, ts), lambda d, s: (d, s)),       # adjacency (int8)
            pl.BlockSpec((tm, h_pad), lambda d, s: (d, 0)),    # hw, dst rows
            pl.BlockSpec((ts, h_pad), lambda d, s: (s, 0)),    # hw, src rows
            pl.BlockSpec((1, h_pad), lambda d, s: (0, 0)),     # att_src (bf16)
            pl.BlockSpec((1, h_pad), lambda d, s: (0, 0)),     # att_dst (f32)
            pl.BlockSpec((1, h_pad), lambda d, s: (0, 0)),     # scale
            pl.BlockSpec((1, h_pad), lambda d, s: (0, 0)),     # shift
        ],
        out_specs=pl.BlockSpec((tm, h_pad), lambda d, s: (d, 0)),
        scratch_shapes=[pltpu.VMEM((tm, 1), jnp.float32),      # running max
                        pltpu.VMEM((tm, 1), jnp.float32),      # running denom
                        pltpu.VMEM((tm, h_pad), jnp.float32),  # accumulator
                        pltpu.VMEM((tm, 1), jnp.float32)],     # a_dst per dst tile
        compiler_params=pltpu.CompilerParams(
            dimension_semantics=("parallel", "arbitrary")),
    )(adj, hw, hw, att_src, att_dst, scale, shift)


@functools.partial(jax.jit, static_argnames=("out_dim",))
def gat_forward(x, adj, params, *, out_dim):
    """x: [N, F] node features (f32); adj: [N, N] int8 edge mask
    (adj[i, j] = 1 iff edge j -> i, self-loops included)."""
    n = x.shape[0]
    n_pad = _round_up(n, max(TILE_DST, TILE_SRC))
    f_pad = params["w_in"].shape[0]
    x_p = jnp.pad(x, ((0, n_pad - n), (0, f_pad - x.shape[1])))
    adj_p = jnp.pad(adj.astype(jnp.int8), ((0, n_pad - n), (0, n_pad - n)))

    # input Linear + ReLU
    h = _rowwise(functools.partial(linear_kernel, relu=True),
                 x_p, params["w_in"], params["b_in"], jnp.float32)

    # GAT layers: one (hw = h @ W) call + one flash-tiled attention call per
    # layer.  Per-layer calls keep only that layer's weights resident and keep
    # the dst-row axis 'parallel' for v7x megacore.
    for l in range(len(params["w"])):
        hw = _rowwise(functools.partial(linear_kernel, relu=False),
                      h, params["w"][l], params["zero_b"], jnp.bfloat16)
        h = _gat_attention(adj_p, hw, params["att_src"][l], params["att_dst"][l],
                           params["scale"][l], params["shift"][l])

    # output Linear + softmax (exact normalisation)
    out_p = _rowwise(softmax_head_kernel, h, params["w_out"], params["b_out"],
                     jnp.float32)
    return out_p[:n, :out_dim]


# ---------------------------------------------------------------------------
# Parameters: raw (PyTorch-like) -> padded / folded / bf16 kernel params
# ---------------------------------------------------------------------------
def make_raw_params(key, input_dim, n_conv_layers, hidden_dim, output_dim):
    keys = jax.random.split(key, 4 + 4 * n_conv_layers)
    ki = iter(keys)
    params = {
        "w_in": 0.1 * jax.random.normal(next(ki), (input_dim, hidden_dim), jnp.float32),
        "b_in": 0.1 * jax.random.normal(next(ki), (1, hidden_dim), jnp.float32),
        "layers": [],
        "w_out": 0.1 * jax.random.normal(next(ki), (hidden_dim, output_dim), jnp.float32),
        "b_out": 0.1 * jax.random.normal(next(ki), (1, output_dim), jnp.float32),
    }
    for _ in range(n_conv_layers):
        params["layers"].append({
            "w": 0.1 * jax.random.normal(next(ki), (hidden_dim, hidden_dim), jnp.float32),
            "att_src": 0.1 * jax.random.normal(next(ki), (1, hidden_dim), jnp.float32),
            "att_dst": 0.1 * jax.random.normal(next(ki), (1, hidden_dim), jnp.float32),
            "bias": 0.1 * jax.random.normal(next(ki), (1, hidden_dim), jnp.float32),
            # BatchNorm (eval): gamma=1, beta=0, running stats = (0, 1)
            "gamma": jnp.ones((1, hidden_dim), jnp.float32),
            "beta": jnp.zeros((1, hidden_dim), jnp.float32),
            "mean": jnp.zeros((1, hidden_dim), jnp.float32),
            "var": jnp.ones((1, hidden_dim), jnp.float32),
        })
    return params


def prepare_params(raw, eps=1e-5):
    """Pad to lane-dense (multiple-of-128) shapes, pre-cast MXU weight operands
    to bf16, fold (GATConv bias + eval BatchNorm) into per-layer scale/shift."""
    f_pad = _round_up(raw["w_in"].shape[0], 128)
    h_pad = _round_up(raw["w_in"].shape[1], 128)
    c_pad = _round_up(raw["w_out"].shape[1], 128)

    def pad2(a, r, c, fill=0.0):
        return jnp.pad(a, ((0, r - a.shape[0]), (0, c - a.shape[1])),
                       constant_values=fill)

    p = {
        "w_in": pad2(raw["w_in"], f_pad, h_pad).astype(jnp.bfloat16),
        "b_in": pad2(raw["b_in"], 1, h_pad),
        "w_out": pad2(raw["w_out"], h_pad, c_pad).astype(jnp.bfloat16),
        # padded class lanes get bias -1e30 -> exactly zero probability while the
        # output store stays lane-dense.
        "b_out": pad2(raw["b_out"], 1, c_pad, fill=_NEG_INF),
        "zero_b": jnp.zeros((1, h_pad), jnp.float32),
        "w": [], "att_src": [], "att_dst": [], "scale": [], "shift": [],
    }
    for lp in raw["layers"]:
        scale = lp["gamma"] * lax.rsqrt(lp["var"] + eps)
        shift = (lp["bias"] - lp["mean"]) * scale + lp["beta"]
        p["w"].append(pad2(lp["w"], h_pad, h_pad).astype(jnp.bfloat16))
        p["att_src"].append(pad2(lp["att_src"], 1, h_pad).astype(jnp.bfloat16))
        p["att_dst"].append(pad2(lp["att_dst"], 1, h_pad))
        p["scale"].append(pad2(scale, 1, h_pad))
        p["shift"].append(pad2(shift, 1, h_pad))
    return p


# ---------------------------------------------------------------------------
# Pure-JAX f32 reference (inference semantics)
# ---------------------------------------------------------------------------
def gat_reference(x, adj, raw, eps=1e-5):
    mask = adj > 0
    h = jax.nn.relu(x @ raw["w_in"] + raw["b_in"])
    for lp in raw["layers"]:
        hw = h @ lp["w"]
        a_dst = hw @ lp["att_dst"].T            # (N, 1)
        a_src = (hw @ lp["att_src"].T).T        # (1, N)
        e = jax.nn.leaky_relu(a_dst + a_src, negative_slope=0.2)
        e = jnp.where(mask, e, _NEG_INF)
        attn = jax.nn.softmax(e, axis=-1)
        out = attn @ hw + lp["bias"]
        out = lp["gamma"] * (out - lp["mean"]) * lax.rsqrt(lp["var"] + eps) + lp["beta"]
        h = jax.nn.relu(out)
    y = h @ raw["w_out"] + raw["b_out"]
    return jax.nn.softmax(y, axis=-1)


# ---------------------------------------------------------------------------
# Main
# ---------------------------------------------------------------------------
if __name__ == "__main__":
    N, INPUT_DIM, HIDDEN, OUTPUT_DIM, N_LAYERS = 16, 8, 32, 4, 2

    key = jax.random.PRNGKey(0)
    kx, kp = jax.random.split(key)
    x = jax.random.normal(kx, (N, INPUT_DIM), jnp.float32)

    # Deterministic graph: undirected ring + self loops (GATConv default), as a
    # dense int8 mask (adj[i, j] = 1 iff edge j -> i).
    src = jnp.arange(N)
    dst = (src + 1) % N
    adj = jnp.zeros((N, N), jnp.int8)
    adj = adj.at[dst, src].set(1)
    adj = adj.at[src, dst].set(1)
    adj = adj.at[src, src].set(1)

    raw = make_raw_params(kp, INPUT_DIM, N_LAYERS, HIDDEN, OUTPUT_DIM)
    params = prepare_params(raw)

    out = gat_forward(x, adj, params, out_dim=OUTPUT_DIM)
    out = jax.block_until_ready(out)

    assert out.shape == (N, OUTPUT_DIM)
    assert bool(jnp.all(jnp.isfinite(out)))
    # exact final softmax -> rows sum to 1 tightly
    assert bool(jnp.allclose(jnp.sum(out, axis=-1), 1.0, atol=1e-3))
    # compare against the pure-JAX f32 reference (kernel uses bf16 MXU operands)
    ref = gat_reference(x, adj, raw)
    max_err = float(jnp.max(jnp.abs(out - ref)))
    assert max_err < 2e-2, max_err
    print("KERNEL_OK")
</pallas_src>

<mosaic_0001>
module attributes {stable_mosaic.version = 11 : i64} {
  func.func @linear_kernel(%arg0: i32, %arg1: memref<256x128xf32, #tpu.memory_space<vmem>>, %arg2: memref<128x128xbf16, #tpu.memory_space<vmem>>, %arg3: memref<1x128xf32, #tpu.memory_space<vmem>>, %arg4: memref<256x128xf32, #tpu.memory_space<vmem>>) attributes {dimension_semantics = [#tpu.dimension_semantics<parallel>], iteration_bounds = array<i64: 1>, scalar_prefetch = 0 : i64, scratch_operands = 0 : i64, tpu.core_type = #tpu.core_type<tc>, window_params = [{transform_indices = @transform_0, window_bounds = array<i64: 256, 128>}, {pipeline_mode = #tpu.pipeline_mode<synchronous>, transform_indices = @transform_1, window_bounds = array<i64: 128, 128>}, {pipeline_mode = #tpu.pipeline_mode<synchronous>, transform_indices = @transform_2, window_bounds = array<i64: 1, 128>}, {transform_indices = @transform_3, window_bounds = array<i64: 256, 128>}]} {
    %c0 = arith.constant 0 : index
    %c0_0 = arith.constant 0 : index
    %0 = vector.load %arg1[%c0, %c0_0] : memref<256x128xf32, #tpu.memory_space<vmem>>, vector<256x128xf32>
    %1 = arith.truncf %0 : vector<256x128xf32> to vector<256x128xbf16>
    %c0_1 = arith.constant 0 : index
    %c0_2 = arith.constant 0 : index
    %2 = vector.load %arg2[%c0_1, %c0_2] : memref<128x128xbf16, #tpu.memory_space<vmem>>, vector<128x128xbf16>
    %cst = arith.constant dense<0.000000e+00> : vector<256x128xf32>
    %3 = tpu.matmul %1, %2, %cst {dimension_numbers = #tpu.dot_dimension_numbers<[1], [0], [0], [1], [0, 0, 1, 1], [], []>} : vector<256x128xbf16>, vector<128x128xbf16>, vector<256x128xf32> -> vector<256x128xf32>
    %c0_3 = arith.constant 0 : index
    %c0_4 = arith.constant 0 : index
    %4 = vector.load %arg3[%c0_3, %c0_4] : memref<1x128xf32, #tpu.memory_space<vmem>>, vector<1x128xf32>
    %5 = vector.broadcast %4 : vector<1x128xf32> to vector<256x128xf32>
    %6 = arith.addf %3, %5 : vector<256x128xf32>
    %cst_5 = arith.constant 0.000000e+00 : f32
    %7 = vector.broadcast %cst_5 : f32 to vector<256x128xf32>
    %8 = arith.maximumf %6, %7 : vector<256x128xf32>
    %c0_6 = arith.constant 0 : index
    %c0_7 = arith.constant 0 : index
    %9 = vector.load %arg4[%c0_6, %c0_7] : memref<256x128xf32, #tpu.memory_space<vmem>>, vector<256x128xf32>
    tpu.vector_store %arg4[%c0_6, %c0_7], %8 {strides = array<i32>} : memref<256x128xf32, #tpu.memory_space<vmem>>, vector<256x128xf32>,
    return
  }
  func.func @transform_0(%arg0: i32) -> (i32, i32) {
    %c0_i32 = arith.constant 0 : i32
    %c0_i32_0 = arith.constant 0 : i32
    return %arg0, %c0_i32 : i32, i32
  }
  func.func @transform_1(%arg0: i32) -> (i32, i32) {
    %c0_i32 = arith.constant 0 : i32
    %c0_i32_0 = arith.constant 0 : i32
    %c0_i32_1 = arith.constant 0 : i32
    return %c0_i32, %c0_i32_0 : i32, i32
  }
  func.func @transform_2(%arg0: i32) -> (i32, i32) {
    %c0_i32 = arith.constant 0 : i32
    %c0_i32_0 = arith.constant 0 : i32
    %c0_i32_1 = arith.constant 0 : i32
    return %c0_i32, %c0_i32_0 : i32, i32
  }
  func.func @transform_3(%arg0: i32) -> (i32, i32) {
    %c0_i32 = arith.constant 0 : i32
    %c0_i32_0 = arith.constant 0 : i32
    return %arg0, %c0_i32 : i32, i32
  }
}

module attributes {stable_mosaic.version = 11 : i64} {
  func.func @gat_attention_kernel(%arg0: i32, %arg1: i32, %arg2: memref<256x256xi8, #tpu.memory_space<vmem>>, %arg3: memref<256x128xbf16, #tpu.memory_space<vmem>>, %arg4: memref<256x128xbf16, #tpu.memory_space<vmem>>, %arg5: memref<1x128xbf16, #tpu.memory_space<vmem>>, %arg6: memref<1x128xf32, #tpu.memory_space<vmem>>, %arg7: memref<1x128xf32, #tpu.memory_space<vmem>>, %arg8: memref<1x128xf32, #tpu.memory_space<vmem>>, %arg9: memref<256x128xf32, #tpu.memory_space<vmem>>, %arg10: memref<256x1xf32, #tpu.memory_space<vmem>>, %arg11: memref<256x1xf32, #tpu.memory_space<vmem>>, %arg12: memref<256x128xf32, #tpu.memory_space<vmem>>, %arg13: memref<256x1xf32, #tpu.memory_space<vmem>>) attributes {dimension_semantics = [#tpu.dimension_semantics<parallel>, #tpu.dimension_semantics<arbitrary>], iteration_bounds = array<i64: 1, 1>, scalar_prefetch = 0 : i64, scratch_operands = 4 : i64, tpu.core_type = #tpu.core_type<tc>, window_params = [{transform_indices = @transform_0, window_bounds = array<i64: 256, 256>}, {transform_indices = @transform_1, window_bounds = array<i64: 256, 128>}, {transform_indices = @transform_2, window_bounds = array<i64: 256, 128>}, {pipeline_mode = #tpu.pipeline_mode<synchronous>, transform_indices = @transform_3, window_bounds = array<i64: 1, 128>}, {pipeline_mode = #tpu.pipeline_mode<synchronous>, transform_indices = @transform_4, window_bounds = array<i64: 1, 128>}, {pipeline_mode = #tpu.pipeline_mode<synchronous>, transform_indices = @transform_5, window_bounds = array<i64: 1, 128>}, {pipeline_mode = #tpu.pipeline_mode<synchronous>, transform_indices = @transform_6, window_bounds = array<i64: 1, 128>}, {transform_indices = @transform_7, window_bounds = array<i64: 256, 128>}]} {
    %c0_i32 = arith.constant 0 : i32
    %0 = arith.cmpi eq, %arg1, %c0_i32 : i32
    %1 = arith.extui %0 : i1 to i32
    %c0_i32_0 = arith.constant 0 : i32
    %2 = arith.cmpi ne, %1, %c0_i32_0 : i32
    scf.if %2 {
      %cst_29 = arith.constant 0xFF800000 : f32
      %47 = vector.broadcast %cst_29 : f32 to vector<256x1xf32>
      %c0_30 = arith.constant 0 : index
      %c0_31 = arith.constant 0 : index
      %48 = vector.load %arg10[%c0_30, %c0_31] : memref<256x1xf32, #tpu.memory_space<vmem>>, vector<256x1xf32>
      tpu.vector_store %arg10[%c0_30, %c0_31], %47 {strides = array<i32>} : memref<256x1xf32, #tpu.memory_space<vmem>>, vector<256x1xf32>,
      %cst_32 = arith.constant 0.000000e+00 : f32
      %49 = vector.broadcast %cst_32 : f32 to vector<256x1xf32>
      %c0_33 = arith.constant 0 : index
      %c0_34 = arith.constant 0 : index
      %50 = vector.load %arg11[%c0_33, %c0_34] : memref<256x1xf32, #tpu.memory_space<vmem>>, vector<256x1xf32>
      tpu.vector_store %arg11[%c0_33, %c0_34], %49 {strides = array<i32>} : memref<256x1xf32, #tpu.memory_space<vmem>>, vector<256x1xf32>,
      %cst_35 = arith.constant 0.000000e+00 : f32
      %51 = vector.broadcast %cst_35 : f32 to vector<256x128xf32>
      %c0_36 = arith.constant 0 : index
      %c0_37 = arith.constant 0 : index
      %52 = vector.load %arg12[%c0_36, %c0_37] : memref<256x128xf32, #tpu.memory_space<vmem>>, vector<256x128xf32>
      tpu.vector_store %arg12[%c0_36, %c0_37], %51 {strides = array<i32>} : memref<256x128xf32, #tpu.memory_space<vmem>>, vector<256x128xf32>,
      %c0_38 = arith.constant 0 : index
      %c0_39 = arith.constant 0 : index
      %53 = vector.load %arg3[%c0_38, %c0_39] : memref<256x128xbf16, #tpu.memory_space<vmem>>, vector<256x128xbf16>
      %54 = arith.extf %53 : vector<256x128xbf16> to vector<256x128xf32>
      %c0_40 = arith.constant 0 : index
      %c0_41 = arith.constant 0 : index
      %55 = vector.load %arg6[%c0_40, %c0_41] : memref<1x128xf32, #tpu.memory_space<vmem>>, vector<1x128xf32>
      %56 = vector.broadcast %55 : vector<1x128xf32> to vector<256x128xf32>
      %57 = arith.mulf %54, %56 : vector<256x128xf32>
      %cst_42 = arith.constant dense<0.000000e+00> : vector<256xf32>
      %58 = vector.multi_reduction <add>, %57, %cst_42 [1] : vector<256x128xf32> to vector<256xf32>
      %59 = vector.shape_cast %58 : vector<256xf32> to vector<256x1xf32>
      %c0_43 = arith.constant 0 : index
      %c0_44 = arith.constant 0 : index
      %60 = vector.load %arg13[%c0_43, %c0_44] : memref<256x1xf32, #tpu.memory_space<vmem>>, vector<256x1xf32>
      tpu.vector_store %arg13[%c0_43, %c0_44], %59 {strides = array<i32>} : memref<256x1xf32, #tpu.memory_space<vmem>>, vector<256x1xf32>,
    } else {
    }
    %c0 = arith.constant 0 : index
    %c0_1 = arith.constant 0 : index
    %3 = vector.load %arg4[%c0, %c0_1] : memref<256x128xbf16, #tpu.memory_space<vmem>>, vector<256x128xbf16>
    %c0_2 = arith.constant 0 : index
    %c0_3 = arith.constant 0 : index
    %4 = vector.load %arg5[%c0_2, %c0_3] : memref<1x128xbf16, #tpu.memory_space<vmem>>, vector<1x128xbf16>
    %cst = arith.constant dense<0.000000e+00> : vector<1x256xf32>
    %5 = tpu.matmul %4, %3, %cst {dimension_numbers = #tpu.dot_dimension_numbers<[1], [1], [0], [0], [0, 0, 1, 0], [], []>} : vector<1x128xbf16>, vector<256x128xbf16>, vector<1x256xf32> -> vector<1x256xf32>
    %c0_4 = arith.constant 0 : index
    %c0_5 = arith.constant 0 : index
    %6 = vector.load %arg13[%c0_4, %c0_5] : memref<256x1xf32, #tpu.memory_space<vmem>>, vector<256x1xf32>
    %7 = vector.broadcast %6 : vector<256x1xf32> to vector<256x256xf32>
    %8 = vector.broadcast %5 : vector<1x256xf32> to vector<256x256xf32>
    %9 = arith.addf %7, %8 : vector<256x256xf32>
    %cst_6 = arith.constant 0.000000e+00 : f32
    %10 = vector.broadcast %cst_6 : f32 to vector<256x256xf32>
    %11 = arith.cmpf oge, %9, %10 : vector<256x256xf32>
    %cst_7 = arith.constant 2.000000e-01 : f32
    %12 = vector.broadcast %cst_7 : f32 to vector<256x256xf32>
    %13 = arith.mulf %12, %9 : vector<256x256xf32>
    %14 = arith.select %11, %9, %13 : vector<256x256xi1>, vector<256x256xf32>
    %c0_8 = arith.constant 0 : index
    %c0_9 = arith.constant 0 : index
    %15 = vector.load %arg2[%c0_8, %c0_9] : memref<256x256xi8, #tpu.memory_space<vmem>>, vector<256x256xi8>
    %16 = arith.sitofp %15 : vector<256x256xi8> to vector<256x256xf32>
    %cst_10 = arith.constant 0.000000e+00 : f32
    %17 = vector.broadcast %cst_10 : f32 to vector<256x256xf32>
    %18 = arith.cmpf ogt, %16, %17 : vector<256x256xf32>
    %cst_11 = arith.constant -1.000000e+30 : f32
    %19 = vector.broadcast %cst_11 : f32 to vector<256x256xf32>
    %20 = arith.select %18, %14, %19 : vector<256x256xi1>, vector<256x256xf32>
    %c0_12 = arith.constant 0 : index
    %c0_13 = arith.constant 0 : index
    %21 = vector.load %arg10[%c0_12, %c0_13] : memref<256x1xf32, #tpu.memory_space<vmem>>, vector<256x1xf32>
    %cst_14 = arith.constant dense<0xFF800000> : vector<256xf32>
    %22 = vector.multi_reduction <maximumf>, %20, %cst_14 [1] : vector<256x256xf32> to vector<256xf32>
    %23 = vector.shape_cast %22 : vector<256xf32> to vector<256x1xf32>
    %24 = arith.maximumf %21, %23 : vector<256x1xf32>
    %25 = arith.subf %21, %24 : vector<256x1xf32>
    %26 = math.exp %25 : vector<256x1xf32>
    %27 = vector.broadcast %24 : vector<256x1xf32> to vector<256x256xf32>
    %28 = arith.subf %20, %27 : vector<256x256xf32>
    %29 = math.exp %28 : vector<256x256xf32>
    %c0_15 = arith.constant 0 : index
    %c0_16 = arith.constant 0 : index
    %30 = vector.load %arg11[%c0_15, %c0_16] : memref<256x1xf32, #tpu.memory_space<vmem>>, vector<256x1xf32>
    %31 = arith.mulf %26, %30 : vector<256x1xf32>
    %cst_17 = arith.constant dense<0.000000e+00> : vector<256xf32>
    %32 = vector.multi_reduction <add>, %29, %cst_17 [1] : vector<256x256xf32> to vector<256xf32>
    %33 = vector.shape_cast %32 : vector<256xf32> to vector<256x1xf32>
    %34 = arith.addf %31, %33 : vector<256x1xf32>
    %c0_18 = arith.constant 0 : index
    %c0_19 = arith.constant 0 : index
    %35 = vector.load %arg11[%c0_18, %c0_19] : memref<256x1xf32, #tpu.memory_space<vmem>>, vector<256x1xf32>
    tpu.vector_store %arg11[%c0_18, %c0_19], %34 {strides = array<i32>} : memref<256x1xf32, #tpu.memory_space<vmem>>, vector<256x1xf32>,
    %c0_20 = arith.constant 0 : index
    %c0_21 = arith.constant 0 : index
    %36 = vector.load %arg12[%c0_20, %c0_21] : memref<256x128xf32, #tpu.memory_space<vmem>>, vector<256x128xf32>
    %37 = vector.broadcast %26 : vector<256x1xf32> to vector<256x128xf32>
    %38 = arith.mulf %37, %36 : vector<256x128xf32>
    %39 = arith.truncf %29 : vector<256x256xf32> to vector<256x256xbf16>
    %cst_22 = arith.constant dense<0.000000e+00> : vector<256x128xf32>
    %40 = tpu.matmul %39, %3, %cst_22 {dimension_numbers = #tpu.dot_dimension_numbers<[1], [0], [0], [1], [0, 0, 1, 1], [], []>} : vector<256x256xbf16>, vector<256x128xbf16>, vector<256x128xf32> -> vector<256x128xf32>
    %41 = arith.addf %38, %40 : vector<256x128xf32>
    %c0_23 = arith.constant 0 : index
    %c0_24 = arith.constant 0 : index
    %42 = vector.load %arg12[%c0_23, %c0_24] : memref<256x128xf32, #tpu.memory_space<vmem>>, vector<256x128xf32>
    tpu.vector_store %arg12[%c0_23, %c0_24], %41 {strides = array<i32>} : memref<256x128xf32, #tpu.memory_space<vmem>>, vector<256x128xf32>,
    %c0_25 = arith.constant 0 : index
    %c0_26 = arith.constant 0 : index
    %43 = vector.load %arg10[%c0_25, %c0_26] : memref<256x1xf32, #tpu.memory_space<vmem>>, vector<256x1xf32>
    tpu.vector_store %arg10[%c0_25, %c0_26], %24 {strides = array<i32>} : memref<256x1xf32, #tpu.memory_space<vmem>>, vector<256x1xf32>,
    %c0_i32_27 = arith.constant 0 : i32
    %44 = arith.cmpi eq, %arg1, %c0_i32_27 : i32
    %45 = arith.extui %44 : i1 to i32
    %c0_i32_28 = arith.constant 0 : i32
    %46 = arith.cmpi ne, %45, %c0_i32_28 : i32
    scf.if %46 {
      %c0_29 = arith.constant 0 : index
      %c0_30 = arith.constant 0 : index
      %47 = vector.load %arg12[%c0_29, %c0_30] : memref<256x128xf32, #tpu.memory_space<vmem>>, vector<256x128xf32>
      %c0_31 = arith.constant 0 : index
      %c0_32 = arith.constant 0 : index
      %48 = vector.load %arg11[%c0_31, %c0_32] : memref<256x1xf32, #tpu.memory_space<vmem>>, vector<256x1xf32>
      %49 = tpu.reciprocal %48 : vector<256x1xf32> -> vector<256x1xf32>
      %50 = vector.broadcast %49 : vector<256x1xf32> to vector<256x128xf32>
      %51 = arith.mulf %47, %50 : vector<256x128xf32>
      %c0_33 = arith.constant 0 : index
      %c0_34 = arith.constant 0 : index
      %52 = vector.load %arg7[%c0_33, %c0_34] : memref<1x128xf32, #tpu.memory_space<vmem>>, vector<1x128xf32>
      %53 = vector.broadcast %52 : vector<1x128xf32> to vector<256x128xf32>
      %54 = arith.mulf %51, %53 : vector<256x128xf32>
      %c0_35 = arith.constant 0 : index
      %c0_36 = arith.constant 0 : index
      %55 = vector.load %arg8[%c0_35, %c0_36] : memref<1x128xf32, #tpu.memory_space<vmem>>, vector<1x128xf32>
      %56 = vector.broadcast %55 : vector<1x128xf32> to vector<256x128xf32>
      %57 = arith.addf %54, %56 : vector<256x128xf32>
      %cst_37 = arith.constant 0.000000e+00 : f32
      %58 = vector.broadcast %cst_37 : f32 to vector<256x128xf32>
      %59 = arith.maximumf %57, %58 : vector<256x128xf32>
      %c0_38 = arith.constant 0 : index
      %c0_39 = arith.constant 0 : index
      %60 = vector.load %arg9[%c0_38, %c0_39] : memref<256x128xf32, #tpu.memory_space<vmem>>, vector<256x128xf32>
      tpu.vector_store %arg9[%c0_38, %c0_39], %59 {strides = array<i32>} : memref<256x128xf32, #tpu.memory_space<vmem>>, vector<256x128xf32>,
    } else {
    }
    return
  }
  func.func @transform_0(%arg0: i32, %arg1: i32) -> (i32, i32) {
    %c0_i32 = arith.constant 0 : i32
    return %arg0, %arg1 : i32, i32
  }
  func.func @transform_1(%arg0: i32, %arg1: i32) -> (i32, i32) {
    %c0_i32 = arith.constant 0 : i32
    %c0_i32_0 = arith.constant 0 : i32
    return %arg0, %c0_i32 : i32, i32
  }
  func.func @transform_2(%arg0: i32, %arg1: i32) -> (i32, i32) {
    %c0_i32 = arith.constant 0 : i32
    %c0_i32_0 = arith.constant 0 : i32
    return %arg1, %c0_i32 : i32, i32
  }
  func.func @transform_3(%arg0: i32, %arg1: i32) -> (i32, i32) {
    %c0_i32 = arith.constant 0 : i32
    %c0_i32_0 = arith.constant 0 : i32
    %c0_i32_1 = arith.constant 0 : i32
    return %c0_i32, %c0_i32_0 : i32, i32
  }
  func.func @transform_4(%arg0: i32, %arg1: i32) -> (i32, i32) {
    %c0_i32 = arith.constant 0 : i32
    %c0_i32_0 = arith.constant 0 : i32
    %c0_i32_1 = arith.constant 0 : i32
    return %c0_i32, %c0_i32_0 : i32, i32
  }
  func.func @transform_5(%arg0: i32, %arg1: i32) -> (i32, i32) {
    %c0_i32 = arith.constant 0 : i32
    %c0_i32_0 = arith.constant 0 : i32
    %c0_i32_1 = arith.constant 0 : i32
    return %c0_i32, %c0_i32_0 : i32, i32
  }
  func.func @transform_6(%arg0: i32, %arg1: i32) -> (i32, i32) {
    %c0_i32 = arith.constant 0 : i32
    %c0_i32_0 = arith.constant 0 : i32
    %c0_i32_1 = arith.constant 0 : i32
    return %c0_i32, %c0_i32_0 : i32, i32
  }
  func.func @transform_7(%arg0: i32, %arg1: i32) -> (i32, i32) {
    %c0_i32 = arith.constant 0 : i32
    %c0_i32_0 = arith.constant 0 : i32
    return %arg0, %c0_i32 : i32, i32
  }
}

module attributes {stable_mosaic.version = 11 : i64} {
  func.func @linear_kernel(%arg0: i32, %arg1: memref<256x128xf32, #tpu.memory_space<vmem>>, %arg2: memref<128x128xbf16, #tpu.memory_space<vmem>>, %arg3: memref<1x128xf32, #tpu.memory_space<vmem>>, %arg4: memref<256x128xbf16, #tpu.memory_space<vmem>>) attributes {dimension_semantics = [#tpu.dimension_semantics<parallel>], iteration_bounds = array<i64: 1>, scalar_prefetch = 0 : i64, scratch_operands = 0 : i64, tpu.core_type = #tpu.core_type<tc>, window_params = [{transform_indices = @transform_0, window_bounds = array<i64: 256, 128>}, {pipeline_mode = #tpu.pipeline_mode<synchronous>, transform_indices = @transform_1, window_bounds = array<i64: 128, 128>}, {pipeline_mode = #tpu.pipeline_mode<synchronous>, transform_indices = @transform_2, window_bounds = array<i64: 1, 128>}, {transform_indices = @transform_3, window_bounds = array<i64: 256, 128>}]} {
    %c0 = arith.constant 0 : index
    %c0_0 = arith.constant 0 : index
    %0 = vector.load %arg1[%c0, %c0_0] : memref<256x128xf32, #tpu.memory_space<vmem>>, vector<256x128xf32>
    %1 = arith.truncf %0 : vector<256x128xf32> to vector<256x128xbf16>
    %c0_1 = arith.constant 0 : index
    %c0_2 = arith.constant 0 : index
    %2 = vector.load %arg2[%c0_1, %c0_2] : memref<128x128xbf16, #tpu.memory_space<vmem>>, vector<128x128xbf16>
    %cst = arith.constant dense<0.000000e+00> : vector<256x128xf32>
    %3 = tpu.matmul %1, %2, %cst {dimension_numbers = #tpu.dot_dimension_numbers<[1], [0], [0], [1], [0, 0, 1, 1], [], []>} : vector<256x128xbf16>, vector<128x128xbf16>, vector<256x128xf32> -> vector<256x128xf32>
    %c0_3 = arith.constant 0 : index
    %c0_4 = arith.constant 0 : index
    %4 = vector.load %arg3[%c0_3, %c0_4] : memref<1x128xf32, #tpu.memory_space<vmem>>, vector<1x128xf32>
    %5 = vector.broadcast %4 : vector<1x128xf32> to vector<256x128xf32>
    %6 = arith.addf %3, %5 : vector<256x128xf32>
    %7 = arith.truncf %6 : vector<256x128xf32> to vector<256x128xbf16>
    %c0_5 = arith.constant 0 : index
    %c0_6 = arith.constant 0 : index
    %8 = vector.load %arg4[%c0_5, %c0_6] : memref<256x128xbf16, #tpu.memory_space<vmem>>, vector<256x128xbf16>
    tpu.vector_store %arg4[%c0_5, %c0_6], %7 {strides = array<i32>} : memref<256x128xbf16, #tpu.memory_space<vmem>>, vector<256x128xbf16>,
    return
  }
  func.func @transform_0(%arg0: i32) -> (i32, i32) {
    %c0_i32 = arith.constant 0 : i32
    %c0_i32_0 = arith.constant 0 : i32
    return %arg0, %c0_i32 : i32, i32
  }
  func.func @transform_1(%arg0: i32) -> (i32, i32) {
    %c0_i32 = arith.constant 0 : i32
    %c0_i32_0 = arith.constant 0 : i32
    %c0_i32_1 = arith.constant 0 : i32
    return %c0_i32, %c0_i32_0 : i32, i32
  }
  func.func @transform_2(%arg0: i32) -> (i32, i32) {
    %c0_i32 = arith.constant 0 : i32
    %c0_i32_0 = arith.constant 0 : i32
    %c0_i32_1 = arith.constant 0 : i32
    return %c0_i32, %c0_i32_0 : i32, i32
  }
  func.func @transform_3(%arg0: i32) -> (i32, i32) {
    %c0_i32 = arith.constant 0 : i32
    %c0_i32_0 = arith.constant 0 : i32
    return %arg0, %c0_i32 : i32, i32
  }
}

module attributes {stable_mosaic.version = 11 : i64} {
  func.func @softmax_head_kernel(%arg0: i32, %arg1: memref<256x128xf32, #tpu.memory_space<vmem>>, %arg2: memref<128x128xbf16, #tpu.memory_space<vmem>>, %arg3: memref<1x128xf32, #tpu.memory_space<vmem>>, %arg4: memref<256x128xf32, #tpu.memory_space<vmem>>) attributes {dimension_semantics = [#tpu.dimension_semantics<parallel>], iteration_bounds = array<i64: 1>, scalar_prefetch = 0 : i64, scratch_operands = 0 : i64, tpu.core_type = #tpu.core_type<tc>, window_params = [{transform_indices = @transform_0, window_bounds = array<i64: 256, 128>}, {pipeline_mode = #tpu.pipeline_mode<synchronous>, transform_indices = @transform_1, window_bounds = array<i64: 128, 128>}, {pipeline_mode = #tpu.pipeline_mode<synchronous>, transform_indices = @transform_2, window_bounds = array<i64: 1, 128>}, {transform_indices = @transform_3, window_bounds = array<i64: 256, 128>}]} {
    %c0 = arith.constant 0 : index
    %c0_0 = arith.constant 0 : index
    %0 = vector.load %arg1[%c0, %c0_0] : memref<256x128xf32, #tpu.memory_space<vmem>>, vector<256x128xf32>
    %1 = arith.truncf %0 : vector<256x128xf32> to vector<256x128xbf16>
    %c0_1 = arith.constant 0 : index
    %c0_2 = arith.constant 0 : index
    %2 = vector.load %arg2[%c0_1, %c0_2] : memref<128x128xbf16, #tpu.memory_space<vmem>>, vector<128x128xbf16>
    %cst = arith.constant dense<0.000000e+00> : vector<256x128xf32>
    %3 = tpu.matmul %1, %2, %cst {dimension_numbers = #tpu.dot_dimension_numbers<[1], [0], [0], [1], [0, 0, 1, 1], [], []>} : vector<256x128xbf16>, vector<128x128xbf16>, vector<256x128xf32> -> vector<256x128xf32>
    %c0_3 = arith.constant 0 : index
    %c0_4 = arith.constant 0 : index
    %4 = vector.load %arg3[%c0_3, %c0_4] : memref<1x128xf32, #tpu.memory_space<vmem>>, vector<1x128xf32>
    %5 = vector.broadcast %4 : vector<1x128xf32> to vector<256x128xf32>
    %6 = arith.addf %3, %5 : vector<256x128xf32>
    %cst_5 = arith.constant dense<0xFF800000> : vector<256xf32>
    %7 = vector.multi_reduction <maximumf>, %6, %cst_5 [1] : vector<256x128xf32> to vector<256xf32>
    %8 = vector.shape_cast %7 : vector<256xf32> to vector<256x1xf32>
    %9 = vector.broadcast %8 : vector<256x1xf32> to vector<256x128xf32>
    %10 = arith.subf %6, %9 : vector<256x128xf32>
    %11 = math.exp %10 : vector<256x128xf32>
    %cst_6 = arith.constant dense<0.000000e+00> : vector<256xf32>
    %12 = vector.multi_reduction <add>, %11, %cst_6 [1] : vector<256x128xf32> to vector<256xf32>
    %13 = vector.shape_cast %12 : vector<256xf32> to vector<256x1xf32>
    %14 = vector.broadcast %13 : vector<256x1xf32> to vector<256x128xf32>
    %15 = arith.divf %11, %14 : vector<256x128xf32>
    %c0_7 = arith.constant 0 : index
    %c0_8 = arith.constant 0 : index
    %16 = vector.load %arg4[%c0_7, %c0_8] : memref<256x128xf32, #tpu.memory_space<vmem>>, vector<256x128xf32>
    tpu.vector_store %arg4[%c0_7, %c0_8], %15 {strides = array<i32>} : memref<256x128xf32, #tpu.memory_space<vmem>>, vector<256x128xf32>,
    return
  }
  func.func @transform_0(%arg0: i32) -> (i32, i32) {
    %c0_i32 = arith.constant 0 : i32
    %c0_i32_0 = arith.constant 0 : i32
    return %arg0, %c0_i32 : i32, i32
  }
  func.func @transform_1(%arg0: i32) -> (i32, i32) {
    %c0_i32 = arith.constant 0 : i32
    %c0_i32_0 = arith.constant 0 : i32
    %c0_i32_1 = arith.constant 0 : i32
    return %c0_i32, %c0_i32_0 : i32, i32
  }
  func.func @transform_2(%arg0: i32) -> (i32, i32) {
    %c0_i32 = arith.constant 0 : i32
    %c0_i32_0 = arith.constant 0 : i32
    %c0_i32_1 = arith.constant 0 : i32
    return %c0_i32, %c0_i32_0 : i32, i32
  }
  func.func @transform_3(%arg0: i32) -> (i32, i32) {
    %c0_i32 = arith.constant 0 : i32
    %c0_i32_0 = arith.constant 0 : i32
    return %arg0, %c0_i32 : i32, i32
  }
}

</mosaic_0001>

<bundles_post_ra>
// kernel: gat_forward.6
= control target key start
LH: loop header
LB: loop body
LE: loop exit
PB: predicated region body
PF: predicated region fallthrough
CT: control target
= control target key end

     0   :  { %s741_s1 = inlined_call_operand.vmem [shape: bf16[128,128], index: 1, kind: input, shape index: {}]   ;;  %s742_s0 = inlined_call_operand.vmem [shape: f32[256,128], index: 0, kind: input, shape index: {}]   ;;  %s743_s2 = inlined_call_operand.vmem [shape: f32[1,128], index: 2, kind: input, shape index: {}]   ;;  %s744_s3 = inlined_call_operand.vmem [shape: f32[256,128], index: 3, kind: output, shape index: {}]  }
   0x1   :  { %v460_v0 = vld [vmem:[%s741_s1] sm:$0xff]   ;;  %v461_v1 = vld [vmem:[%s741_s1 + $0x8] sm:$0xff]   ;;  %v462_v2 = vld [vmem:[%s741_s1 + $0x10] sm:$0xff]  }
   0x2   :  { %396 = vmatprep.subr.bf16.mxu0 %v460_v0  ;;  %444 = vmatprep.subr.bf16.mxu1 %v460_v0  ;;  %v463_v3 = vld [vmem:[%s741_s1 + $0x18] sm:$0xff]   ;;  %v15_v4 = vld [vmem:[%s742_s0] sm:$0xff]  ;;  %v16_v5 = vld [vmem:[%s742_s0 + $0x8] sm:$0xff] }
   0x3   :  { %397 = vmatpush3.bf16.msra.mxu0 %v460_v0  ;;  %452 = vmatpush3.bf16.msra.mxu1 %v460_v0  ;;  %v31_v6 = vld [vmem:[%s742_s0 + $0x80] sm:$0xff]  ;;  %v47_v7 = vpack.c.bf16 %v16_v5, %v15_v4  ;;  %v32_v8 = vld [vmem:[%s742_s0 + $0x88] sm:$0xff]  ;;  %v466_v12 = vld [vmem:[%s741_s1 + $0x30] sm:$0xff]  }
   0x4   :  { %398 = vmatprep.subr.bf16.mxu0 %v461_v1  ;;  %445 = vmatprep.subr.bf16.mxu1 %v461_v1  ;;  %v55_v9 = vpack.c.bf16 %v32_v8, %v31_v6  ;;  %v464_v10 = vld [vmem:[%s741_s1 + $0x20] sm:$0xff]   ;;  %v465_v11 = vld [vmem:[%s741_s1 + $0x28] sm:$0xff]   ;;  %v467_v13 = vld [vmem:[%s741_s1 + $0x38] sm:$0xff]  }
   0x5   :  { %412 = vmatprep.mubr.bf16.mxu0 %v47_v7  ;;  %v17_v14 = vld [vmem:[%s742_s0 + $0x10] sm:$0xff]  ;;  %v18_v15 = vld [vmem:[%s742_s0 + $0x18] sm:$0xff]  ;;  %v19_v18 = vld [vmem:[%s742_s0 + $0x20] sm:$0xff] }
   0x6   :  { %428 = vmatprep.mubr.bf16.mxu1 %v55_v9  ;;  %v33_v16 = vld [vmem:[%s742_s0 + $0x90] sm:$0xff]  ;;  %v34_v17 = vld [vmem:[%s742_s0 + $0x98] sm:$0xff]  ;;  %v20_v19 = vld [vmem:[%s742_s0 + $0x28] sm:$0xff]  ;;  %v48_v22 = vpack.c.bf16 %v18_v15, %v17_v14 }
   0x7   :  { %399 = vmatpush3.bf16.msra.mxu0 %v461_v1  ;;  %453 = vmatpush3.bf16.msra.mxu1 %v461_v1  ;;  %v35_v20 = vld [vmem:[%s742_s0 + $0xa0] sm:$0xff]  ;;  %v36_v21 = vld [vmem:[%s742_s0 + $0xa8] sm:$0xff]  ;;  %v56_v23 = vpack.c.bf16 %v34_v17, %v33_v16  ;;  %v49_v24 = vpack.c.bf16 %v20_v19, %v19_v18  ;;  %v21_v26 = vld [vmem:[%s742_s0 + $0x30] sm:$0xff] }
   0x8   :  { %400 = vmatprep.subr.bf16.mxu0 %v462_v2  ;;  %446 = vmatprep.subr.bf16.mxu1 %v462_v2  ;;  %v57_v25 = vpack.c.bf16 %v36_v21, %v35_v20  ;;  %v22_v27 = vld [vmem:[%s742_s0 + $0x38] sm:$0xff]  ;;  %v37_v28 = vld [vmem:[%s742_s0 + $0xb0] sm:$0xff]  ;;  %v23_v30 = vld [vmem:[%s742_s0 + $0x40] sm:$0xff] }
   0x9   :  { %v38_v29 = vld [vmem:[%s742_s0 + $0xb8] sm:$0xff]  ;;  %v24_v31 = vld [vmem:[%s742_s0 + $0x48] sm:$0xff]  ;;  %v39_v32 = vld [vmem:[%s742_s0 + $0xc0] sm:$0xff]  ;;  %v50_v34 = vpack.c.bf16 %v22_v27, %v21_v26 }
   0xa   :  { %v40_v33 = vld [vmem:[%s742_s0 + $0xc8] sm:$0xff]  ;;  %v58_v35 = vpack.c.bf16 %v38_v29, %v37_v28  ;;  %v51_v36 = vpack.c.bf16 %v24_v31, %v23_v30  ;;  %v25_v38 = vld [vmem:[%s742_s0 + $0x50] sm:$0xff]  ;;  %v26_v39 = vld [vmem:[%s742_s0 + $0x58] sm:$0xff] }
   0xb   :  { %401 = vmatpush3.bf16.msra.mxu0 %v462_v2  ;;  %454 = vmatpush3.bf16.msra.mxu1 %v462_v2  ;;  %v59_v37 = vpack.c.bf16 %v40_v33, %v39_v32  ;;  %v41_v40 = vld [vmem:[%s742_s0 + $0xd0] sm:$0xff]  ;;  %v42_v41 = vld [vmem:[%s742_s0 + $0xd8] sm:$0xff]  ;;  %v27_v42 = vld [vmem:[%s742_s0 + $0x60] sm:$0xff]  ;;  %v52_v46 = vpack.c.bf16 %v26_v39, %v25_v38 }
   0xc   :  { %402 = vmatprep.subr.bf16.mxu0 %v463_v3  ;;  %447 = vmatprep.subr.bf16.mxu1 %v463_v3  ;;  %v28_v43 = vld [vmem:[%s742_s0 + $0x68] sm:$0xff]  ;;  %v43_v44 = vld [vmem:[%s742_s0 + $0xe0] sm:$0xff]  ;;  %v60_v47 = vpack.c.bf16 %v42_v41, %v41_v40  ;;  %v29_v50 = vld [vmem:[%s742_s0 + $0x70] sm:$0xff] }
   0xd   :  { %v44_v45 = vld [vmem:[%s742_s0 + $0xe8] sm:$0xff]  ;;  %v53_v48 = vpack.c.bf16 %v28_v43, %v27_v42  ;;  %v30_v51 = vld [vmem:[%s742_s0 + $0x78] sm:$0xff]  ;;  %v45_v52 = vld [vmem:[%s742_s0 + $0xf0] sm:$0xff] }
   0xe   :  { %v61_v49 = vpack.c.bf16 %v44_v45, %v43_v44  ;;  %v46_v53 = vld [vmem:[%s742_s0 + $0xf8] sm:$0xff]  ;;  %v54_v54 = vpack.c.bf16 %v30_v51, %v29_v50  ;;  %v611_v56 = vld [vmem:[%s743_s2] ss:$0 sm:$0xff] }
   0xf   :  { %403 = vmatpush3.bf16.msra.mxu0 %v463_v3  ;;  %455 = vmatpush3.bf16.msra.mxu1 %v463_v3  ;;  %v62_v55 = vpack.c.bf16 %v46_v53, %v45_v52 }
  0x10   :  { %404 = vmatprep.subr.bf16.mxu0 %v464_v10  ;;  %448 = vmatprep.subr.bf16.mxu1 %v464_v10 }
  0x13   :  { %405 = vmatpush3.bf16.msra.mxu0 %v464_v10  ;;  %456 = vmatpush3.bf16.msra.mxu1 %v464_v10 }
  0x14   :  { %406 = vmatprep.subr.bf16.mxu0 %v465_v11  ;;  %449 = vmatprep.subr.bf16.mxu1 %v465_v11 }
  0x17   :  { %407 = vmatpush3.bf16.msra.mxu0 %v465_v11  ;;  %457 = vmatpush3.bf16.msra.mxu1 %v465_v11 }
  0x18   :  { %408 = vmatprep.subr.bf16.mxu0 %v466_v12  ;;  %450 = vmatprep.subr.bf16.mxu1 %v466_v12 }
  0x1b   :  { %409 = vmatpush3.bf16.msra.mxu0 %v466_v12  ;;  %458 = vmatpush3.bf16.msra.mxu1 %v466_v12 }
  0x1c   :  { %410 = vmatprep.subr.bf16.mxu0 %v467_v13  ;;  %451 = vmatprep.subr.bf16.mxu1 %v467_v13 }
  0x1f   :  { %411 = vmatpush3.bf16.msra.mxu0 %v467_v13  ;;  %459 = vmatpush3.bf16.msra.mxu1 %v467_v13 }
  0x22   :  { %413 = vmatmul.mubr.bf16.vlgmr.msra.gmra.mrb[0].mxu0 %v48_v22  ;;  %429 = vmatmul.mubr.bf16.vlgmr.msra.gmra.mrb[0].mxu1 %v56_v23 }
  0x23   :  { %416 = vmatprep.mubr.bf16.mxu0 %v49_v24  ;;  %432 = vmatprep.mubr.bf16.mxu1 %v57_v25 }
  0x2a   :  { %417 = vmatmul.mubr.bf16.gmra.mrb[4].mxu0 %v50_v34  ;;  %433 = vmatmul.mubr.bf16.gmra.mrb[4].mxu1 %v58_v35 }
  0x2b   :  { %420 = vmatprep.mubr.bf16.mxu0 %v51_v36  ;;  %436 = vmatprep.mubr.bf16.mxu1 %v59_v37 }
  0x32   :  { %421 = vmatmul.mubr.bf16.gmra.mrb[8].mxu0 %v52_v46  ;;  %437 = vmatmul.mubr.bf16.gmra.mrb[8].mxu1 %v60_v47 }
  0x33   :  { %424 = vmatprep.mubr.bf16.mxu0 %v53_v48  ;;  %440 = vmatprep.mubr.bf16.mxu1 %v61_v49 }
  0x3a   :  { %425 = vmatmul.mubr.bf16.gmra.mrb[12].mxu0 %v54_v54  ;;  %441 = vmatmul.mubr.bf16.gmra.mrb[12].mxu1 %v62_v55 }
  0xf5   :  { %v414_v57 = vpop.f32.mrb[0].mxu0  ;;  %v430_v58 = vpop.f32.mrb[0].mxu1 }
  0xf6   :  { %v177_v59 = vadd.f32 %v414_v57, %v611_v56  ;;  %v241_v60 = vadd.f32 %v430_v58, %v611_v56  ;;  %v168_v61 = vpop.f32.mrb[1].mxu0  ;;  %v232_v62 = vpop.f32.mrb[1].mxu1 }
  0xf7   :  { %v169_v63 = vadd.f32 %v611_v56, %v168_v61  ;;  %v233_v0 = vadd.f32 %v611_v56, %v232_v62  ;;  %v415_v1 = vpop.f32.mrb[2].mxu0  ;;  %v431_v2 = vpop.f32.mrb[2].mxu1 }
  0xf8   :  { %v297_v3 = vmax.f32 %v177_v59, 0.0  ;;  %v313_v4 = vmax.f32 %v241_v60, 0.0  ;;  %v180_v5 = vadd.f32 %v415_v1, %v611_v56  ;;  %v244_v6 = vadd.f32 %v431_v2, %v611_v56  ;;  %v171_v7 = vpop.f32.mrb[3].mxu0  ;;  %v235_v8 = vpop.f32.mrb[3].mxu1 }
  0xf9   :  { %v295_v9 = vmax.f32 %v169_v63, 0.0  ;;  %v311_v10 = vmax.f32 %v233_v0, 0.0  ;;  %v172_v11 = vadd.f32 %v611_v56, %v171_v7  ;;  %v236_v12 = vadd.f32 %v611_v56, %v235_v8 }
  0xfa   :  { %329 = vst [vmem:[%s744_s3 + $0x10] sm:$0xff] %v297_v3  ;;  %345 = vst [vmem:[%s744_s3 + $0x90] sm:$0xff] %v313_v4  ;;  %v298_v13 = vmax.f32 %v180_v5, 0.0  ;;  %v314_v14 = vmax.f32 %v244_v6, 0.0 }
  0xfb   :  { %327 = vst [vmem:[%s744_s3] sm:$0xff] %v295_v9  ;;  %343 = vst [vmem:[%s744_s3 + $0x80] sm:$0xff] %v311_v10  ;;  %v296_v15 = vmax.f32 %v172_v11, 0.0  ;;  %v312_v16 = vmax.f32 %v236_v12, 0.0 }
  0xfc   :  { %330 = vst [vmem:[%s744_s3 + $0x18] sm:$0xff] %v298_v13  ;;  %346 = vst [vmem:[%s744_s3 + $0x98] sm:$0xff] %v314_v14 }
  0xfd   :  { %328 = vst [vmem:[%s744_s3 + $0x8] sm:$0xff] %v296_v15  ;;  %344 = vst [vmem:[%s744_s3 + $0x88] sm:$0xff] %v312_v16  ;;  %v418_v17 = vpop.f32.mrb[4].mxu0  ;;  %v434_v18 = vpop.f32.mrb[4].mxu1 }
  0xfe   :  { %v193_v19 = vadd.f32 %v418_v17, %v611_v56  ;;  %v257_v20 = vadd.f32 %v434_v18, %v611_v56  ;;  %v184_v21 = vpop.f32.mrb[5].mxu0  ;;  %v248_v22 = vpop.f32.mrb[5].mxu1 }
  0xff   :  { %v185_v23 = vadd.f32 %v611_v56, %v184_v21  ;;  %v249_v24 = vadd.f32 %v611_v56, %v248_v22  ;;  %v419_v25 = vpop.f32.mrb[6].mxu0  ;;  %v435_v26 = vpop.f32.mrb[6].mxu1 }
 0x100   :  { %v301_v27 = vmax.f32 %v193_v19, 0.0  ;;  %v317_v28 = vmax.f32 %v257_v20, 0.0  ;;  %v196_v29 = vadd.f32 %v419_v25, %v611_v56  ;;  %v260_v30 = vadd.f32 %v435_v26, %v611_v56  ;;  %v187_v31 = vpop.f32.mrb[7].mxu0  ;;  %v251_v32 = vpop.f32.mrb[7].mxu1 }
 0x101   :  { %v299_v33 = vmax.f32 %v185_v23, 0.0  ;;  %v315_v34 = vmax.f32 %v249_v24, 0.0  ;;  %v188_v35 = vadd.f32 %v611_v56, %v187_v31  ;;  %v252_v36 = vadd.f32 %v611_v56, %v251_v32 }
 0x102   :  { %333 = vst [vmem:[%s744_s3 + $0x30] sm:$0xff] %v301_v27  ;;  %349 = vst [vmem:[%s744_s3 + $0xb0] sm:$0xff] %v317_v28  ;;  %v302_v37 = vmax.f32 %v196_v29, 0.0  ;;  %v318_v38 = vmax.f32 %v260_v30, 0.0 }
 0x103   :  { %331 = vst [vmem:[%s744_s3 + $0x20] sm:$0xff] %v299_v33  ;;  %347 = vst [vmem:[%s744_s3 + $0xa0] sm:$0xff] %v315_v34  ;;  %v300_v39 = vmax.f32 %v188_v35, 0.0  ;;  %v316_v40 = vmax.f32 %v252_v36, 0.0 }
 0x104   :  { %334 = vst [vmem:[%s744_s3 + $0x38] sm:$0xff] %v302_v37  ;;  %350 = vst [vmem:[%s744_s3 + $0xb8] sm:$0xff] %v318_v38 }
 0x105   :  { %332 = vst [vmem:[%s744_s3 + $0x28] sm:$0xff] %v300_v39  ;;  %348 = vst [vmem:[%s744_s3 + $0xa8] sm:$0xff] %v316_v40  ;;  %v422_v41 = vpop.f32.mrb[8].mxu0  ;;  %v438_v42 = vpop.f32.mrb[8].mxu1 }
 0x106   :  { %v209_v43 = vadd.f32 %v422_v41, %v611_v56  ;;  %v273_v44 = vadd.f32 %v438_v42, %v611_v56  ;;  %v200_v45 = vpop.f32.mrb[9].mxu0  ;;  %v264_v46 = vpop.f32.mrb[9].mxu1 }
 0x107   :  { %v201_v47 = vadd.f32 %v611_v56, %v200_v45  ;;  %v265_v48 = vadd.f32 %v611_v56, %v264_v46  ;;  %v423_v49 = vpop.f32.mrb[10].mxu0  ;;  %v439_v50 = vpop.f32.mrb[10].mxu1 }
 0x108   :  { %v305_v51 = vmax.f32 %v209_v43, 0.0  ;;  %v321_v52 = vmax.f32 %v273_v44, 0.0  ;;  %v212_v53 = vadd.f32 %v423_v49, %v611_v56  ;;  %v276_v54 = vadd.f32 %v439_v50, %v611_v56  ;;  %v203_v55 = vpop.f32.mrb[11].mxu0  ;;  %v267_v57 = vpop.f32.mrb[11].mxu1 }
 0x109   :  { %v303_v58 = vmax.f32 %v201_v47, 0.0  ;;  %v319_v59 = vmax.f32 %v265_v48, 0.0  ;;  %v204_v60 = vadd.f32 %v611_v56, %v203_v55  ;;  %v268_v61 = vadd.f32 %v611_v56, %v267_v57 }
 0x10a   :  { %337 = vst [vmem:[%s744_s3 + $0x50] sm:$0xff] %v305_v51  ;;  %353 = vst [vmem:[%s744_s3 + $0xd0] sm:$0xff] %v321_v52  ;;  %v306_v62 = vmax.f32 %v212_v53, 0.0  ;;  %v322_v63 = vmax.f32 %v276_v54, 0.0 }
 0x10b   :  { %335 = vst [vmem:[%s744_s3 + $0x40] sm:$0xff] %v303_v58  ;;  %351 = vst [vmem:[%s744_s3 + $0xc0] sm:$0xff] %v319_v59  ;;  %v304_v0 = vmax.f32 %v204_v60, 0.0  ;;  %v320_v1 = vmax.f32 %v268_v61, 0.0 }
 0x10c   :  { %338 = vst [vmem:[%s744_s3 + $0x58] sm:$0xff] %v306_v62  ;;  %354 = vst [vmem:[%s744_s3 + $0xd8] sm:$0xff] %v322_v63 }
 0x10d   :  { %336 = vst [vmem:[%s744_s3 + $0x48] sm:$0xff] %v304_v0  ;;  %352 = vst [vmem:[%s744_s3 + $0xc8] sm:$0xff] %v320_v1  ;;  %v426_v2 = vpop.f32.mrb[12].mxu0  ;;  %v442_v3 = vpop.f32.mrb[12].mxu1 }
 0x10e   :  { %v225_v4 = vadd.f32 %v426_v2, %v611_v56  ;;  %v289_v5 = vadd.f32 %v442_v3, %v611_v56  ;;  %v216_v6 = vpop.f32.mrb[13].mxu0  ;;  %v280_v7 = vpop.f32.mrb[13].mxu1 }
 0x10f   :  { %v217_v8 = vadd.f32 %v611_v56, %v216_v6  ;;  %v281_v9 = vadd.f32 %v611_v56, %v280_v7  ;;  %v427_v10 = vpop.f32.mrb[14].mxu0  ;;  %v443_v11 = vpop.f32.mrb[14].mxu1 }
 0x110   :  { %v309_v12 = vmax.f32 %v225_v4, 0.0  ;;  %v325_v13 = vmax.f32 %v289_v5, 0.0  ;;  %v228_v14 = vadd.f32 %v427_v10, %v611_v56  ;;  %v292_v15 = vadd.f32 %v443_v11, %v611_v56  ;;  %v219_v16 = vpop.f32.mrb[15].mxu0  ;;  %v283_v17 = vpop.f32.mrb[15].mxu1 }
 0x111   :  { %v307_v18 = vmax.f32 %v217_v8, 0.0  ;;  %v323_v19 = vmax.f32 %v281_v9, 0.0  ;;  %v220_v20 = vadd.f32 %v611_v56, %v219_v16  ;;  %v284_v21 = vadd.f32 %v611_v56, %v283_v17 }
 0x112   :  { %341 = vst [vmem:[%s744_s3 + $0x70] sm:$0xff] %v309_v12  ;;  %357 = vst [vmem:[%s744_s3 + $0xf0] sm:$0xff] %v325_v13  ;;  %v310_v22 = vmax.f32 %v228_v14, 0.0  ;;  %v326_v23 = vmax.f32 %v292_v15, 0.0 }
 0x113   :  { %339 = vst [vmem:[%s744_s3 + $0x60] sm:$0xff] %v307_v18  ;;  %355 = vst [vmem:[%s744_s3 + $0xe0] sm:$0xff] %v323_v19  ;;  %v308_v24 = vmax.f32 %v220_v20, 0.0  ;;  %v324_v56 = vmax.f32 %v284_v21, 0.0 }
 0x114   :  { %342 = vst [vmem:[%s744_s3 + $0x78] sm:$0xff] %v310_v22  ;;  %358 = vst [vmem:[%s744_s3 + $0xf8] sm:$0xff] %v326_v23 }
 0x115   :  { %340 = vst [vmem:[%s744_s3 + $0x68] sm:$0xff] %v308_v24  ;;  %356 = vst [vmem:[%s744_s3 + $0xe8] sm:$0xff] %v324_v56 }

// kernel: gat_forward.7
= control target key start
LH: loop header
LB: loop body
LE: loop exit
PB: predicated region body
PF: predicated region fallthrough
CT: control target
= control target key end

     0   :  { %s948_s1 = inlined_call_operand.vmem [shape: bf16[128,128], index: 1, kind: input, shape index: {}]   ;;  %s949_s0 = inlined_call_operand.vmem [shape: f32[256,128], index: 0, kind: input, shape index: {}]   ;;  %s950_s2 = inlined_call_operand.vmem [shape: f32[1,128], index: 2, kind: input, shape index: {}]   ;;  %s951_s3 = inlined_call_operand.vmem [shape: bf16[256,128], index: 3, kind: output, shape index: {}]  }
   0x1   :  { %v715_v0 = vld [vmem:[%s948_s1] sm:$0xff]   ;;  %v716_v1 = vld [vmem:[%s948_s1 + $0x8] sm:$0xff]   ;;  %v717_v2 = vld [vmem:[%s948_s1 + $0x10] sm:$0xff]  }
   0x2   :  { %651 = vmatprep.subr.bf16.mxu0 %v715_v0  ;;  %699 = vmatprep.subr.bf16.mxu1 %v715_v0  ;;  %v718_v3 = vld [vmem:[%s948_s1 + $0x18] sm:$0xff]   ;;  %v15_v4 = vld [vmem:[%s949_s0] sm:$0xff]  ;;  %v16_v5 = vld [vmem:[%s949_s0 + $0x8] sm:$0xff] }
   0x3   :  { %652 = vmatpush3.bf16.msra.mxu0 %v715_v0  ;;  %707 = vmatpush3.bf16.msra.mxu1 %v715_v0  ;;  %v31_v6 = vld [vmem:[%s949_s0 + $0x80] sm:$0xff]  ;;  %v47_v7 = vpack.c.bf16 %v16_v5, %v15_v4  ;;  %v32_v8 = vld [vmem:[%s949_s0 + $0x88] sm:$0xff]  ;;  %v721_v12 = vld [vmem:[%s948_s1 + $0x30] sm:$0xff]  }
   0x4   :  { %653 = vmatprep.subr.bf16.mxu0 %v716_v1  ;;  %700 = vmatprep.subr.bf16.mxu1 %v716_v1  ;;  %v55_v9 = vpack.c.bf16 %v32_v8, %v31_v6  ;;  %v719_v10 = vld [vmem:[%s948_s1 + $0x20] sm:$0xff]   ;;  %v720_v11 = vld [vmem:[%s948_s1 + $0x28] sm:$0xff]   ;;  %v722_v13 = vld [vmem:[%s948_s1 + $0x38] sm:$0xff]  }
   0x5   :  { %667 = vmatprep.mubr.bf16.mxu0 %v47_v7  ;;  %v17_v14 = vld [vmem:[%s949_s0 + $0x10] sm:$0xff]  ;;  %v18_v15 = vld [vmem:[%s949_s0 + $0x18] sm:$0xff]  ;;  %v19_v18 = vld [vmem:[%s949_s0 + $0x20] sm:$0xff] }
   0x6   :  { %683 = vmatprep.mubr.bf16.mxu1 %v55_v9  ;;  %v33_v16 = vld [vmem:[%s949_s0 + $0x90] sm:$0xff]  ;;  %v34_v17 = vld [vmem:[%s949_s0 + $0x98] sm:$0xff]  ;;  %v20_v19 = vld [vmem:[%s949_s0 + $0x28] sm:$0xff]  ;;  %v48_v22 = vpack.c.bf16 %v18_v15, %v17_v14 }
   0x7   :  { %654 = vmatpush3.bf16.msra.mxu0 %v716_v1  ;;  %708 = vmatpush3.bf16.msra.mxu1 %v716_v1  ;;  %v35_v20 = vld [vmem:[%s949_s0 + $0xa0] sm:$0xff]  ;;  %v36_v21 = vld [vmem:[%s949_s0 + $0xa8] sm:$0xff]  ;;  %v56_v23 = vpack.c.bf16 %v34_v17, %v33_v16  ;;  %v49_v24 = vpack.c.bf16 %v20_v19, %v19_v18  ;;  %v21_v26 = vld [vmem:[%s949_s0 + $0x30] sm:$0xff] }
   0x8   :  { %655 = vmatprep.subr.bf16.mxu0 %v717_v2  ;;  %701 = vmatprep.subr.bf16.mxu1 %v717_v2  ;;  %v57_v25 = vpack.c.bf16 %v36_v21, %v35_v20  ;;  %v22_v27 = vld [vmem:[%s949_s0 + $0x38] sm:$0xff]  ;;  %v37_v28 = vld [vmem:[%s949_s0 + $0xb0] sm:$0xff]  ;;  %v23_v30 = vld [vmem:[%s949_s0 + $0x40] sm:$0xff] }
   0x9   :  { %v38_v29 = vld [vmem:[%s949_s0 + $0xb8] sm:$0xff]  ;;  %v24_v31 = vld [vmem:[%s949_s0 + $0x48] sm:$0xff]  ;;  %v39_v32 = vld [vmem:[%s949_s0 + $0xc0] sm:$0xff]  ;;  %v50_v34 = vpack.c.bf16 %v22_v27, %v21_v26 }
   0xa   :  { %v40_v33 = vld [vmem:[%s949_s0 + $0xc8] sm:$0xff]  ;;  %v58_v35 = vpack.c.bf16 %v38_v29, %v37_v28  ;;  %v51_v36 = vpack.c.bf16 %v24_v31, %v23_v30  ;;  %v25_v38 = vld [vmem:[%s949_s0 + $0x50] sm:$0xff]  ;;  %v26_v39 = vld [vmem:[%s949_s0 + $0x58] sm:$0xff] }
   0xb   :  { %656 = vmatpush3.bf16.msra.mxu0 %v717_v2  ;;  %709 = vmatpush3.bf16.msra.mxu1 %v717_v2  ;;  %v59_v37 = vpack.c.bf16 %v40_v33, %v39_v32  ;;  %v41_v40 = vld [vmem:[%s949_s0 + $0xd0] sm:$0xff]  ;;  %v42_v41 = vld [vmem:[%s949_s0 + $0xd8] sm:$0xff]  ;;  %v27_v42 = vld [vmem:[%s949_s0 + $0x60] sm:$0xff]  ;;  %v52_v46 = vpack.c.bf16 %v26_v39, %v25_v38 }
   0xc   :  { %657 = vmatprep.subr.bf16.mxu0 %v718_v3  ;;  %702 = vmatprep.subr.bf16.mxu1 %v718_v3  ;;  %v28_v43 = vld [vmem:[%s949_s0 + $0x68] sm:$0xff]  ;;  %v43_v44 = vld [vmem:[%s949_s0 + $0xe0] sm:$0xff]  ;;  %v60_v47 = vpack.c.bf16 %v42_v41, %v41_v40  ;;  %v29_v50 = vld [vmem:[%s949_s0 + $0x70] sm:$0xff] }
   0xd   :  { %v44_v45 = vld [vmem:[%s949_s0 + $0xe8] sm:$0xff]  ;;  %v53_v48 = vpack.c.bf16 %v28_v43, %v27_v42  ;;  %v30_v51 = vld [vmem:[%s949_s0 + $0x78] sm:$0xff]  ;;  %v45_v52 = vld [vmem:[%s949_s0 + $0xf0] sm:$0xff] }
   0xe   :  { %v61_v49 = vpack.c.bf16 %v44_v45, %v43_v44  ;;  %v46_v53 = vld [vmem:[%s949_s0 + $0xf8] sm:$0xff]  ;;  %v54_v54 = vpack.c.bf16 %v30_v51, %v29_v50  ;;  %v866_v57 = vld [vmem:[%s950_s2] ss:$0 sm:$0xff] }
   0xf   :  { %658 = vmatpush3.bf16.msra.mxu0 %v718_v3  ;;  %710 = vmatpush3.bf16.msra.mxu1 %v718_v3  ;;  %v62_v55 = vpack.c.bf16 %v46_v53, %v45_v52 }
  0x10   :  { %659 = vmatprep.subr.bf16.mxu0 %v719_v10  ;;  %703 = vmatprep.subr.bf16.mxu1 %v719_v10 }
  0x13   :  { %660 = vmatpush3.bf16.msra.mxu0 %v719_v10  ;;  %711 = vmatpush3.bf16.msra.mxu1 %v719_v10 }
  0x14   :  { %661 = vmatprep.subr.bf16.mxu0 %v720_v11  ;;  %704 = vmatprep.subr.bf16.mxu1 %v720_v11 }
  0x17   :  { %662 = vmatpush3.bf16.msra.mxu0 %v720_v11  ;;  %712 = vmatpush3.bf16.msra.mxu1 %v720_v11 }
  0x18   :  { %663 = vmatprep.subr.bf16.mxu0 %v721_v12  ;;  %705 = vmatprep.subr.bf16.mxu1 %v721_v12 }
  0x1b   :  { %664 = vmatpush3.bf16.msra.mxu0 %v721_v12  ;;  %713 = vmatpush3.bf16.msra.mxu1 %v721_v12 }
  0x1c   :  { %665 = vmatprep.subr.bf16.mxu0 %v722_v13  ;;  %706 = vmatprep.subr.bf16.mxu1 %v722_v13 }
  0x1f   :  { %666 = vmatpush3.bf16.msra.mxu0 %v722_v13  ;;  %714 = vmatpush3.bf16.msra.mxu1 %v722_v13 }
  0x22   :  { %668 = vmatmul.mubr.bf16.vlgmr.msra.gmra.mrb[0].mxu0 %v48_v22  ;;  %684 = vmatmul.mubr.bf16.vlgmr.msra.gmra.mrb[0].mxu1 %v56_v23 }
  0x23   :  { %671 = vmatprep.mubr.bf16.mxu0 %v49_v24  ;;  %687 = vmatprep.mubr.bf16.mxu1 %v57_v25 }
  0x2a   :  { %672 = vmatmul.mubr.bf16.gmra.mrb[4].mxu0 %v50_v34  ;;  %688 = vmatmul.mubr.bf16.gmra.mrb[4].mxu1 %v58_v35 }
  0x2b   :  { %675 = vmatprep.mubr.bf16.mxu0 %v51_v36  ;;  %691 = vmatprep.mubr.bf16.mxu1 %v59_v37 }
  0x32   :  { %676 = vmatmul.mubr.bf16.gmra.mrb[8].mxu0 %v52_v46  ;;  %692 = vmatmul.mubr.bf16.gmra.mrb[8].mxu1 %v60_v47 }
  0x33   :  { %679 = vmatprep.mubr.bf16.mxu0 %v53_v48  ;;  %695 = vmatprep.mubr.bf16.mxu1 %v61_v49 }
  0x3a   :  { %680 = vmatmul.mubr.bf16.gmra.mrb[12].mxu0 %v54_v54  ;;  %696 = vmatmul.mubr.bf16.gmra.mrb[12].mxu1 %v62_v55 }
  0xf5   :  { %v669_v56 = vpop.f32.mrb[0].mxu0  ;;  %v685_v58 = vpop.f32.mrb[0].mxu1 }
  0xf6   :  { %v168_v59 = vpop.f32.mrb[1].mxu0  ;;  %v232_v60 = vpop.f32.mrb[1].mxu1  ;;  %v177_v63 = vadd.f32 %v669_v56, %v866_v57  ;;  %v241_v0 = vadd.f32 %v685_v58, %v866_v57 }
  0xf7   :  { %v670_v61 = vpop.f32.mrb[2].mxu0  ;;  %v686_v62 = vpop.f32.mrb[2].mxu1  ;;  %v169_v5 = vadd.f32 %v866_v57, %v168_v59  ;;  %v233_v6 = vadd.f32 %v866_v57, %v232_v60 }
  0xf8   :  { %v180_v1 = vadd.f32 %v670_v61, %v866_v57  ;;  %v244_v2 = vadd.f32 %v686_v62, %v866_v57  ;;  %v171_v3 = vpop.f32.mrb[3].mxu0  ;;  %v235_v4 = vpop.f32.mrb[3].mxu1 }
  0xf9   :  { %v172_v7 = vadd.f32 %v866_v57, %v171_v3  ;;  %v236_v8 = vadd.f32 %v866_v57, %v235_v4 }
  0xfa   :  { %v540_v9 = vpack.c.bf16 %v180_v1, %v177_v63  ;;  %v580_v10 = vpack.c.bf16 %v244_v2, %v241_v0 }
  0xfb   :  { %v535_v11 = vpack.c.bf16 %v172_v7, %v169_v5  ;;  %v575_v12 = vpack.c.bf16 %v236_v8, %v233_v6 }
  0xfc   :  { %612 = vst [vmem:[%s951_s3 + $0x8] sm:$0xff] %v540_v9   ;;  %620 = vst [vmem:[%s951_s3 + $0x48] sm:$0xff] %v580_v10  }
  0xfd   :  { %536 = vst [vmem:[%s951_s3] sm:$0xff] %v535_v11   ;;  %619 = vst [vmem:[%s951_s3 + $0x40] sm:$0xff] %v575_v12   ;;  %v673_v13 = vpop.f32.mrb[4].mxu0  ;;  %v689_v14 = vpop.f32.mrb[4].mxu1 }
  0xfe   :  { %v184_v15 = vpop.f32.mrb[5].mxu0  ;;  %v248_v16 = vpop.f32.mrb[5].mxu1  ;;  %v193_v19 = vadd.f32 %v673_v13, %v866_v57  ;;  %v257_v20 = vadd.f32 %v689_v14, %v866_v57 }
  0xff   :  { %v674_v17 = vpop.f32.mrb[6].mxu0  ;;  %v690_v18 = vpop.f32.mrb[6].mxu1  ;;  %v185_v25 = vadd.f32 %v866_v57, %v184_v15  ;;  %v249_v26 = vadd.f32 %v866_v57, %v248_v16 }
 0x100   :  { %v196_v21 = vadd.f32 %v674_v17, %v866_v57  ;;  %v260_v22 = vadd.f32 %v690_v18, %v866_v57  ;;  %v187_v23 = vpop.f32.mrb[7].mxu0  ;;  %v251_v24 = vpop.f32.mrb[7].mxu1 }
 0x101   :  { %v188_v27 = vadd.f32 %v866_v57, %v187_v23  ;;  %v252_v28 = vadd.f32 %v866_v57, %v251_v24 }
 0x102   :  { %v550_v29 = vpack.c.bf16 %v196_v21, %v193_v19  ;;  %v590_v30 = vpack.c.bf16 %v260_v22, %v257_v20 }
 0x103   :  { %v545_v31 = vpack.c.bf16 %v188_v27, %v185_v25  ;;  %v585_v32 = vpack.c.bf16 %v252_v28, %v249_v26 }
 0x104   :  { %614 = vst [vmem:[%s951_s3 + $0x18] sm:$0xff] %v550_v29   ;;  %622 = vst [vmem:[%s951_s3 + $0x58] sm:$0xff] %v590_v30  }
 0x105   :  { %613 = vst [vmem:[%s951_s3 + $0x10] sm:$0xff] %v545_v31   ;;  %621 = vst [vmem:[%s951_s3 + $0x50] sm:$0xff] %v585_v32   ;;  %v677_v33 = vpop.f32.mrb[8].mxu0  ;;  %v693_v34 = vpop.f32.mrb[8].mxu1 }
 0x106   :  { %v200_v35 = vpop.f32.mrb[9].mxu0  ;;  %v264_v36 = vpop.f32.mrb[9].mxu1  ;;  %v209_v39 = vadd.f32 %v677_v33, %v866_v57  ;;  %v273_v40 = vadd.f32 %v693_v34, %v866_v57 }
 0x107   :  { %v678_v37 = vpop.f32.mrb[10].mxu0  ;;  %v694_v38 = vpop.f32.mrb[10].mxu1  ;;  %v201_v45 = vadd.f32 %v866_v57, %v200_v35  ;;  %v265_v46 = vadd.f32 %v866_v57, %v264_v36 }
 0x108   :  { %v212_v41 = vadd.f32 %v678_v37, %v866_v57  ;;  %v276_v42 = vadd.f32 %v694_v38, %v866_v57  ;;  %v203_v43 = vpop.f32.mrb[11].mxu0  ;;  %v267_v44 = vpop.f32.mrb[11].mxu1 }
 0x109   :  { %v204_v47 = vadd.f32 %v866_v57, %v203_v43  ;;  %v268_v48 = vadd.f32 %v866_v57, %v267_v44 }
 0x10a   :  { %v560_v49 = vpack.c.bf16 %v212_v41, %v209_v39  ;;  %v600_v50 = vpack.c.bf16 %v276_v42, %v273_v40 }
 0x10b   :  { %v555_v51 = vpack.c.bf16 %v204_v47, %v201_v45  ;;  %v595_v52 = vpack.c.bf16 %v268_v48, %v265_v46 }
 0x10c   :  { %616 = vst [vmem:[%s951_s3 + $0x28] sm:$0xff] %v560_v49   ;;  %624 = vst [vmem:[%s951_s3 + $0x68] sm:$0xff] %v600_v50  }
 0x10d   :  { %615 = vst [vmem:[%s951_s3 + $0x20] sm:$0xff] %v555_v51   ;;  %623 = vst [vmem:[%s951_s3 + $0x60] sm:$0xff] %v595_v52   ;;  %v681_v53 = vpop.f32.mrb[12].mxu0  ;;  %v697_v54 = vpop.f32.mrb[12].mxu1 }
 0x10e   :  { %v216_v55 = vpop.f32.mrb[13].mxu0  ;;  %v280_v56 = vpop.f32.mrb[13].mxu1  ;;  %v225_v60 = vadd.f32 %v681_v53, %v866_v57  ;;  %v289_v61 = vadd.f32 %v697_v54, %v866_v57 }
 0x10f   :  { %v682_v58 = vpop.f32.mrb[14].mxu0  ;;  %v698_v59 = vpop.f32.mrb[14].mxu1  ;;  %v217_v2 = vadd.f32 %v866_v57, %v216_v55  ;;  %v281_v3 = vadd.f32 %v866_v57, %v280_v56 }
 0x110   :  { %v228_v62 = vadd.f32 %v682_v58, %v866_v57  ;;  %v292_v63 = vadd.f32 %v698_v59, %v866_v57  ;;  %v219_v0 = vpop.f32.mrb[15].mxu0  ;;  %v283_v1 = vpop.f32.mrb[15].mxu1 }
 0x111   :  { %v220_v4 = vadd.f32 %v866_v57, %v219_v0  ;;  %v284_v5 = vadd.f32 %v866_v57, %v283_v1 }
 0x112   :  { %v570_v6 = vpack.c.bf16 %v228_v62, %v225_v60  ;;  %v610_v7 = vpack.c.bf16 %v292_v63, %v289_v61 }
 0x113   :  { %v565_v8 = vpack.c.bf16 %v220_v4, %v217_v2  ;;  %v605_v9 = vpack.c.bf16 %v284_v5, %v281_v3 }
 0x114   :  { %618 = vst [vmem:[%s951_s3 + $0x38] sm:$0xff] %v570_v6   ;;  %626 = vst [vmem:[%s951_s3 + $0x78] sm:$0xff] %v610_v7  }
 0x115   :  { %617 = vst [vmem:[%s951_s3 + $0x30] sm:$0xff] %v565_v8   ;;  %625 = vst [vmem:[%s951_s3 + $0x70] sm:$0xff] %v605_v9  }

// kernel: gat_forward.11
= control target key start
LH: loop header
LB: loop body
LE: loop exit
PB: predicated region body
PF: predicated region fallthrough
CT: control target
= control target key end

     0   :  { %s1381_s1 = inlined_call_operand.vmem [shape: bf16[128,128], index: 1, kind: input, shape index: {}]   ;;  %s1382_s0 = inlined_call_operand.vmem [shape: f32[256,128], index: 0, kind: input, shape index: {}]   ;;  %s1383_s2 = inlined_call_operand.vmem [shape: f32[1,128], index: 2, kind: input, shape index: {}]   ;;  %s1384_s3 = inlined_call_operand.vmem [shape: f32[256,128], index: 3, kind: output, shape index: {}]  }
   0x1   :  { %v716_v0 = vld [vmem:[%s1381_s1] sm:$0xff]   ;;  %v717_v1 = vld [vmem:[%s1381_s1 + $0x8] sm:$0xff]   ;;  %v718_v2 = vld [vmem:[%s1381_s1 + $0x10] sm:$0xff]  }
   0x2   :  { %652 = vmatprep.subr.bf16.mxu0 %v716_v0  ;;  %700 = vmatprep.subr.bf16.mxu1 %v716_v0  ;;  %v719_v3 = vld [vmem:[%s1381_s1 + $0x18] sm:$0xff]   ;;  %v15_v4 = vld [vmem:[%s1382_s0] sm:$0xff]  ;;  %v16_v5 = vld [vmem:[%s1382_s0 + $0x8] sm:$0xff] }
   0x3   :  { %653 = vmatpush3.bf16.msra.mxu0 %v716_v0  ;;  %708 = vmatpush3.bf16.msra.mxu1 %v716_v0  ;;  %v31_v6 = vld [vmem:[%s1382_s0 + $0x80] sm:$0xff]  ;;  %v47_v7 = vpack.c.bf16 %v16_v5, %v15_v4  ;;  %v32_v8 = vld [vmem:[%s1382_s0 + $0x88] sm:$0xff]  ;;  %v722_v12 = vld [vmem:[%s1381_s1 + $0x30] sm:$0xff]  }
   0x4   :  { %654 = vmatprep.subr.bf16.mxu0 %v717_v1  ;;  %701 = vmatprep.subr.bf16.mxu1 %v717_v1  ;;  %v55_v9 = vpack.c.bf16 %v32_v8, %v31_v6  ;;  %v720_v10 = vld [vmem:[%s1381_s1 + $0x20] sm:$0xff]   ;;  %v721_v11 = vld [vmem:[%s1381_s1 + $0x28] sm:$0xff]   ;;  %v723_v13 = vld [vmem:[%s1381_s1 + $0x38] sm:$0xff]  }
   0x5   :  { %668 = vmatprep.mubr.bf16.mxu0 %v47_v7  ;;  %v17_v14 = vld [vmem:[%s1382_s0 + $0x10] sm:$0xff]  ;;  %v18_v15 = vld [vmem:[%s1382_s0 + $0x18] sm:$0xff]  ;;  %v19_v18 = vld [vmem:[%s1382_s0 + $0x20] sm:$0xff] }
   0x6   :  { %684 = vmatprep.mubr.bf16.mxu1 %v55_v9  ;;  %v33_v16 = vld [vmem:[%s1382_s0 + $0x90] sm:$0xff]  ;;  %v34_v17 = vld [vmem:[%s1382_s0 + $0x98] sm:$0xff]  ;;  %v20_v19 = vld [vmem:[%s1382_s0 + $0x28] sm:$0xff]  ;;  %v48_v22 = vpack.c.bf16 %v18_v15, %v17_v14 }
   0x7   :  { %655 = vmatpush3.bf16.msra.mxu0 %v717_v1  ;;  %709 = vmatpush3.bf16.msra.mxu1 %v717_v1  ;;  %v35_v20 = vld [vmem:[%s1382_s0 + $0xa0] sm:$0xff]  ;;  %v36_v21 = vld [vmem:[%s1382_s0 + $0xa8] sm:$0xff]  ;;  %v56_v23 = vpack.c.bf16 %v34_v17, %v33_v16  ;;  %v49_v24 = vpack.c.bf16 %v20_v19, %v19_v18  ;;  %v21_v26 = vld [vmem:[%s1382_s0 + $0x30] sm:$0xff] }
   0x8   :  { %656 = vmatprep.subr.bf16.mxu0 %v718_v2  ;;  %702 = vmatprep.subr.bf16.mxu1 %v718_v2  ;;  %v57_v25 = vpack.c.bf16 %v36_v21, %v35_v20  ;;  %v22_v27 = vld [vmem:[%s1382_s0 + $0x38] sm:$0xff]  ;;  %v37_v28 = vld [vmem:[%s1382_s0 + $0xb0] sm:$0xff]  ;;  %v23_v30 = vld [vmem:[%s1382_s0 + $0x40] sm:$0xff] }
   0x9   :  { %v38_v29 = vld [vmem:[%s1382_s0 + $0xb8] sm:$0xff]  ;;  %v24_v31 = vld [vmem:[%s1382_s0 + $0x48] sm:$0xff]  ;;  %v39_v32 = vld [vmem:[%s1382_s0 + $0xc0] sm:$0xff]  ;;  %v50_v34 = vpack.c.bf16 %v22_v27, %v21_v26 }
   0xa   :  { %v40_v33 = vld [vmem:[%s1382_s0 + $0xc8] sm:$0xff]  ;;  %v58_v35 = vpack.c.bf16 %v38_v29, %v37_v28  ;;  %v51_v36 = vpack.c.bf16 %v24_v31, %v23_v30  ;;  %v25_v38 = vld [vmem:[%s1382_s0 + $0x50] sm:$0xff]  ;;  %v26_v39 = vld [vmem:[%s1382_s0 + $0x58] sm:$0xff] }
   0xb   :  { %657 = vmatpush3.bf16.msra.mxu0 %v718_v2  ;;  %710 = vmatpush3.bf16.msra.mxu1 %v718_v2  ;;  %v59_v37 = vpack.c.bf16 %v40_v33, %v39_v32  ;;  %v41_v40 = vld [vmem:[%s1382_s0 + $0xd0] sm:$0xff]  ;;  %v42_v41 = vld [vmem:[%s1382_s0 + $0xd8] sm:$0xff]  ;;  %v27_v42 = vld [vmem:[%s1382_s0 + $0x60] sm:$0xff]  ;;  %v52_v46 = vpack.c.bf16 %v26_v39, %v25_v38 }
   0xc   :  { %658 = vmatprep.subr.bf16.mxu0 %v719_v3  ;;  %703 = vmatprep.subr.bf16.mxu1 %v719_v3  ;;  %v28_v43 = vld [vmem:[%s1382_s0 + $0x68] sm:$0xff]  ;;  %v43_v44 = vld [vmem:[%s1382_s0 + $0xe0] sm:$0xff]  ;;  %v60_v47 = vpack.c.bf16 %v42_v41, %v41_v40  ;;  %v29_v50 = vld [vmem:[%s1382_s0 + $0x70] sm:$0xff] }
   0xd   :  { %v44_v45 = vld [vmem:[%s1382_s0 + $0xe8] sm:$0xff]  ;;  %v53_v48 = vpack.c.bf16 %v28_v43, %v27_v42  ;;  %v30_v51 = vld [vmem:[%s1382_s0 + $0x78] sm:$0xff]  ;;  %v45_v52 = vld [vmem:[%s1382_s0 + $0xf0] sm:$0xff] }
   0xe   :  { %v61_v49 = vpack.c.bf16 %v44_v45, %v43_v44  ;;  %v46_v53 = vld [vmem:[%s1382_s0 + $0xf8] sm:$0xff]  ;;  %v54_v54 = vpack.c.bf16 %v30_v51, %v29_v50  ;;  %v995_v56 = vld [vmem:[%s1383_s2] ss:$0 sm:$0xff] }
   0xf   :  { %659 = vmatpush3.bf16.msra.mxu0 %v719_v3  ;;  %711 = vmatpush3.bf16.msra.mxu1 %v719_v3  ;;  %v62_v55 = vpack.c.bf16 %v46_v53, %v45_v52 }
  0x10   :  { %660 = vmatprep.subr.bf16.mxu0 %v720_v10  ;;  %704 = vmatprep.subr.bf16.mxu1 %v720_v10 }
  0x13   :  { %661 = vmatpush3.bf16.msra.mxu0 %v720_v10  ;;  %712 = vmatpush3.bf16.msra.mxu1 %v720_v10 }
  0x14   :  { %662 = vmatprep.subr.bf16.mxu0 %v721_v11  ;;  %705 = vmatprep.subr.bf16.mxu1 %v721_v11 }
  0x17   :  { %663 = vmatpush3.bf16.msra.mxu0 %v721_v11  ;;  %713 = vmatpush3.bf16.msra.mxu1 %v721_v11 }
  0x18   :  { %664 = vmatprep.subr.bf16.mxu0 %v722_v12  ;;  %706 = vmatprep.subr.bf16.mxu1 %v722_v12 }
  0x1b   :  { %665 = vmatpush3.bf16.msra.mxu0 %v722_v12  ;;  %714 = vmatpush3.bf16.msra.mxu1 %v722_v12 }
  0x1c   :  { %666 = vmatprep.subr.bf16.mxu0 %v723_v13  ;;  %707 = vmatprep.subr.bf16.mxu1 %v723_v13 }
  0x1f   :  { %667 = vmatpush3.bf16.msra.mxu0 %v723_v13  ;;  %715 = vmatpush3.bf16.msra.mxu1 %v723_v13 }
  0x22   :  { %669 = vmatmul.mubr.bf16.vlgmr.msra.gmra.mrb[0].mxu0 %v48_v22  ;;  %685 = vmatmul.mubr.bf16.vlgmr.msra.gmra.mrb[0].mxu1 %v56_v23 }
  0x23   :  { %672 = vmatprep.mubr.bf16.mxu0 %v49_v24  ;;  %688 = vmatprep.mubr.bf16.mxu1 %v57_v25 }
  0x2a   :  { %673 = vmatmul.mubr.bf16.gmra.mrb[4].mxu0 %v50_v34  ;;  %689 = vmatmul.mubr.bf16.gmra.mrb[4].mxu1 %v58_v35 }
  0x2b   :  { %676 = vmatprep.mubr.bf16.mxu0 %v51_v36  ;;  %692 = vmatprep.mubr.bf16.mxu1 %v59_v37 }
  0x32   :  { %677 = vmatmul.mubr.bf16.gmra.mrb[8].mxu0 %v52_v46  ;;  %693 = vmatmul.mubr.bf16.gmra.mrb[8].mxu1 %v60_v47 }
  0x33   :  { %680 = vmatprep.mubr.bf16.mxu0 %v53_v48  ;;  %696 = vmatprep.mubr.bf16.mxu1 %v61_v49 }
  0x3a   :  { %681 = vmatmul.mubr.bf16.gmra.mrb[12].mxu0 %v54_v54  ;;  %697 = vmatmul.mubr.bf16.gmra.mrb[12].mxu1 %v62_v55 }
  0xf5   :  { %v670_v57 = vpop.f32.mrb[0].mxu0  ;;  %v686_v58 = vpop.f32.mrb[0].mxu1 }
  0xf6   :  { %v998_v59 = vadd.f32 %v670_v57, %v995_v56  ;;  %v1001_v60 = vadd.f32 %v686_v58, %v995_v56  ;;  %v168_v61 = vpop.f32.mrb[1].mxu0  ;;  %v232_v62 = vpop.f32.mrb[1].mxu1 }
  0xf7   :  { %v671_v63 = vpop.f32.mrb[2].mxu0  ;;  %v687_v0 = vpop.f32.mrb[2].mxu1  ;;  %v1006_v3 = vadd.f32 %v995_v56, %v168_v61  ;;  %v1014_v7 = vadd.f32 %v995_v56, %v232_v62 }
  0xf8   :  { %331 = vmax.xlane.f32.xlu0 %v1001_v60  ;;  %v235_v1 = vpop.f32.mrb[3].mxu1  ;;  %299 = vmax.xlane.f32.xlu1 %v998_v59  ;;  %v171_v2 = vpop.f32.mrb[3].mxu0  ;;  %v1009_v4 = vadd.f32 %v671_v63, %v995_v56  ;;  %v1017_v8 = vadd.f32 %v687_v0, %v995_v56 }
  0xf9   :  { %v1022_v15 = vadd.f32 %v995_v56, %v235_v1  ;;  %v1025_v16 = vadd.f32 %v995_v56, %v171_v2 }
  0xfc   :  { %301 = vmax.xlane.f32.xlu1 %v1009_v4  ;;  %295 = vmax.xlane.f32.xlu0 %v1006_v3 }
  0xfd   :  { %v674_v5 = vpop.f32.mrb[4].mxu0  ;;  %v690_v6 = vpop.f32.mrb[4].mxu1 }
  0xfe   :  { %v184_v9 = vpop.f32.mrb[5].mxu0  ;;  %v248_v10 = vpop.f32.mrb[5].mxu1  ;;  %v1028_v17 = vadd.f32 %v674_v5, %v995_v56  ;;  %v1036_v25 = vadd.f32 %v690_v6, %v995_v56 }
  0xff   :  { %v675_v11 = vpop.f32.mrb[6].mxu0  ;;  %v691_v12 = vpop.f32.mrb[6].mxu1  ;;  %v1046_v31 = vadd.f32 %v995_v56, %v184_v9  ;;  %v1054_v39 = vadd.f32 %v995_v56, %v248_v10 }
 0x100   :  { %333 = vmax.xlane.f32.xlu1 %v1017_v8  ;;  %327 = vmax.xlane.f32.xlu0 %v1014_v7  ;;  %v187_v13 = vpop.f32.mrb[7].mxu0  ;;  %v251_v14 = vpop.f32.mrb[7].mxu1  ;;  %v1033_v18 = vadd.f32 %v675_v11, %v995_v56  ;;  %v1041_v26 = vadd.f32 %v691_v12, %v995_v56 }
 0x101   :  { %v1049_v32 = vadd.f32 %v995_v56, %v187_v13  ;;  %v1057_v40 = vadd.f32 %v995_v56, %v251_v14 }
 0x104   :  { %329 = vmax.xlane.f32.xlu1 %v1022_v15  ;;  %297 = vmax.xlane.f32.xlu0 %v1025_v16 }
 0x105   :  { %v678_v19 = vpop.f32.mrb[8].mxu0  ;;  %v694_v20 = vpop.f32.mrb[8].mxu1 }
 0x106   :  { %v200_v21 = vpop.f32.mrb[9].mxu0  ;;  %v264_v22 = vpop.f32.mrb[9].mxu1  ;;  %v1060_v41 = vadd.f32 %v678_v19, %v995_v56  ;;  %v1068_v43 = vadd.f32 %v694_v20, %v995_v56 }
 0x107   :  { %v679_v23 = vpop.f32.mrb[10].mxu0  ;;  %v695_v24 = vpop.f32.mrb[10].mxu1  ;;  %v1078_v45 = vadd.f32 %v995_v56, %v200_v21  ;;  %v1086_v47 = vadd.f32 %v995_v56, %v264_v22 }
 0x108   :  { %309 = vmax.xlane.f32.xlu1 %v1033_v18  ;;  %307 = vmax.xlane.f32.xlu0 %v1028_v17  ;;  %v203_v27 = vpop.f32.mrb[11].mxu0  ;;  %v267_v28 = vpop.f32.mrb[11].mxu1  ;;  %v1065_v42 = vadd.f32 %v679_v23, %v995_v56  ;;  %v1073_v44 = vadd.f32 %v695_v24, %v995_v56 }
 0x109   :  { %v1081_v46 = vadd.f32 %v995_v56, %v203_v27  ;;  %v1089_v48 = vadd.f32 %v995_v56, %v267_v28 }
 0x10c   :  { %341 = vmax.xlane.f32.xlu1 %v1041_v26  ;;  %339 = vmax.xlane.f32.xlu0 %v1036_v25 }
 0x10d   :  { %v682_v29 = vpop.f32.mrb[12].mxu0  ;;  %v698_v30 = vpop.f32.mrb[12].mxu1 }
 0x10e   :  { %v216_v33 = vpop.f32.mrb[13].mxu0  ;;  %v280_v34 = vpop.f32.mrb[13].mxu1  ;;  %v1092_v49 = vadd.f32 %v682_v29, %v995_v56  ;;  %v1118_v55 = vadd.f32 %v698_v30, %v995_v56 }
 0x10f   :  { %v683_v35 = vpop.f32.mrb[14].mxu0  ;;  %v699_v36 = vpop.f32.mrb[14].mxu1  ;;  %v1102_v51 = vadd.f32 %v995_v56, %v216_v33  ;;  %v1108_v53 = vadd.f32 %v995_v56, %v280_v34 }
 0x110   :  { %305 = vmax.xlane.f32.xlu1 %v1049_v32  ;;  %303 = vmax.xlane.f32.xlu0 %v1046_v31  ;;  %v219_v37 = vpop.f32.mrb[15].mxu0  ;;  %v283_v38 = vpop.f32.mrb[15].mxu1  ;;  %v1097_v50 = vadd.f32 %v683_v35, %v995_v56  ;;  %v1121_v57 = vadd.f32 %v699_v36, %v995_v56 }
 0x111   :  { %v1105_v52 = vadd.f32 %v995_v56, %v219_v37  ;;  %v1113_v54 = vadd.f32 %v995_v56, %v283_v38 }
 0x114   :  { %337 = vmax.xlane.f32.xlu1 %v1057_v40  ;;  %335 = vmax.xlane.f32.xlu0 %v1054_v39 }
 0x118   :  { %317 = vmax.xlane.f32.xlu1 %v1065_v42  ;;  %315 = vmax.xlane.f32.xlu0 %v1060_v41 }
 0x11c   :  { %349 = vmax.xlane.f32.xlu1 %v1073_v44  ;;  %347 = vmax.xlane.f32.xlu0 %v1068_v43 }
 0x120   :  { %313 = vmax.xlane.f32.xlu1 %v1081_v46  ;;  %311 = vmax.xlane.f32.xlu0 %v1078_v45 }
 0x124   :  { %345 = vmax.xlane.f32.xlu1 %v1089_v48  ;;  %343 = vmax.xlane.f32.xlu0 %v1086_v47 }
 0x128   :  { %325 = vmax.xlane.f32.xlu1 %v1097_v50  ;;  %323 = vmax.xlane.f32.xlu0 %v1092_v49 }
 0x12c   :  { %321 = vmax.xlane.f32.xlu1 %v1105_v52  ;;  %319 = vmax.xlane.f32.xlu0 %v1102_v51 }
 0x130   :  { %353 = vmax.xlane.f32.xlu1 %v1113_v54  ;;  %351 = vmax.xlane.f32.xlu0 %v1108_v53 }
 0x134   :  { %357 = vmax.xlane.f32.xlu1 %v1121_v57  ;;  %355 = vmax.xlane.f32.xlu0 %v1118_v55 }
 0x185   :  { %v332_v58 = vpop.xlane.xlu0 %331  ;;  %v300_v61 = vpop.xlane.xlu1 %299 }
 0x186   :  { %v361_v62 = vsub.f32 %v998_v59, %v300_v61  ;;  %v377_v63 = vsub.f32 %v1001_v60, %v332_v58 }
 0x188   :  { %v395_v0 = vmul.f32 1.442695, %v361_v62  ;;  %v427_v6 = vmul.f32 1.442695, %v377_v63 }
 0x189   :  { %v302_v1 = vpop.xlane.xlu1 %301  ;;  %v296_v2 = vpop.xlane.xlu0 %295 }
 0x18a   :  { %v362_v5 = vsub.f32 %v1009_v4, %v302_v1  ;;  %724 = vpow2.f32 %v395_v0  ;;  %v359_v56 = vsub.f32 %v1006_v3, %v296_v2 }
 0x18c   :  { %v397_v9 = vmul.f32 1.442695, %v362_v5  ;;  %v391_v59 = vmul.f32 1.442695, %v359_v56 }
 0x18d   :  { %v334_v10 = vpop.xlane.xlu1 %333  ;;  %v328_v11 = vpop.xlane.xlu0 %327 }
 0x18e   :  { %726 = vpow2.f32 %v397_v9  ;;  %v378_v12 = vsub.f32 %v1017_v8, %v334_v10  ;;  %v375_v13 = vsub.f32 %v1014_v7, %v328_v11 }
 0x18f   :  { %728 = vpow2.f32 %v427_v6 }
 0x190   :  { %v429_v60 = vmul.f32 1.442695, %v378_v12  ;;  %v423_v20 = vmul.f32 1.442695, %v375_v13 }
 0x191   :  { %v330_v14 = vpop.xlane.xlu1 %329  ;;  %v298_v19 = vpop.xlane.xlu0 %297 }
 0x192   :  { %730 = vpow2.f32 %v429_v60  ;;  %v376_v4 = vsub.f32 %v1022_v15, %v330_v14  ;;  %v360_v21 = vsub.f32 %v1025_v16, %v298_v19 }
 0x193   :  { %732 = vpow2.f32 %v391_v59 }
 0x194   :  { %v393_v3 = vmul.f32 1.442695, %v360_v21  ;;  %v1133_v22 = vpop.eup %724  ;;  %734 = vpow2.f32 %v423_v20  ;;  %v425_v8 = vmul.f32 1.442695, %v376_v4 }
 0x195   :  { %v310_v23 = vpop.xlane.xlu1 %309  ;;  %v308_v24 = vpop.xlane.xlu0 %307  ;;  %459 = vadd.xlane.f32.xlu0 %v1133_v22 }
 0x196   :  { %v366_v7 = vsub.f32 %v1033_v18, %v310_v23  ;;  %v365_v27 = vsub.f32 %v1028_v17, %v308_v24  ;;  %736 = vpow2.f32 %v393_v3 }
 0x197   :  { %738 = vpow2.f32 %v425_v8 }
 0x198   :  { %v1138_v28 = vpop.eup %726  ;;  %v403_v15 = vmul.f32 1.442695, %v365_v27  ;;  %v405_v33 = vmul.f32 1.442695, %v366_v7 }
 0x199   :  { %v1140_v29 = vpop.eup %728  ;;  %v342_v16 = vpop.xlane.xlu1 %341  ;;  %461 = vadd.xlane.f32.xlu1 %v1138_v28 }
 0x19a   :  { %v340_v30 = vpop.xlane.xlu0 %339  ;;  %v382_v34 = vsub.f32 %v1041_v26, %v342_v16  ;;  %491 = vadd.xlane.f32.xlu0 %v1140_v29  ;;  %740 = vpow2.f32 %v403_v15 }
 0x19b   :  { %v381_v18 = vsub.f32 %v1036_v25, %v340_v30  ;;  %742 = vpow2.f32 %v405_v33 }
 0x19c   :  { %v1146_v17 = vpop.eup %730  ;;  %v437_v58 = vmul.f32 1.442695, %v382_v34 }
 0x19d   :  { %v435_v35 = vmul.f32 1.442695, %v381_v18  ;;  %v1148_v36 = vpop.eup %732  ;;  %493 = vadd.xlane.f32.xlu1 %v1146_v17  ;;  %v306_v37 = vpop.xlane.xlu1 %305 }
 0x19e   :  { %v304_v38 = vpop.xlane.xlu0 %303  ;;  %v364_v61 = vsub.f32 %v1049_v32, %v306_v37  ;;  %455 = vadd.xlane.f32.xlu0 %v1148_v36  ;;  %v1154_v25 = vpop.eup %734 }
 0x19f   :  { %v363_v26 = vsub.f32 %v1046_v31, %v304_v38  ;;  %744 = vpow2.f32 %v435_v35 }
 0x1a0   :  { %v1156_v63 = vpop.eup %736  ;;  %746 = vpow2.f32 %v437_v58  ;;  %v401_v2 = vmul.f32 1.442695, %v364_v61 }
 0x1a1   :  { %v399_v62 = vmul.f32 1.442695, %v363_v26  ;;  %v338_v0 = vpop.xlane.xlu1 %337  ;;  %457 = vadd.xlane.f32.xlu1 %v1156_v63  ;;  %v1162_v31 = vpop.eup %738 }
 0x1a2   :  { %v336_v1 = vpop.xlane.xlu0 %335  ;;  %v380_v5 = vsub.f32 %v1057_v40, %v338_v0  ;;  %487 = vadd.xlane.f32.xlu0 %v1154_v25 }
 0x1a3   :  { %v379_v32 = vsub.f32 %v1054_v39, %v336_v1  ;;  %748 = vpow2.f32 %v399_v62 }
 0x1a4   :  { %v1164_v56 = vpop.eup %740  ;;  %750 = vpow2.f32 %v401_v2  ;;  %v433_v11 = vmul.f32 1.442695, %v380_v5 }
 0x1a5   :  { %v431_v6 = vmul.f32 1.442695, %v379_v32  ;;  %v318_v9 = vpop.xlane.xlu1 %317  ;;  %489 = vadd.xlane.f32.xlu1 %v1162_v31  ;;  %v1170_v39 = vpop.eup %742 }
 0x1a6   :  { %v316_v10 = vpop.xlane.xlu0 %315  ;;  %v370_v12 = vsub.f32 %v1065_v42, %v318_v9  ;;  %467 = vadd.xlane.f32.xlu0 %v1164_v56 }
 0x1a7   :  { %v369_v40 = vsub.f32 %v1060_v41, %v316_v10  ;;  %752 = vpow2.f32 %v431_v6 }
 0x1a8   :  { %754 = vpow2.f32 %v433_v11  ;;  %v413_v19 = vmul.f32 1.442695, %v370_v12 }
 0x1a9   :  { %v411_v13 = vmul.f32 1.442695, %v369_v40  ;;  %v1172_v59 = vpop.eup %744  ;;  %v350_v60 = vpop.xlane.xlu1 %349  ;;  %469 = vadd.xlane.f32.xlu1 %v1170_v39 }
 0x1aa   :  { %v348_v14 = vpop.xlane.xlu0 %347  ;;  %v386_v20 = vsub.f32 %v1073_v44, %v350_v60  ;;  %499 = vadd.xlane.f32.xlu0 %v1172_v59  ;;  %v1178_v41 = vpop.eup %746 }
 0x1ab   :  { %v385_v42 = vsub.f32 %v1068_v43, %v348_v14  ;;  %756 = vpow2.f32 %v411_v13 }
 0x1ac   :  { %758 = vpow2.f32 %v413_v19  ;;  %v445_v24 = vmul.f32 1.442695, %v386_v20 }
 0x1ad   :  { %v443_v4 = vmul.f32 1.442695, %v385_v42  ;;  %v1180_v21 = vpop.eup %748  ;;  %v314_v3 = vpop.xlane.xlu1 %313  ;;  %501 = vadd.xlane.f32.xlu1 %v1178_v41 }
 0x1ae   :  { %v312_v23 = vpop.xlane.xlu0 %311  ;;  %v368_v8 = vsub.f32 %v1081_v46, %v314_v3  ;;  %463 = vadd.xlane.f32.xlu0 %v1180_v21  ;;  %v1186_v43 = vpop.eup %750 }
 0x1af   :  { %v367_v44 = vsub.f32 %v1078_v45, %v312_v23  ;;  %760 = vpow2.f32 %v443_v4 }
 0x1b0   :  { %762 = vpow2.f32 %v445_v24  ;;  %v409_v30 = vmul.f32 1.442695, %v368_v8 }
 0x1b1   :  { %v407_v7 = vmul.f32 1.442695, %v367_v44  ;;  %v1188_v27 = vpop.eup %752  ;;  %v346_v15 = vpop.xlane.xlu1 %345  ;;  %465 = vadd.xlane.f32.xlu1 %v1186_v43 }
 0x1b2   :  { %v344_v16 = vpop.xlane.xlu0 %343  ;;  %v384_v33 = vsub.f32 %v1089_v48, %v346_v15  ;;  %495 = vadd.xlane.f32.xlu0 %v1188_v27  ;;  %v1194_v45 = vpop.eup %754 }
 0x1b3   :  { %v383_v46 = vsub.f32 %v1086_v47, %v344_v16  ;;  %764 = vpow2.f32 %v407_v7 }
 0x1b4   :  { %766 = vpow2.f32 %v409_v30  ;;  %v441_v38 = vmul.f32 1.442695, %v384_v33 }
 0x1b5   :  { %v439_v34 = vmul.f32 1.442695, %v383_v46  ;;  %v1196_v18 = vpop.eup %756  ;;  %v326_v35 = vpop.xlane.xlu1 %325  ;;  %497 = vadd.xlane.f32.xlu1 %v1194_v45 }
 0x1b6   :  { %v324_v37 = vpop.xlane.xlu0 %323  ;;  %v374_v58 = vsub.f32 %v1097_v50, %v326_v35  ;;  %475 = vadd.xlane.f32.xlu0 %v1196_v18  ;;  %v1202_v47 = vpop.eup %758 }
 0x1b7   :  { %v373_v48 = vsub.f32 %v1092_v49, %v324_v37  ;;  %768 = vpow2.f32 %v439_v34 }
 0x1b8   :  { %770 = vpow2.f32 %v441_v38  ;;  %v421_v1 = vmul.f32 1.442695, %v374_v58 }
 0x1b9   :  { %v419_v61 = vmul.f32 1.442695, %v373_v48  ;;  %v1204_v26 = vpop.eup %760  ;;  %v322_v62 = vpop.xlane.xlu1 %321  ;;  %477 = vadd.xlane.f32.xlu1 %v1202_v47 }
 0x1ba   :  { %v320_v0 = vpop.xlane.xlu0 %319  ;;  %v372_v2 = vsub.f32 %v1105_v52, %v322_v62  ;;  %507 = vadd.xlane.f32.xlu0 %v1204_v26  ;;  %v1210_v49 = vpop.eup %762 }
 0x1bb   :  { %v371_v50 = vsub.f32 %v1102_v51, %v320_v0  ;;  %772 = vpow2.f32 %v419_v61 }
 0x1bc   :  { %774 = vpow2.f32 %v421_v1  ;;  %v417_v10 = vmul.f32 1.442695, %v372_v2 }
 0x1bd   :  { %v415_v5 = vmul.f32 1.442695, %v371_v50  ;;  %v1212_v32 = vpop.eup %764  ;;  %v354_v6 = vpop.xlane.xlu1 %353  ;;  %509 = vadd.xlane.f32.xlu1 %v1210_v49 }
 0x1be   :  { %v352_v9 = vpop.xlane.xlu0 %351  ;;  %v388_v11 = vsub.f32 %v1113_v54, %v354_v6  ;;  %471 = vadd.xlane.f32.xlu0 %v1212_v32  ;;  %v1218_v51 = vpop.eup %766 }
 0x1bf   :  { %v387_v52 = vsub.f32 %v1108_v53, %v352_v9  ;;  %776 = vpow2.f32 %v415_v5 }
 0x1c0   :  { %778 = vpow2.f32 %v417_v10  ;;  %v449_v14 = vmul.f32 1.442695, %v388_v11 }
 0x1c1   :  { %v447_v12 = vmul.f32 1.442695, %v387_v52  ;;  %v1220_v40 = vpop.eup %768  ;;  %v358_v13 = vpop.xlane.xlu1 %357  ;;  %473 = vadd.xlane.f32.xlu1 %v1218_v51 }
 0x1c2   :  { %v356_v60 = vpop.xlane.xlu0 %355  ;;  %503 = vadd.xlane.f32.xlu0 %v1220_v40  ;;  %v390_v19 = vsub.f32 %v1121_v57, %v358_v13  ;;  %v1226_v53 = vpop.eup %770 }
 0x1c3   :  { %v389_v54 = vsub.f32 %v1118_v55, %v356_v60  ;;  %780 = vpow2.f32 %v447_v12 }
 0x1c4   :  { %782 = vpow2.f32 %v449_v14  ;;  %v453_v4 = vmul.f32 1.442695, %v390_v19 }
 0x1c5   :  { %v451_v20 = vmul.f32 1.442695, %v389_v54  ;;  %v1228_v42 = vpop.eup %772  ;;  %505 = vadd.xlane.f32.xlu1 %v1226_v53 }
 0x1c6   :  { %483 = vadd.xlane.f32.xlu0 %v1228_v42  ;;  %v1232_v3 = vpop.eup %774 }
 0x1c7   :  { %784 = vpow2.f32 %v451_v20 }
 0x1c8   :  { %786 = vpow2.f32 %v453_v4 }
 0x1c9   :  { %v1234_v23 = vpop.eup %776  ;;  %485 = vadd.xlane.f32.xlu1 %v1232_v3 }
 0x1ca   :  { %479 = vadd.xlane.f32.xlu0 %v1234_v23  ;;  %v1238_v55 = vpop.eup %778 }
 0x1cd   :  { %v1240_v57 = vpop.eup %780  ;;  %481 = vadd.xlane.f32.xlu1 %v1238_v55 }
 0x1ce   :  { %511 = vadd.xlane.f32.xlu0 %v1240_v57  ;;  %v1244_v24 = vpop.eup %782 }
 0x1d1   :  { %v1246_v8 = vpop.eup %784  ;;  %513 = vadd.xlane.f32.xlu1 %v1244_v24 }
 0x1d2   :  { %515 = vadd.xlane.f32.xlu0 %v1246_v8  ;;  %v1250_v44 = vpop.eup %786 }
 0x1d5   :  { %517 = vadd.xlane.f32.xlu1 %v1250_v44 }
 0x222   :  { %v460_v7 = vpop.xlane.xlu0 %459 }
 0x223   :  { %788 = vrcp.f32 %v460_v7 }
 0x226   :  { %v462_v15 = vpop.xlane.xlu1 %461 }
 0x227   :  { %790 = vrcp.f32 %v462_v15  ;;  %v492_v16 = vpop.xlane.xlu0 %491 }
 0x228   :  { %792 = vrcp.f32 %v492_v16 }
 0x22a   :  { %v494_v30 = vpop.xlane.xlu1 %493 }
 0x22b   :  { %794 = vrcp.f32 %v494_v30  ;;  %v456_v33 = vpop.xlane.xlu0 %455 }
 0x22c   :  { %796 = vrcp.f32 %v456_v33 }
 0x22d   :  { %v789_v46 = vpop.eup %788 }
 0x22e   :  { %v524_v34 = vmul.f32 %v789_v46, %v1133_v22  ;;  %v458_v35 = vpop.xlane.xlu1 %457 }
 0x22f   :  { %v488_v37 = vpop.xlane.xlu0 %487  ;;  %798 = vrcp.f32 %v458_v35 }
 0x230   :  { %585 = vst [vmem:[%s1384_s3 + $0x10] sm:$0xff] %v524_v34  ;;  %800 = vrcp.f32 %v488_v37 }
 0x231   :  { %v791_v38 = vpop.eup %790 }
 0x232   :  { %v793_v58 = vpop.eup %792  ;;  %v526_v48 = vmul.f32 %v791_v38, %v1138_v28  ;;  %v490_v62 = vpop.xlane.xlu1 %489 }
 0x233   :  { %v556_v61 = vmul.f32 %v793_v58, %v1140_v29  ;;  %v468_v0 = vpop.xlane.xlu0 %467  ;;  %802 = vrcp.f32 %v490_v62 }
 0x234   :  { %586 = vst [vmem:[%s1384_s3 + $0x18] sm:$0xff] %v526_v48  ;;  %804 = vrcp.f32 %v468_v0 }
 0x235   :  { %v795_v22 = vpop.eup %794  ;;  %601 = vst [vmem:[%s1384_s3 + $0x90] sm:$0xff] %v556_v61 }
 0x236   :  { %v797_v1 = vpop.eup %796  ;;  %v558_v2 = vmul.f32 %v795_v22, %v1146_v17  ;;  %v470_v50 = vpop.xlane.xlu1 %469 }
 0x237   :  { %v520_v28 = vmul.f32 %v797_v1, %v1148_v36  ;;  %v500_v29 = vpop.xlane.xlu0 %499  ;;  %806 = vrcp.f32 %v470_v50 }
 0x238   :  { %602 = vst [vmem:[%s1384_s3 + $0x98] sm:$0xff] %v558_v2  ;;  %808 = vrcp.f32 %v500_v29 }
 0x239   :  { %583 = vst [vmem:[%s1384_s3] sm:$0xff] %v520_v28  ;;  %v799_v5 = vpop.eup %798 }
 0x23a   :  { %v801_v6 = vpop.eup %800  ;;  %v522_v9 = vmul.f32 %v799_v5, %v1156_v63  ;;  %v502_v10 = vpop.xlane.xlu1 %501 }
 0x23b   :  { %v464_v17 = vpop.xlane.xlu0 %463  ;;  %v552_v36 = vmul.f32 %v801_v6, %v1154_v25  ;;  %810 = vrcp.f32 %v502_v10 }
 0x23c   :  { %584 = vst [vmem:[%s1384_s3 + $0x8] sm:$0xff] %v522_v9  ;;  %812 = vrcp.f32 %v464_v17 }
 0x23d   :  { %v803_v11 = vpop.eup %802  ;;  %599 = vst [vmem:[%s1384_s3 + $0x80] sm:$0xff] %v552_v36 }
 0x23e   :  { %v805_v52 = vpop.eup %804  ;;  %v554_v12 = vmul.f32 %v803_v11, %v1162_v31  ;;  %v466_v13 = vpop.xlane.xlu1 %465 }
 0x23f   :  { %v496_v63 = vpop.xlane.xlu0 %495  ;;  %v532_v60 = vmul.f32 %v805_v52, %v1164_v56  ;;  %814 = vrcp.f32 %v466_v13 }
 0x240   :  { %600 = vst [vmem:[%s1384_s3 + $0x88] sm:$0xff] %v554_v12  ;;  %816 = vrcp.f32 %v496_v63 }
 0x241   :  { %v807_v25 = vpop.eup %806  ;;  %589 = vst [vmem:[%s1384_s3 + $0x30] sm:$0xff] %v532_v60 }
 0x242   :  { %v809_v14 = vpop.eup %808  ;;  %v534_v54 = vmul.f32 %v807_v25, %v1170_v39  ;;  %v498_v19 = vpop.xlane.xlu1 %497 }
 0x243   :  { %v476_v31 = vpop.xlane.xlu0 %475  ;;  %v564_v20 = vmul.f32 %v809_v14, %v1172_v59  ;;  %818 = vrcp.f32 %v498_v19 }
 0x244   :  { %590 = vst [vmem:[%s1384_s3 + $0x38] sm:$0xff] %v534_v54  ;;  %820 = vrcp.f32 %v476_v31 }
 0x245   :  { %v811_v56 = vpop.eup %810  ;;  %605 = vst [vmem:[%s1384_s3 + $0xb0] sm:$0xff] %v564_v20 }
 0x246   :  { %v813_v4 = vpop.eup %812  ;;  %v566_v7 = vmul.f32 %v811_v56, %v1178_v41  ;;  %v478_v15 = vpop.xlane.xlu1 %477 }
 0x247   :  { %v508_v39 = vpop.xlane.xlu0 %507  ;;  %v528_v16 = vmul.f32 %v813_v4, %v1180_v21  ;;  %822 = vrcp.f32 %v478_v15 }
 0x248   :  { %606 = vst [vmem:[%s1384_s3 + $0xb8] sm:$0xff] %v566_v7  ;;  %824 = vrcp.f32 %v508_v39 }
 0x249   :  { %v815_v59 = vpop.eup %814  ;;  %587 = vst [vmem:[%s1384_s3 + $0x20] sm:$0xff] %v528_v16 }
 0x24a   :  { %v817_v30 = vpop.eup %816  ;;  %v530_v33 = vmul.f32 %v815_v59, %v1186_v43  ;;  %v510_v46 = vpop.xlane.xlu1 %509 }
 0x24b   :  { %v472_v41 = vpop.xlane.xlu0 %471  ;;  %v560_v34 = vmul.f32 %v817_v30, %v1188_v27  ;;  %826 = vrcp.f32 %v510_v46 }
 0x24c   :  { %588 = vst [vmem:[%s1384_s3 + $0x28] sm:$0xff] %v530_v33  ;;  %828 = vrcp.f32 %v472_v41 }
 0x24d   :  { %v819_v21 = vpop.eup %818  ;;  %603 = vst [vmem:[%s1384_s3 + $0xa0] sm:$0xff] %v560_v34 }
 0x24e   :  { %v821_v35 = vpop.eup %820  ;;  %v562_v37 = vmul.f32 %v819_v21, %v1194_v45  ;;  %v474_v38 = vpop.xlane.xlu1 %473 }
 0x24f   :  { %v504_v43 = vpop.xlane.xlu0 %503  ;;  %v540_v58 = vmul.f32 %v821_v35, %v1196_v18  ;;  %830 = vrcp.f32 %v474_v38 }
 0x250   :  { %604 = vst [vmem:[%s1384_s3 + $0xa8] sm:$0xff] %v562_v37  ;;  %832 = vrcp.f32 %v504_v43 }
 0x251   :  { %v823_v27 = vpop.eup %822  ;;  %593 = vst [vmem:[%s1384_s3 + $0x50] sm:$0xff] %v540_v58 }
 0x252   :  { %v825_v48 = vpop.eup %824  ;;  %v542_v61 = vmul.f32 %v823_v27, %v1202_v47  ;;  %v506_v62 = vpop.xlane.xlu1 %505 }
 0x253   :  { %v484_v45 = vpop.xlane.xlu0 %483  ;;  %v572_v0 = vmul.f32 %v825_v48, %v1204_v26  ;;  %834 = vrcp.f32 %v506_v62 }
 0x254   :  { %594 = vst [vmem:[%s1384_s3 + $0x58] sm:$0xff] %v542_v61  ;;  %836 = vrcp.f32 %v484_v45 }
 0x255   :  { %v827_v18 = vpop.eup %826  ;;  %609 = vst [vmem:[%s1384_s3 + $0xd0] sm:$0xff] %v572_v0 }
 0x256   :  { %v829_v22 = vpop.eup %828  ;;  %v574_v1 = vmul.f32 %v827_v18, %v1210_v49  ;;  %v486_v2 = vpop.xlane.xlu1 %485 }
 0x257   :  { %v480_v47 = vpop.xlane.xlu0 %479  ;;  %v536_v28 = vmul.f32 %v829_v22, %v1212_v32  ;;  %838 = vrcp.f32 %v486_v2 }
 0x258   :  { %610 = vst [vmem:[%s1384_s3 + $0xd8] sm:$0xff] %v574_v1  ;;  %840 = vrcp.f32 %v480_v47 }
 0x259   :  { %v831_v26 = vpop.eup %830  ;;  %591 = vst [vmem:[%s1384_s3 + $0x40] sm:$0xff] %v536_v28 }
 0x25a   :  { %v833_v50 = vpop.eup %832  ;;  %v538_v29 = vmul.f32 %v831_v26, %v1218_v51  ;;  %v482_v5 = vpop.xlane.xlu1 %481 }
 0x25b   :  { %v512_v49 = vpop.xlane.xlu0 %511  ;;  %v568_v6 = vmul.f32 %v833_v50, %v1220_v40  ;;  %842 = vrcp.f32 %v482_v5 }
 0x25c   :  { %592 = vst [vmem:[%s1384_s3 + $0x48] sm:$0xff] %v538_v29  ;;  %844 = vrcp.f32 %v512_v49 }
 0x25d   :  { %v835_v32 = vpop.eup %834  ;;  %607 = vst [vmem:[%s1384_s3 + $0xc0] sm:$0xff] %v568_v6 }
 0x25e   :  { %v837_v9 = vpop.eup %836  ;;  %v570_v10 = vmul.f32 %v835_v32, %v1226_v53  ;;  %v514_v17 = vpop.xlane.xlu1 %513 }
 0x25f   :  { %v516_v51 = vpop.xlane.xlu0 %515  ;;  %v548_v36 = vmul.f32 %v837_v9, %v1228_v42  ;;  %846 = vrcp.f32 %v514_v17 }
 0x260   :  { %608 = vst [vmem:[%s1384_s3 + $0xc8] sm:$0xff] %v570_v10  ;;  %848 = vrcp.f32 %v516_v51 }
 0x261   :  { %v839_v40 = vpop.eup %838  ;;  %597 = vst [vmem:[%s1384_s3 + $0x70] sm:$0xff] %v548_v36 }
 0x262   :  { %v841_v11 = vpop.eup %840  ;;  %v550_v52 = vmul.f32 %v839_v40, %v1232_v3  ;;  %v518_v12 = vpop.xlane.xlu1 %517 }
 0x263   :  { %v544_v53 = vmul.f32 %v841_v11, %v1234_v23  ;;  %850 = vrcp.f32 %v518_v12 }
 0x264   :  { %598 = vst [vmem:[%s1384_s3 + $0x78] sm:$0xff] %v550_v52 }
 0x265   :  { %v843_v42 = vpop.eup %842  ;;  %595 = vst [vmem:[%s1384_s3 + $0x60] sm:$0xff] %v544_v53 }
 0x266   :  { %v845_v13 = vpop.eup %844  ;;  %v546_v63 = vmul.f32 %v843_v42, %v1238_v55 }
 0x267   :  { %v576_v60 = vmul.f32 %v845_v13, %v1240_v57 }
 0x268   :  { %596 = vst [vmem:[%s1384_s3 + $0x68] sm:$0xff] %v546_v63 }
 0x269   :  { %v847_v3 = vpop.eup %846  ;;  %611 = vst [vmem:[%s1384_s3 + $0xe0] sm:$0xff] %v576_v60 }
 0x26a   :  { %v849_v23 = vpop.eup %848  ;;  %v578_v25 = vmul.f32 %v847_v3, %v1244_v24 }
 0x26b   :  { %v580_v14 = vmul.f32 %v849_v23, %v1246_v8 }
 0x26c   :  { %612 = vst [vmem:[%s1384_s3 + $0xe8] sm:$0xff] %v578_v25 }
 0x26d   :  { %v851_v55 = vpop.eup %850  ;;  %613 = vst [vmem:[%s1384_s3 + $0xf0] sm:$0xff] %v580_v14 }
 0x26e   :  { %v582_v57 = vmul.f32 %v851_v55, %v1250_v44 }
 0x270   :  { %614 = vst [vmem:[%s1384_s3 + $0xf8] sm:$0xff] %v582_v57 }

// kernel: gat_forward.8
= control target key start
LH: loop header
LB: loop body
LE: loop exit
PB: predicated region body
PF: predicated region fallthrough
CT: control target
= control target key end

     0   :  { %v3529_v50 = vmov 0   ;;  %vm5935_vm0 = vcmask 7168   ;;  %s5884_s2 = inlined_call_operand.vmem [shape: bf16[256,128], index: 2, kind: input, shape index: {}, may-alias: {1,2}]   ;;  %s5885_s1 = inlined_call_operand.vmem [shape: bf16[256,128], index: 1, kind: input, shape index: {}, may-alias: {1,2}]   ;;  %s5886_s4 = inlined_call_operand.vmem [shape: f32[1,128], index: 4, kind: input, shape index: {}]   ;;  %s5887_s3 = inlined_call_operand.vmem [shape: bf16[1,128], index: 3, kind: input, shape index: {}]   ;;  %s5888_s0 = inlined_call_operand.vmem [shape: s8[256,256], index: 0, kind: input, shape index: {}]   ;;  %s5889_s5 = inlined_call_operand.vmem [shape: f32[1,128], index: 5, kind: input, shape index: {}]   ;;  %s5890_s6 = inlined_call_operand.vmem [shape: f32[1,128], index: 6, kind: input, shape index: {}]   ;;  %s5891_s7 = inlined_call_operand.vmem [shape: f32[256,128], index: 7, kind: output, shape index: {}]  }
   0x1   :  { %v3575_v0 = vld [vmem:[%s5884_s2 + $0x40] sm:$0xff]   ;;  %v3091_v2 = vld [vmem:[%s5885_s1 + $0x8] sm:$0xff]   ;;  %v3092_v12 = vld [vmem:[%s5885_s1 + $0x10] sm:$0xff]   ;;  %3255 = vset.pattern.permute.xlu0 %v3529_v50  ;;  %3256 = vset.pattern.permute.xlu1 %v3529_v50 }
   0x2   :  { %v3580_v1 = vld [vmem:[%s5884_s2] sm:$0xff]   ;;  %3106 = vmatprep.subr.bf16.mxu0 %v3575_v0  ;;  %3236 = vmatprep.subr.bf16.mxu1 %v3575_v0  ;;  %v3033_v5 = vunpack.c.l.bf16 %v3091_v2  ;;  %v3034_v7 = vunpack.c.h.bf16 %v3091_v2  ;;  %v3599_v9 = vld [vmem:[%s5884_s2 + $0x48] sm:$0xff]   ;;  %v3038_v16 = vunpack.c.h.bf16 %v3092_v12  ;;  %v3619_v17 = vld [vmem:[%s5884_s2 + $0x50] sm:$0xff]   ;;  %v3037_v18 = vunpack.c.l.bf16 %v3092_v12 }
   0x3   :  { %v3589_v3 = vld [vmem:[%s5886_s4] ss:$0 sm:$0xff]  ;;  %3107 = vmatpush3.bf16.xpose.msra.mxu0 %v3580_v1  ;;  %3244 = vmatpush3.bf16.msra.mxu1 %v3580_v1  ;;  %v3611_v13 = vld [vmem:[%s5884_s2 + $0x8] sm:$0xff]   ;;  %v3093_v19 = vld [vmem:[%s5885_s1 + $0x18] sm:$0xff]  }
   0x4   :  { %v3028_v4 = vld [vmem:[%s5885_s1] sm:$0xff]   ;;  %v201_v10 = vmul.f32 %v3033_v5, %v3589_v3  ;;  %3108 = vmatprep.subr.bf16.mxu0 %v3599_v9  ;;  %3237 = vmatprep.subr.bf16.mxu1 %v3599_v9  ;;  %v202_v14 = vmul.f32 %v3034_v7, %v3589_v3  ;;  %v3629_v20 = vld [vmem:[%s5884_s2 + $0x10] sm:$0xff]   ;;  %v204_v21 = vmul.f32 %v3038_v16, %v3589_v3  ;;  %v3042_v22 = vunpack.c.h.bf16 %v3093_v19  ;;  %v3636_v24 = vld [vmem:[%s5884_s2 + $0x58] sm:$0xff]  }
   0x5   :  { %v3029_v6 = vunpack.c.l.bf16 %v3028_v4  ;;  %v3030_v8 = vunpack.c.h.bf16 %v3028_v4  ;;  %v203_v23 = vmul.f32 %v3037_v18, %v3589_v3  ;;  %v3041_v25 = vunpack.c.l.bf16 %v3093_v19  ;;  %v3094_v26 = vld [vmem:[%s5885_s1 + $0x20] sm:$0xff]   ;;  %v3648_v27 = vld [vmem:[%s5884_s2 + $0x18] sm:$0xff]   ;;  %v3095_v33 = vld [vmem:[%s5885_s1 + $0x28] sm:$0xff]  }
   0x6   :  { %235 = vadd.xlane.f32.xlu1 %v201_v10  ;;  %v206_v28 = vmul.f32 %v3042_v22, %v3589_v3  ;;  %v3046_v29 = vunpack.c.h.bf16 %v3094_v26  ;;  %v3655_v31 = vld [vmem:[%s5884_s2 + $0x60] sm:$0xff]   ;;  %v3045_v32 = vunpack.c.l.bf16 %v3094_v26  ;;  %v3050_v36 = vunpack.c.h.bf16 %v3095_v33  ;;  %v3672_v39 = vld [vmem:[%s5884_s2 + $0x68] sm:$0xff]   ;;  %v3096_v40 = vld [vmem:[%s5885_s1 + $0x30] sm:$0xff]  }
   0x7   :  { %v199_v11 = vmul.f32 %v3029_v6, %v3589_v3  ;;  %v200_v15 = vmul.f32 %v3030_v8, %v3589_v3  ;;  %3245 = vmatpush3.bf16.msra.mxu1 %v3611_v13  ;;  %v205_v30 = vmul.f32 %v3041_v25, %v3589_v3  ;;  %v3665_v34 = vld [vmem:[%s5884_s2 + $0x20] sm:$0xff]   ;;  %v3049_v38 = vunpack.c.l.bf16 %v3095_v33  ;;  %v3689_v42 = vld [vmem:[%s5884_s2 + $0x28] sm:$0xff]   ;;  %v3697_v47 = vld [vmem:[%s5884_s2 + $0x70] sm:$0xff]  }
   0x8   :  { %3238 = vmatprep.subr.bf16.mxu1 %v3619_v17  ;;  %v208_v35 = vmul.f32 %v3046_v29, %v3589_v3  ;;  %v207_v37 = vmul.f32 %v3045_v32, %v3589_v3  ;;  %v3683_v41 = vld [vmem:[%s5887_s3] sm:$0x1]  ;;  %v210_v43 = vmul.f32 %v3050_v36, %v3589_v3  ;;  %v3054_v44 = vunpack.c.h.bf16 %v3096_v40  ;;  %v3097_v48 = vld [vmem:[%s5885_s1 + $0x38] sm:$0xff]   ;;  %v3707_v49 = vld [vmem:[%s5884_s2 + $0x30] sm:$0xff]  }
   0x9   :  { %231 = vadd.xlane.f32.xlu0 %v199_v11  ;;  %3122 = vmatprep.mubr.bf16.mxu0 %v3683_v41  ;;  %v209_v45 = vmul.f32 %v3049_v38, %v3589_v3  ;;  %v3053_v46 = vunpack.c.l.bf16 %v3096_v40  ;;  %v3058_v52 = vunpack.c.h.bf16 %v3097_v48  ;;  %v3057_v54 = vunpack.c.l.bf16 %v3097_v48  ;;  %v3714_v55 = vld [vmem:[%s5884_s2 + $0x78] sm:$0xff]   ;;  %v3098_v56 = vld [vmem:[%s5885_s1 + $0x40] sm:$0xff]   ;;  %v3099_v62 = vld [vmem:[%s5885_s1 + $0x48] sm:$0xff]  }
   0xa   :  { %237 = vadd.xlane.f32.xlu1 %v202_v14  ;;  %v212_v51 = vmul.f32 %v3054_v44, %v3589_v3  ;;  %v3726_v57 = vld [vmem:[%s5884_s2 + $0x38] sm:$0xff]   ;;  %v3062_v59 = vunpack.c.h.bf16 %v3098_v56  ;;  %v3061_v61 = vunpack.c.l.bf16 %v3098_v56  ;;  %v3066_v2 = vunpack.c.h.bf16 %v3099_v62  ;;  %v3100_v6 = vld [vmem:[%s5885_s1 + $0x50] sm:$0xff]   ;;  %v3102_v19 = vld [vmem:[%s5885_s1 + $0x60] sm:$0xff]  }
   0xb   :  { %3109 = vmatpush3.bf16.xpose.msra.mxu0 %v3611_v13  ;;  %3246 = vmatpush3.bf16.msra.mxu1 %v3629_v20  ;;  %v211_v53 = vmul.f32 %v3053_v46, %v3589_v3  ;;  %v214_v58 = vmul.f32 %v3058_v52, %v3589_v3  ;;  %v213_v60 = vmul.f32 %v3057_v54, %v3589_v3  ;;  %v3065_v5 = vunpack.c.l.bf16 %v3099_v62  ;;  %v3101_v12 = vld [vmem:[%s5885_s1 + $0x58] sm:$0xff]   ;;  %v3103_v26 = vld [vmem:[%s5885_s1 + $0x68] sm:$0xff]   ;;  %v3104_v33 = vld [vmem:[%s5885_s1 + $0x70] sm:$0xff]  }
   0xc   :  { %3110 = vmatprep.subr.bf16.mxu0 %v3619_v17  ;;  %3239 = vmatprep.subr.bf16.mxu1 %v3636_v24  ;;  %v216_v63 = vmul.f32 %v3062_v59, %v3589_v3  ;;  %v215_v4 = vmul.f32 %v3061_v61, %v3589_v3  ;;  %v218_v7 = vmul.f32 %v3066_v2, %v3589_v3  ;;  %v3070_v8 = vunpack.c.h.bf16 %v3100_v6  ;;  %v3105_v40 = vld [vmem:[%s5885_s1 + $0x78] sm:$0xff]  }
   0xd   :  { %233 = vadd.xlane.f32.xlu0 %v200_v15  ;;  %v217_v10 = vmul.f32 %v3065_v5, %v3589_v3  ;;  %v3069_v11 = vunpack.c.l.bf16 %v3100_v6  ;;  %v3074_v15 = vunpack.c.h.bf16 %v3101_v12  ;;  %v3073_v18 = vunpack.c.l.bf16 %v3101_v12 }
   0xe   :  { %241 = vadd.xlane.f32.xlu1 %v204_v21  ;;  %v220_v14 = vmul.f32 %v3070_v8, %v3589_v3  ;;  %v3078_v22 = vunpack.c.h.bf16 %v3102_v19  ;;  %v3077_v25 = vunpack.c.l.bf16 %v3102_v19  ;;  %v3082_v29 = vunpack.c.h.bf16 %v3103_v26 }
   0xf   :  { %3247 = vmatpush3.bf16.msra.mxu1 %v3648_v27  ;;  %v219_v16 = vmul.f32 %v3069_v11, %v3589_v3  ;;  %v222_v21 = vmul.f32 %v3074_v15, %v3589_v3  ;;  %v3081_v32 = vunpack.c.l.bf16 %v3103_v26  ;;  %v3086_v36 = vunpack.c.h.bf16 %v3104_v33 }
  0x10   :  { %3240 = vmatprep.subr.bf16.mxu1 %v3655_v31  ;;  %v3085_v38 = vunpack.c.l.bf16 %v3104_v33  ;;  %v3090_v44 = vunpack.c.h.bf16 %v3105_v40  ;;  %v3089_v46 = vunpack.c.l.bf16 %v3105_v40 }
  0x11   :  { %239 = vadd.xlane.f32.xlu0 %v203_v23  ;;  %v221_v23 = vmul.f32 %v3073_v18, %v3589_v3 }
  0x12   :  { %245 = vadd.xlane.f32.xlu1 %v206_v28  ;;  %v224_v28 = vmul.f32 %v3078_v22, %v3589_v3  ;;  %v230_v48 = vmul.f32 %v3090_v44, %v3589_v3  ;;  %v229_v50 = vmul.f32 %v3089_v46, %v3589_v3 }
  0x13   :  { %3111 = vmatpush3.bf16.xpose.msra.mxu0 %v3629_v20  ;;  %3248 = vmatpush3.bf16.msra.mxu1 %v3665_v34 }
  0x14   :  { %3112 = vmatprep.subr.bf16.mxu0 %v3636_v24  ;;  %3241 = vmatprep.subr.bf16.mxu1 %v3672_v39 }
  0x15   :  { %243 = vadd.xlane.f32.xlu0 %v205_v30  ;;  %v223_v30 = vmul.f32 %v3077_v25, %v3589_v3 }
  0x16   :  { %249 = vadd.xlane.f32.xlu1 %v208_v35  ;;  %v226_v35 = vmul.f32 %v3082_v29, %v3589_v3 }
  0x17   :  { %3249 = vmatpush3.bf16.msra.mxu1 %v3689_v42 }
  0x18   :  { %3242 = vmatprep.subr.bf16.mxu1 %v3697_v47 }
  0x19   :  { %247 = vadd.xlane.f32.xlu0 %v207_v37  ;;  %v225_v37 = vmul.f32 %v3081_v32, %v3589_v3 }
  0x1a   :  { %253 = vadd.xlane.f32.xlu1 %v210_v43  ;;  %v228_v43 = vmul.f32 %v3086_v36, %v3589_v3 }
  0x1b   :  { %3113 = vmatpush3.bf16.xpose.msra.mxu0 %v3648_v27  ;;  %3250 = vmatpush3.bf16.msra.mxu1 %v3707_v49 }
  0x1c   :  { %3114 = vmatprep.subr.bf16.mxu0 %v3655_v31  ;;  %3243 = vmatprep.subr.bf16.mxu1 %v3714_v55 }
  0x1d   :  { %251 = vadd.xlane.f32.xlu0 %v209_v45  ;;  %v227_v45 = vmul.f32 %v3085_v38, %v3589_v3 }
  0x1e   :  { %257 = vadd.xlane.f32.xlu1 %v212_v51 }
  0x1f   :  { %3251 = vmatpush3.bf16.msra.mxu1 %v3726_v57 }
  0x21   :  { %255 = vadd.xlane.f32.xlu0 %v211_v53 }
  0x22   :  { %261 = vadd.xlane.f32.xlu1 %v214_v58 }
  0x23   :  { %3115 = vmatpush3.bf16.xpose.msra.mxu0 %v3665_v34 }
  0x24   :  { %3116 = vmatprep.subr.bf16.mxu0 %v3672_v39 }
  0x25   :  { %259 = vadd.xlane.f32.xlu0 %v213_v60 }
  0x26   :  { %265 = vadd.xlane.f32.xlu1 %v216_v63 }
  0x29   :  { %263 = vadd.xlane.f32.xlu0 %v215_v4 }
  0x2a   :  { %269 = vadd.xlane.f32.xlu1 %v218_v7 }
  0x2b   :  { %3117 = vmatpush3.bf16.xpose.msra.mxu0 %v3689_v42 }
  0x2c   :  { %3118 = vmatprep.subr.bf16.mxu0 %v3697_v47 }
  0x2d   :  { %267 = vadd.xlane.f32.xlu0 %v217_v10 }
  0x2e   :  { %273 = vadd.xlane.f32.xlu1 %v220_v14 }
  0x31   :  { %271 = vadd.xlane.f32.xlu0 %v219_v16 }
  0x32   :  { %277 = vadd.xlane.f32.xlu1 %v222_v21 }
  0x33   :  { %3119 = vmatpush3.bf16.xpose.msra.mxu0 %v3707_v49 }
  0x34   :  { %3120 = vmatprep.subr.bf16.mxu0 %v3714_v55 }
  0x35   :  { %275 = vadd.xlane.f32.xlu0 %v221_v23 }
  0x36   :  { %281 = vadd.xlane.f32.xlu1 %v224_v28 }
  0x39   :  { %279 = vadd.xlane.f32.xlu0 %v223_v30 }
  0x3a   :  { %285 = vadd.xlane.f32.xlu1 %v226_v35 }
  0x3b   :  { %3121 = vmatpush3.bf16.xpose.msra.mxu0 %v3726_v57 }
  0x3c   :  { %3124 = vmatprep.subr.bf16.mxu0 %v3575_v0 }
  0x3d   :  { %283 = vadd.xlane.f32.xlu0 %v225_v37 }
  0x3e   :  { %289 = vadd.xlane.f32.xlu1 %v228_v43 }
  0x41   :  { %287 = vadd.xlane.f32.xlu0 %v227_v45 }
  0x42   :  { %293 = vadd.xlane.f32.xlu1 %v230_v48  ;;  %3123 = vmatmul.mubr.bf16.vlgmr.msra.gmra.mrb[0].mxu0 %v3683_v41 }
  0x43   :  { %3125 = vmatpush3.bf16.msra.mxu0 %v3580_v1 }
  0x44   :  { %3126 = vmatprep.subr.bf16.mxu0 %v3599_v9 }
  0x45   :  { %291 = vadd.xlane.f32.xlu0 %v229_v50 }
  0x47   :  { %3127 = vmatpush3.bf16.msra.mxu0 %v3611_v13 }
  0x48   :  { %3128 = vmatprep.subr.bf16.mxu0 %v3619_v17 }
  0x4b   :  { %3129 = vmatpush3.bf16.msra.mxu0 %v3629_v20 }
  0x4c   :  { %3130 = vmatprep.subr.bf16.mxu0 %v3636_v24 }
  0x4f   :  { %3131 = vmatpush3.bf16.msra.mxu0 %v3648_v27 }
  0x50   :  { %3132 = vmatprep.subr.bf16.mxu0 %v3655_v31 }
  0x53   :  { %3133 = vmatpush3.bf16.msra.mxu0 %v3665_v34 }
  0x54   :  { %3134 = vmatprep.subr.bf16.mxu0 %v3672_v39 }
  0x57   :  { %3135 = vmatpush3.bf16.msra.mxu0 %v3689_v42 }
  0x58   :  { %3136 = vmatprep.subr.bf16.mxu0 %v3697_v47 }
  0x5b   :  { %3137 = vmatpush3.bf16.msra.mxu0 %v3707_v49 }
  0x5c   :  { %3138 = vmatprep.subr.bf16.mxu0 %v3714_v55 }
  0x5f   :  { %3139 = vmatpush3.bf16.msra.mxu0 %v3726_v57 }
  0x93   :  { %v236_v0 = vpop.xlane.xlu1 %235 }
  0x94   :  { %297 = vst.msk [vmem:[#allocation5 + $0x10] sm:$0xff] %vm5935_vm0, %v236_v0  ;;  %v689_v0 = vlaneseq }
  0x96   :  { %v232_v1 = vpop.xlane.xlu0 %231 }
  0x97   :  { %295 = vst.msk [vmem:[#allocation5] sm:$0xff] %vm5935_vm0, %v232_v1  ;;  %v238_v3 = vpop.xlane.xlu1 %237  ;;  %v3827_v1 = vld [vmem:[%s5888_s0] sm:$0xff] }
  0x98   :  { %298 = vst.msk [vmem:[#allocation5 + $0x18] sm:$0xff] %vm5935_vm0, %v238_v3  ;;  %v3832_v3 = vld [vmem:[%s5888_s0 + $0x8] sm:$0xff] }
  0x9a   :  { %v234_v9 = vpop.xlane.xlu0 %233 }
  0x9b   :  { %296 = vst.msk [vmem:[#allocation5 + $0x8] sm:$0xff] %vm5935_vm0, %v234_v9  ;;  %v242_v13 = vpop.xlane.xlu1 %241  ;;  %v499_v34 = vld [vmem:[#allocation5 + $0x10] sm:$0xff]  ;;  %v3834_v9 = vshrl.u32 %v689_v0, 7 }
  0x9c   :  { %300 = vst.msk [vmem:[#allocation5 + $0x28] sm:$0xff] %vm5935_vm0, %v242_v13  ;;  %v3530_v13 = vmov -inf  }
  0x9d   :  { %32 = vst.msk [vmem:[#allocation2] sm:$0xff] %vm5935_vm0, %v3530_v13  ;;  %33 = vst.msk [vmem:[#allocation2 + $0x8] sm:$0xff] %vm5935_vm0, %v3530_v13 }
  0x9e   :  { %v497_v17 = vld [vmem:[#allocation5] sm:$0xff]  ;;  %v240_v20 = vpop.xlane.xlu0 %239  ;;  %34 = vst.msk [vmem:[#allocation2 + $0x10] sm:$0xff] %vm5935_vm0, %v3530_v13  ;;  %35 = vst.msk [vmem:[#allocation2 + $0x18] sm:$0xff] %vm5935_vm0, %v3530_v13 }
  0x9f   :  { %531 = vperm.xlu0 %3255, %v497_v17   ;;  %299 = vst.msk [vmem:[#allocation5 + $0x20] sm:$0xff] %vm5935_vm0, %v240_v20  ;;  %v246_v24 = vpop.xlane.xlu1 %245  ;;  %v500_v42 = vld [vmem:[#allocation5 + $0x18] sm:$0xff]  ;;  %36 = vst.msk [vmem:[#allocation2 + $0x20] sm:$0xff] %vm5935_vm0, %v3530_v13  ;;  %v969_v17 = vunpack.c.0.s8 %v3827_v1  ;;  %v970_v20 = vunpack.c.0.s8 %v3832_v3 }
  0xa0   :  { %302 = vst.msk [vmem:[#allocation5 + $0x38] sm:$0xff] %vm5935_vm0, %v246_v24  ;;  %37 = vst.msk [vmem:[#allocation2 + $0x28] sm:$0xff] %vm5935_vm0, %v3530_v13  ;;  %v971_v24 = vunpack.c.1.s8 %v3827_v1 }
  0xa1   :  { %38 = vst.msk [vmem:[#allocation2 + $0x30] sm:$0xff] %vm5935_vm0, %v3530_v13  ;;  %39 = vst.msk [vmem:[#allocation2 + $0x38] sm:$0xff] %vm5935_vm0, %v3530_v13 }
  0xa2   :  { %v498_v27 = vld [vmem:[#allocation5 + $0x8] sm:$0xff]  ;;  %v244_v31 = vpop.xlane.xlu0 %243  ;;  %40 = vst.msk [vmem:[#allocation2 + $0x40] sm:$0xff] %vm5935_vm0, %v3530_v13  ;;  %41 = vst.msk [vmem:[#allocation2 + $0x48] sm:$0xff] %vm5935_vm0, %v3530_v13 }
  0xa3   :  { %536 = vperm.xlu1 %3256, %v498_v27   ;;  %301 = vst.msk [vmem:[#allocation5 + $0x30] sm:$0xff] %vm5935_vm0, %v244_v31  ;;  %v250_v39 = vpop.xlane.xlu1 %249  ;;  %v502_v55 = vld [vmem:[#allocation5 + $0x28] sm:$0xff]  ;;  %42 = vst.msk [vmem:[#allocation2 + $0x50] sm:$0xff] %vm5935_vm0, %v3530_v13  ;;  %v972_v27 = vunpack.c.1.s8 %v3832_v3  ;;  %v973_v31 = vunpack.c.2.s8 %v3827_v1 }
  0xa4   :  { %304 = vst.msk [vmem:[#allocation5 + $0x48] sm:$0xff] %vm5935_vm0, %v250_v39  ;;  %43 = vst.msk [vmem:[#allocation2 + $0x58] sm:$0xff] %vm5935_vm0, %v3530_v13  ;;  %v956_v39 = vld [vmem:[%s5888_s0 + $0x18] sm:$0xff] }
  0xa5   :  { %44 = vst.msk [vmem:[#allocation2 + $0x60] sm:$0xff] %vm5935_vm0, %v3530_v13  ;;  %45 = vst.msk [vmem:[#allocation2 + $0x68] sm:$0xff] %vm5935_vm0, %v3530_v13 }
  0xa6   :  { %v248_v41 = vpop.xlane.xlu0 %247  ;;  %v501_v51 = vld [vmem:[#allocation5 + $0x20] sm:$0xff]  ;;  %46 = vst.msk [vmem:[#allocation2 + $0x70] sm:$0xff] %vm5935_vm0, %v3530_v13  ;;  %47 = vst.msk [vmem:[#allocation2 + $0x78] sm:$0xff] %vm5935_vm0, %v3530_v13 }
  0xa7   :  { %541 = vperm.xlu1 %3256, %v499_v34   ;;  %303 = vst.msk [vmem:[#allocation5 + $0x40] sm:$0xff] %vm5935_vm0, %v248_v41  ;;  %v254_v47 = vpop.xlane.xlu1 %253  ;;  %v504_v63 = vld [vmem:[#allocation5 + $0x38] sm:$0xff]  ;;  %48 = vst.msk [vmem:[#allocation2 + $0x80] sm:$0xff] %vm5935_vm0, %v3530_v13  ;;  %v955_v34 = vld [vmem:[%s5888_s0 + $0x10] sm:$0xff]  ;;  %v691_v41 = vsub.s32 0, %v3834_v9 }
  0xa8   :  { %306 = vst.msk [vmem:[#allocation5 + $0x58] sm:$0xff] %vm5935_vm0, %v254_v47  ;;  %49 = vst.msk [vmem:[#allocation2 + $0x88] sm:$0xff] %vm5935_vm0, %v3530_v13  ;;  %v3882_v47 = vcvt.s32.f32 %v970_v20 }
  0xa9   :  { %50 = vst.msk [vmem:[#allocation2 + $0x90] sm:$0xff] %vm5935_vm0, %v3530_v13  ;;  %51 = vst.msk [vmem:[#allocation2 + $0x98] sm:$0xff] %vm5935_vm0, %v3530_v13 }
  0xaa   :  { %v252_v49 = vpop.xlane.xlu0 %251  ;;  %v503_v59 = vld [vmem:[#allocation5 + $0x30] sm:$0xff]  ;;  %52 = vst.msk [vmem:[#allocation2 + $0xa0] sm:$0xff] %vm5935_vm0, %v3530_v13  ;;  %53 = vst.msk [vmem:[#allocation2 + $0xa8] sm:$0xff] %vm5935_vm0, %v3530_v13  ;;  %vm1098_vm2 = vcmp.gt.f32.partialorder %v3882_v47, 0.0  ;;  %v4064_v47 = vld [vmem:[%s5888_s0 + $0x78] sm:$0xff] }
  0xab   :  { %546 = vperm.xlu1 %3256, %v500_v42   ;;  %305 = vst.msk [vmem:[#allocation5 + $0x50] sm:$0xff] %vm5935_vm0, %v252_v49  ;;  %v258_v52 = vpop.xlane.xlu1 %257  ;;  %v506_v53 = vld [vmem:[#allocation5 + $0x48] sm:$0xff]  ;;  %54 = vst.msk [vmem:[#allocation2 + $0xb0] sm:$0xff] %vm5935_vm0, %v3530_v13  ;;  %v3880_v42 = vcvt.s32.f32 %v969_v17  ;;  %v3884_v49 = vcvt.s32.f32 %v971_v24 }
  0xac   :  { %308 = vst.msk [vmem:[#allocation5 + $0x68] sm:$0xff] %vm5935_vm0, %v258_v52  ;;  %576 = vperm.xlu0 %3255, %v506_v53   ;;  %55 = vst.msk [vmem:[#allocation2 + $0xb8] sm:$0xff] %vm5935_vm0, %v3530_v13  ;;  %v957_v52 = vld [vmem:[%s5888_s0 + $0x20] sm:$0xff]  ;;  %v958_v53 = vld [vmem:[%s5888_s0 + $0x28] sm:$0xff] }
  0xad   :  { %56 = vst.msk [vmem:[#allocation2 + $0xc0] sm:$0xff] %vm5935_vm0, %v3530_v13  ;;  %57 = vst.msk [vmem:[#allocation2 + $0xc8] sm:$0xff] %vm5935_vm0, %v3530_v13  ;;  %vm1097_vm1 = vcmp.gt.f32.partialorder %v3880_v42, 0.0  ;;  %vm1099_vm3 = vcmp.gt.f32.partialorder %v3884_v49, 0.0 }
  0xae   :  { %v256_v54 = vpop.xlane.xlu0 %255  ;;  %v505_v6 = vld [vmem:[#allocation5 + $0x40] sm:$0xff]  ;;  %58 = vst.msk [vmem:[#allocation2 + $0xd0] sm:$0xff] %vm5935_vm0, %v3530_v13  ;;  %59 = vst.msk [vmem:[#allocation2 + $0xd8] sm:$0xff] %vm5935_vm0, %v3530_v13 }
  0xaf   :  { %551 = vperm.xlu1 %3256, %v501_v51   ;;  %307 = vst.msk [vmem:[#allocation5 + $0x60] sm:$0xff] %vm5935_vm0, %v256_v54  ;;  %v262_v56 = vpop.xlane.xlu1 %261  ;;  %v508_v57 = vld [vmem:[#allocation5 + $0x58] sm:$0xff]  ;;  %60 = vst.msk [vmem:[#allocation2 + $0xe0] sm:$0xff] %vm5935_vm0, %v3530_v13  ;;  %v974_v51 = vunpack.c.2.s8 %v3832_v3  ;;  %v975_v54 = vunpack.c.3.s8 %v3827_v1 }
  0xb0   :  { %310 = vst.msk [vmem:[#allocation5 + $0x78] sm:$0xff] %vm5935_vm0, %v262_v56  ;;  %586 = vperm.xlu0 %3255, %v508_v57   ;;  %61 = vst.msk [vmem:[#allocation2 + $0xe8] sm:$0xff] %vm5935_vm0, %v3530_v13  ;;  %v977_v56 = vunpack.c.0.s8 %v955_v34  ;;  %v978_v57 = vunpack.c.0.s8 %v956_v39 }
  0xb1   :  { %62 = vst.msk [vmem:[#allocation2 + $0xf0] sm:$0xff] %vm5935_vm0, %v3530_v13  ;;  %63 = vst.msk [vmem:[#allocation2 + $0xf8] sm:$0xff] %vm5935_vm0, %v3530_v13 }
  0xb2   :  { %v260_v58 = vpop.xlane.xlu0 %259  ;;  %v507_v11 = vld [vmem:[#allocation5 + $0x50] sm:$0xff] }
  0xb3   :  { %556 = vperm.xlu1 %3256, %v502_v55   ;;  %309 = vst.msk [vmem:[#allocation5 + $0x70] sm:$0xff] %vm5935_vm0, %v260_v58  ;;  %v266_v60 = vpop.xlane.xlu1 %265  ;;  %v510_v61 = vld [vmem:[#allocation5 + $0x68] sm:$0xff]  ;;  %v976_v55 = vunpack.c.3.s8 %v3832_v3  ;;  %v3895_v58 = vcvt.s32.f32 %v972_v27 }
  0xb4   :  { %312 = vst.msk [vmem:[#allocation5 + $0x88] sm:$0xff] %vm5935_vm0, %v266_v60  ;;  %596 = vperm.xlu0 %3255, %v510_v61   ;;  %v979_v60 = vunpack.c.1.s8 %v955_v34  ;;  %v980_v61 = vunpack.c.1.s8 %v956_v39  ;;  %v962_v3 = vld [vmem:[%s5888_s0 + $0x48] sm:$0xff] }
  0xb5   :  { %v1002_v20 = vunpack.c.0.s8 %v962_v3  ;;  %vm1100_vm4 = vcmp.gt.f32.partialorder %v3895_v58, 0.0 }
  0xb6   :  { %v264_v62 = vpop.xlane.xlu0 %263  ;;  %v509_v16 = vld [vmem:[#allocation5 + $0x60] sm:$0xff] }
  0xb7   :  { %561 = vperm.xlu1 %3256, %v503_v59   ;;  %311 = vst.msk [vmem:[#allocation5 + $0x80] sm:$0xff] %vm5935_vm0, %v264_v62  ;;  %v270_v2 = vpop.xlane.xlu1 %269  ;;  %v512_v4 = vld [vmem:[#allocation5 + $0x78] sm:$0xff]  ;;  %v3897_v59 = vcvt.s32.f32 %v973_v31  ;;  %v981_v62 = vunpack.c.2.s8 %v955_v34 }
  0xb8   :  { %314 = vst.msk [vmem:[#allocation5 + $0x98] sm:$0xff] %vm5935_vm0, %v270_v2  ;;  %606 = vperm.xlu0 %3255, %v512_v4   ;;  %v987_v2 = vunpack.c.1.s8 %v957_v52  ;;  %v988_v4 = vunpack.c.1.s8 %v958_v53 }
  0xb9   :  { %vm1101_vm7 = vcmp.gt.f32.partialorder %v3897_v59, 0.0 }
  0xba   :  { %v268_v5 = vpop.xlane.xlu0 %267  ;;  %v511_v22 = vld [vmem:[#allocation5 + $0x70] sm:$0xff] }
  0xbb   :  { %566 = vperm.xlu1 %3256, %v504_v63   ;;  %313 = vst.msk [vmem:[#allocation5 + $0x90] sm:$0xff] %vm5935_vm0, %v268_v5  ;;  %v274_v7 = vpop.xlane.xlu1 %273  ;;  %v514_v8 = vld [vmem:[#allocation5 + $0x88] sm:$0xff]  ;;  %v982_v63 = vunpack.c.2.s8 %v956_v39  ;;  %v3899_v5 = vcvt.s32.f32 %v974_v51 }
  0xbc   :  { %316 = vst.msk [vmem:[#allocation5 + $0xa8] sm:$0xff] %vm5935_vm0, %v274_v7  ;;  %616 = vperm.xlu0 %3255, %v514_v8   ;;  %v984_v7 = vunpack.c.3.s8 %v956_v39  ;;  %v985_v8 = vunpack.c.0.s8 %v957_v52 }
  0xbd   :  { %vm1102_vm8 = vcmp.gt.f32.partialorder %v3899_v5, 0.0 }
  0xbe   :  { %v272_v10 = vpop.xlane.xlu0 %271  ;;  %v513_v28 = vld [vmem:[#allocation5 + $0x80] sm:$0xff] }
  0xbf   :  { %571 = vperm.xlu1 %3256, %v505_v6   ;;  %315 = vst.msk [vmem:[#allocation5 + $0xa0] sm:$0xff] %vm5935_vm0, %v272_v10  ;;  %v278_v12 = vpop.xlane.xlu1 %277  ;;  %v516_v14 = vld [vmem:[#allocation5 + $0x98] sm:$0xff]  ;;  %v983_v6 = vunpack.c.3.s8 %v955_v34  ;;  %v3901_v10 = vcvt.s32.f32 %v975_v54 }
  0xc0   :  { %318 = vst.msk [vmem:[#allocation5 + $0xb8] sm:$0xff] %vm5935_vm0, %v278_v12  ;;  %626 = vperm.xlu0 %3255, %v516_v14   ;;  %v3905_v12 = vcvt.s32.f32 %v977_v56  ;;  %v3907_v14 = vcvt.s32.f32 %v978_v57  ;;  %v964_v56 = vld [vmem:[%s5888_s0 + $0x58] sm:$0xff] }
  0xc1   :  { %vm1103_vm11 = vcmp.gt.f32.partialorder %v3901_v10, 0.0  ;;  %v1030_v10 = vunpack.c.2.s8 %v4064_v47 }
  0xc2   :  { %v276_v15 = vpop.xlane.xlu0 %275  ;;  %v515_v33 = vld [vmem:[#allocation5 + $0x90] sm:$0xff]  ;;  %vm1105_vm15 = vcmp.gt.f32.partialorder %v3905_v12, 0.0 }
  0xc3   :  { %581 = vperm.xlu1 %3256, %v507_v11   ;;  %317 = vst.msk [vmem:[#allocation5 + $0xb0] sm:$0xff] %vm5935_vm0, %v276_v15  ;;  %v282_v18 = vpop.xlane.xlu1 %281  ;;  %v518_v19 = vld [vmem:[#allocation5 + $0xa8] sm:$0xff]  ;;  %v3903_v11 = vcvt.s32.f32 %v976_v55  ;;  %v3909_v15 = vcvt.s32.f32 %v979_v60  ;;  %v963_v55 = vld [vmem:[%s5888_s0 + $0x50] sm:$0xff]  ;;  %v4165_v12 = vcvt.s32.f32 %v1030_v10 }
  0xc4   :  { %320 = vst.msk [vmem:[#allocation5 + $0xc8] sm:$0xff] %vm5935_vm0, %v282_v18  ;;  %636 = vperm.xlu0 %3255, %v518_v19   ;;  %v986_v18 = vunpack.c.0.s8 %v958_v53  ;;  %v991_v19 = vunpack.c.3.s8 %v957_v52 }
  0xc5   :  { %vm1104_vm12 = vcmp.gt.f32.partialorder %v3903_v11, 0.0 }
  0xc6   :  { %v280_v21 = vpop.xlane.xlu0 %279  ;;  %v517_v38 = vld [vmem:[#allocation5 + $0xa0] sm:$0xff] }
  0xc7   :  { %591 = vperm.xlu1 %3256, %v509_v16   ;;  %319 = vst.msk [vmem:[#allocation5 + $0xc0] sm:$0xff] %vm5935_vm0, %v280_v21  ;;  %v286_v23 = vpop.xlane.xlu1 %285  ;;  %v520_v25 = vld [vmem:[#allocation5 + $0xb8] sm:$0xff]  ;;  %v3911_v16 = vcvt.s32.f32 %v980_v61  ;;  %v959_v21 = vld [vmem:[%s5888_s0 + $0x30] sm:$0xff] }
  0xc8   :  { %322 = vst.msk [vmem:[#allocation5 + $0xd8] sm:$0xff] %vm5935_vm0, %v286_v23  ;;  %646 = vperm.xlu0 %3255, %v520_v25   ;;  %v3919_v23 = vcvt.s32.f32 %v981_v62  ;;  %v3921_v25 = vcvt.s32.f32 %v982_v63  ;;  %v999_v0 = vunpack.c.3.s8 %v959_v21 }
  0xca   :  { %v284_v26 = vpop.xlane.xlu0 %283  ;;  %v519_v43 = vld [vmem:[#allocation5 + $0xb0] sm:$0xff]  ;;  %v3967_v61 = vcvt.s32.f32 %v999_v0  ;;  %v1016_v0 = vunpack.c.3.s8 %v964_v56 }
  0xcb   :  { %601 = vperm.xlu1 %3256, %v511_v22   ;;  %321 = vst.msk [vmem:[#allocation5 + $0xd0] sm:$0xff] %vm5935_vm0, %v284_v26  ;;  %v290_v29 = vpop.xlane.xlu1 %289  ;;  %v522_v30 = vld [vmem:[#allocation5 + $0xc8] sm:$0xff]  ;;  %v960_v22 = vld [vmem:[%s5888_s0 + $0x38] sm:$0xff]  ;;  %v3923_v26 = vcvt.s32.f32 %v987_v2 }
  0xcc   :  { %324 = vst.msk [vmem:[#allocation5 + $0xe8] sm:$0xff] %vm5935_vm0, %v290_v29  ;;  %656 = vperm.xlu0 %3255, %v522_v30   ;;  %v3927_v29 = vcvt.s32.f32 %v983_v6  ;;  %v3929_v30 = vcvt.s32.f32 %v984_v7  ;;  %v1000_v1 = vunpack.c.3.s8 %v960_v22  ;;  %v1008_v7 = vunpack.c.3.s8 %v962_v3 }
  0xce   :  { %v288_v32 = vpop.xlane.xlu0 %287  ;;  %v521_v45 = vld [vmem:[#allocation5 + $0xc0] sm:$0xff]  ;;  %v3969_v62 = vcvt.s32.f32 %v1000_v1  ;;  %v3999_v1 = vld [vmem:[%s5888_s0 + $0x68] sm:$0xff] }
  0xcf   :  { %611 = vperm.xlu1 %3256, %v513_v28   ;;  %323 = vst.msk [vmem:[#allocation5 + $0xe0] sm:$0xff] %vm5935_vm0, %v288_v32  ;;  %v294_v35 = vpop.xlane.xlu1 %293  ;;  %v524_v36 = vld [vmem:[#allocation5 + $0xd8] sm:$0xff]  ;;  %v3925_v28 = vcvt.s32.f32 %v988_v4  ;;  %v3931_v32 = vcvt.s32.f32 %v985_v8  ;;  %v3973_v4 = vcvt.s32.f32 %v1002_v20  ;;  %v1014_v20 = vunpack.c.2.s8 %v964_v56 }
  0xd0   :  { %326 = vst.msk [vmem:[#allocation5 + $0xf8] sm:$0xff] %vm5935_vm0, %v294_v35  ;;  %666 = vperm.xlu0 %3255, %v524_v36   ;;  %v989_v35 = vunpack.c.2.s8 %v957_v52  ;;  %v990_v36 = vunpack.c.2.s8 %v958_v53 }
  0xd2   :  { %v292_v37 = vpop.xlane.xlu0 %291  ;;  %v523_v46 = vld [vmem:[#allocation5 + $0xd0] sm:$0xff]  ;;  %v3945_v27 = vcvt.s32.f32 %v989_v35  ;;  %v3947_v31 = vcvt.s32.f32 %v990_v36 }
  0xd3   :  { %621 = vperm.xlu1 %3256, %v515_v33   ;;  %325 = vst.msk [vmem:[#allocation5 + $0xf0] sm:$0xff] %vm5935_vm0, %v292_v37  ;;  %v526_v40 = vld [vmem:[#allocation5 + $0xe8] sm:$0xff]  ;;  %v992_v33 = vunpack.c.3.s8 %v958_v53  ;;  %v995_v37 = vunpack.c.1.s8 %v959_v21  ;;  %v1004_v53 = vunpack.c.1.s8 %v962_v3 }
  0xd4   :  { %676 = vperm.xlu0 %3255, %v526_v40   ;;  %v961_v40 = vld [vmem:[%s5888_s0 + $0x40] sm:$0xff] }
  0xd5   :  { %v3943_v13 = vcvt.s32.f32 %v992_v33  ;;  %v1001_v17 = vunpack.c.0.s8 %v961_v40  ;;  %v1003_v24 = vunpack.c.1.s8 %v961_v40  ;;  %v3949_v34 = vcvt.s32.f32 %v995_v37  ;;  %v3982_v33 = vld [vmem:[%s5888_s0 + $0x60] sm:$0xff] }
  0xd6   :  { %v525_v48 = vld [vmem:[#allocation5 + $0xe0] sm:$0xff]  ;;  %v1007_v54 = vunpack.c.3.s8 %v961_v40  ;;  %v3984_v36 = vcvt.s32.f32 %v1004_v53 }
  0xd7   :  { %631 = vperm.xlu1 %3256, %v517_v38   ;;  %v528_v44 = vld [vmem:[#allocation5 + $0xf8] sm:$0xff]  ;;  %v996_v38 = vunpack.c.1.s8 %v960_v22  ;;  %v3971_v2 = vcvt.s32.f32 %v1001_v17  ;;  %v3975_v6 = vcvt.s32.f32 %v1003_v24  ;;  %v1013_v17 = vunpack.c.2.s8 %v963_v55 }
  0xd8   :  { %686 = vperm.xlu0 %3255, %v528_v44   ;;  %v3938_v44 = vcvt.s32.f32 %v991_v19  ;;  %v1006_v19 = vunpack.c.2.s8 %v962_v3  ;;  %v3986_v37 = vcvt.s32.f32 %v1007_v54  ;;  %v4001_v3 = vcvt.s32.f32 %v1008_v7 }
  0xd9   :  { %v3951_v39 = vcvt.s32.f32 %v996_v38  ;;  %v1009_v38 = vunpack.c.0.s8 %v963_v55  ;;  %v1019_v24 = vunpack.c.1.s8 %v3982_v33 }
  0xda   :  { %v527_v50 = vld [vmem:[#allocation5 + $0xf0] sm:$0xff]  ;;  %v4007_v9 = vcvt.s32.f32 %v1006_v19 }
  0xdb   :  { %641 = vperm.xlu1 %3256, %v519_v43   ;;  %v3936_v43 = vcvt.s32.f32 %v986_v18  ;;  %v1005_v18 = vunpack.c.2.s8 %v961_v40 }
  0xdd   :  { %v4005_v53 = vcvt.s32.f32 %v1005_v18 }
  0xdf   :  { %651 = vperm.xlu1 %3256, %v521_v45   ;;  %v993_v45 = vunpack.c.0.s8 %v959_v21 }
  0xe1   :  { %v3953_v51 = vcvt.s32.f32 %v993_v45  ;;  %v1010_v45 = vunpack.c.0.s8 %v964_v56 }
  0xe3   :  { %661 = vperm.xlu1 %3256, %v523_v46   ;;  %v994_v46 = vunpack.c.0.s8 %v960_v22  ;;  %v4016_v7 = vcvt.s32.f32 %v1010_v45  ;;  %v4031_v45 = vcvt.s32.f32 %v1019_v24 }
  0xe5   :  { %v3955_v52 = vcvt.s32.f32 %v994_v46  ;;  %5978 = vst [vmem:[#allocation8_spill] sm:$0xff] %v4016_v7  ;;  %5982 = vst [vmem:[#allocation12_spill] sm:$0xff] %v4031_v45 }
  0xe7   :  { %671 = vperm.xlu1 %3256, %v525_v48   ;;  %v997_v48 = vunpack.c.2.s8 %v959_v21  ;;  %v1011_v21 = vunpack.c.1.s8 %v963_v55 }
  0xe9   :  { %v3963_v57 = vcvt.s32.f32 %v997_v48 }
  0xeb   :  { %681 = vperm.xlu1 %3256, %v527_v50   ;;  %v998_v50 = vunpack.c.2.s8 %v960_v22  ;;  %v1012_v22 = vunpack.c.1.s8 %v964_v56  ;;  %v1020_v56 = vunpack.c.1.s8 %v3999_v1 }
  0xed   :  { %v3965_v60 = vcvt.s32.f32 %v998_v50  ;;  %v1015_v50 = vunpack.c.3.s8 %v963_v55  ;;  %v4011_v54 = vcvt.s32.f32 %v1012_v22  ;;  %v1017_v55 = vunpack.c.0.s8 %v3982_v33 }
  0xee   :  { %v4026_v22 = vcvt.s32.f32 %v1013_v17  ;;  %v1023_v17 = vunpack.c.3.s8 %v3982_v33 }
  0xef   :  { %5977 = vst [vmem:[#allocation7_spill] sm:$0xff] %v4011_v54 }
 0x115   :  { %v490_v63 = vpop.f32.mrb[0].mxu0 }
 0x116   :  { %v492_v8 = vpop.f32.mrb[1].mxu0  ;;  %v3990_v46 = vrot.slane %v490_v63, %v691_v41 }
 0x117   :  { %v494_v35 = vpop.f32.mrb[2].mxu0  ;;  %v3994_v40 = vrot.slane %v492_v8, %v691_v41  ;;  %v4009_v41 = vcvt.s32.f32 %v1011_v21  ;;  %v4014_v8 = vcvt.s32.f32 %v1009_v38  ;;  %v4024_v21 = vcvt.s32.f32 %v1016_v0 }
 0x118   :  { %v495_v48 = vpop.f32.mrb[3].mxu0  ;;  %v4022_v35 = vcvt.s32.f32 %v1015_v50  ;;  %v1018_v38 = vunpack.c.0.s8 %v3999_v1  ;;  %v4035_v50 = vcvt.s32.f32 %v1017_v55  ;;  %v4037_v0 = vcvt.s32.f32 %v1020_v56 }
 0x119   :  { %5976 = vst [vmem:[#allocation6_spill] sm:$0xff] %v4009_v41  ;;  %5980 = vst [vmem:[#allocation10_spill] sm:$0xff] %v4024_v21  ;;  %v4028_v48 = vcvt.s32.f32 %v1014_v20  ;;  %v1024_v20 = vunpack.c.3.s8 %v3999_v1 }
 0x11a   :  { %5979 = vst [vmem:[#allocation9_spill] sm:$0xff] %v4022_v35  ;;  %5983 = vst [vmem:[#allocation13_spill] sm:$0xff] %v4035_v50  ;;  %v4051_v56 = vcvt.s32.f32 %v1018_v38  ;;  %v4057_v50 = vld [vmem:[%s5888_s0 + $0x70] sm:$0xff] }
 0x11b   :  { %5981 = vst [vmem:[#allocation11_spill] sm:$0xff] %v4028_v48  ;;  %5984 = vst [vmem:[#allocation14_spill] sm:$0xff] %v4037_v0  ;;  %v1021_v0 = vunpack.c.2.s8 %v3982_v33  ;;  %v1022_v33 = vunpack.c.2.s8 %v3999_v1  ;;  %v1028_v1 = vunpack.c.1.s8 %v4064_v47 }
 0x11c   :  { %5987 = vst [vmem:[#allocation17_spill] sm:$0xff] %v4051_v56 }
 0x11d   :  { %v4080_v48 = vcvt.s32.f32 %v1021_v0  ;;  %v4091_v49 = vcvt.s32.f32 %v1022_v33  ;;  %v1025_v0 = vunpack.c.0.s8 %v4057_v50  ;;  %v1031_v33 = vunpack.c.3.s8 %v4057_v50 }
 0x11e   :  { %v532_v63 = vpop.permute.xlu0 %531  ;;  %v4112_v59 = vcvt.s32.f32 %v1028_v1 }
 0x11f   :  { %v697_v18 = vadd.f32 %v3990_v46, %v532_v63  ;;  %v698_v19 = vadd.f32 %v3994_v40, %v532_v63 }
 0x121   :  { %vm761_vm5 = vcmp.ge.f32.partialorder %v697_v18, 0.0  ;;  %vm762_vm6 = vcmp.ge.f32.partialorder %v698_v19, 0.0  ;;  %v825_v54 = vmul.f32 0.2, %v697_v18  ;;  %v826_v41 = vmul.f32 0.2, %v698_v19 }
 0x122   :  { %v537_v7 = vpop.permute.xlu1 %536 }
 0x123   :  { %v699_v24 = vadd.f32 %v3990_v46, %v537_v7  ;;  %v700_v63 = vadd.f32 %v3994_v40, %v537_v7  ;;  %v889_v45 = vsel %vm761_vm5, %v697_v18, %v825_v54  ;;  %v890_v21 = vsel %vm762_vm6, %v698_v19, %v826_v41 }
 0x124   :  { %v4045_v35 = vsel %vm1097_vm1, %v889_v45, -1e+30  ;;  %v4049_v55 = vsel %vm1098_vm2, %v890_v21, -1e+30  ;;  %v4069_v18 = vcvt.s32.f32 %v1023_v17  ;;  %v4071_v19 = vcvt.s32.f32 %v1024_v20 }
 0x125   :  { %5985 = vst [vmem:[#allocation15_spill] sm:$0xff] %v4045_v35  ;;  %5986 = vst [vmem:[#allocation16_spill] sm:$0xff] %v4049_v55  ;;  %v1257_v41 = vmax.f32 %v4045_v35, %v4049_v55  ;;  %vm763_vm9 = vcmp.ge.f32.partialorder %v699_v24, 0.0  ;;  %vm764_vm10 = vcmp.ge.f32.partialorder %v700_v63, 0.0  ;;  %v827_v42 = vmul.f32 0.2, %v699_v24 }
 0x126   :  { %v542_v54 = vpop.permute.xlu1 %541  ;;  %v828_v7 = vmul.f32 0.2, %v700_v63  ;;  %5988 = vst [vmem:[#allocation18_spill] sm:$0xff] %v4071_v19  ;;  %v1027_v55 = vunpack.c.1.s8 %v4057_v50  ;;  %vm1106_vm1 = vcmp.gt.f32.partialorder %v3907_v14, 0.0  ;;  %vm1108_vm5 = vcmp.gt.f32.partialorder %v3911_v16, 0.0 }
 0x127   :  { %v701_v21 = vadd.f32 %v3990_v46, %v542_v54  ;;  %v702_v38 = vadd.f32 %v3994_v40, %v542_v54  ;;  %1258 = vmax.xlane.f32.xlu1 %v1257_v41  ;;  %v891_v45 = vsel %vm763_vm9, %v699_v24, %v827_v42  ;;  %v1026_v54 = vunpack.c.0.s8 %v4064_v47 }
 0x128   :  { %v892_v35 = vsel %vm764_vm10, %v700_v63, %v828_v7  ;;  %v4078_v56 = vsel %vm1099_vm3, %v891_v45, -1e+30  ;;  %v4124_v19 = vcvt.s32.f32 %v1031_v33  ;;  %vm1110_vm9 = vcmp.gt.f32.partialorder %v3921_v25, 0.0 }
 0x129   :  { %5989 = vst [vmem:[#allocation19_spill] sm:$0xff] %v4078_v56  ;;  %v4085_v17 = vsel %vm1100_vm4, %v892_v35, -1e+30  ;;  %vm765_vm13 = vcmp.ge.f32.partialorder %v701_v21, 0.0  ;;  %vm766_vm14 = vcmp.ge.f32.partialorder %v702_v38, 0.0  ;;  %vm1107_vm4 = vcmp.gt.f32.partialorder %v3909_v15, 0.0 }
 0x12a   :  { %5990 = vst [vmem:[#allocation20_spill] sm:$0xff] %v4085_v17  ;;  %v829_v20 = vmul.f32 0.2, %v701_v21  ;;  %v547_v41 = vpop.permute.xlu1 %546  ;;  %v1260_v24 = vmax.f32 %v4078_v56, %v4085_v17  ;;  %v830_v63 = vmul.f32 0.2, %v702_v38  ;;  %v4101_v17 = vcvt.s32.f32 %v1027_v55 }
 0x12b   :  { %v703_v58 = vadd.f32 %v3990_v46, %v547_v41  ;;  %v704_v35 = vadd.f32 %v3994_v40, %v547_v41  ;;  %v1032_v55 = vunpack.c.3.s8 %v4064_v47  ;;  %vm1115_vm10 = vcmp.gt.f32.partialorder %v3923_v26, 0.0 }
 0x12c   :  { %v893_v42 = vsel %vm765_vm13, %v701_v21, %v829_v20  ;;  %1261 = vmax.xlane.f32.xlu0 %v1260_v24  ;;  %v894_v7 = vsel %vm766_vm14, %v702_v38, %v830_v63  ;;  %5992 = vst [vmem:[#allocation22_spill] sm:$0xff] %v4101_v17  ;;  %v577_v20 = vpop.permute.xlu0 %576  ;;  %v1029_v17 = vunpack.c.2.s8 %v4057_v50  ;;  %vm1111_vm14 = vcmp.gt.f32.partialorder %v3927_v29, 0.0 }
 0x12d   :  { %v4099_v45 = vsel %vm1101_vm7, %v893_v42, -1e+30  ;;  %v4106_v56 = vsel %vm1102_vm8, %v894_v7, -1e+30  ;;  %vm767_vm2 = vcmp.ge.f32.partialorder %v703_v58, 0.0  ;;  %vm768_vm3 = vcmp.ge.f32.partialorder %v704_v35, 0.0 }
 0x12e   :  { %5991 = vst [vmem:[#allocation21_spill] sm:$0xff] %v4099_v45  ;;  %5993 = vst [vmem:[#allocation23_spill] sm:$0xff] %v4106_v56  ;;  %v831_v41 = vmul.f32 0.2, %v703_v58  ;;  %v552_v21 = vpop.permute.xlu1 %551  ;;  %v1263_v38 = vmax.f32 %v4099_v45, %v4106_v56  ;;  %v832_v24 = vmul.f32 0.2, %v704_v35  ;;  %v4117_v42 = vcvt.s32.f32 %v1025_v0 }
 0x12f   :  { %v705_v5 = vadd.f32 %v3990_v46, %v552_v21  ;;  %v706_v63 = vadd.f32 %v3994_v40, %v552_v21  ;;  %v4119_v7 = vcvt.s32.f32 %v1026_v54  ;;  %vm1109_vm8 = vcmp.gt.f32.partialorder %v3919_v23, 0.0 }
 0x130   :  { %1264 = vmax.xlane.f32.xlu0 %v1263_v38  ;;  %v895_v56 = vsel %vm767_vm2, %v703_v58, %v831_v41  ;;  %v896_v45 = vsel %vm768_vm3, %v704_v35, %v832_v24  ;;  %v587_v54 = vpop.permute.xlu0 %586  ;;  %v715_v50 = vadd.f32 %v3990_v46, %v577_v20  ;;  %v716_v33 = vadd.f32 %v3994_v40, %v577_v20 }
 0x131   :  { %v4128_v1 = vsel %vm1103_vm11, %v895_v56, -1e+30  ;;  %v4132_v21 = vsel %vm1104_vm12, %v896_v45, -1e+30  ;;  %vm769_vm6 = vcmp.ge.f32.partialorder %v705_v5, 0.0  ;;  %vm770_vm7 = vcmp.ge.f32.partialorder %v706_v63, 0.0 }
 0x132   :  { %5994 = vst [vmem:[#allocation24_spill] sm:$0xff] %v4128_v1  ;;  %5995 = vst [vmem:[#allocation25_spill] sm:$0xff] %v4132_v21  ;;  %v557_v0 = vpop.permute.xlu1 %556  ;;  %v1266_v58 = vmax.f32 %v4128_v1, %v4132_v21  ;;  %v833_v35 = vmul.f32 0.2, %v705_v5  ;;  %v834_v41 = vmul.f32 0.2, %v706_v63  ;;  %v4143_v45 = vcvt.s32.f32 %v1032_v55 }
 0x133   :  { %v707_v11 = vadd.f32 %v3990_v46, %v557_v0  ;;  %v708_v56 = vadd.f32 %v3994_v40, %v557_v0  ;;  %vm1116_vm11 = vcmp.gt.f32.partialorder %v3925_v28, 0.0  ;;  %v4149_v47 = vcvt.s32.f32 %v1029_v17 }
 0x134   :  { %1267 = vmax.xlane.f32.xlu1 %v1266_v58  ;;  %v897_v38 = vsel %vm769_vm6, %v705_v5, %v833_v35  ;;  %v898_v24 = vsel %vm770_vm7, %v706_v63, %v834_v41  ;;  %v4159_v55 = vpop.permute.xlu0 %596  ;;  %vm1112_vm2 = vcmp.gt.f32.partialorder %v3929_v30, 0.0  ;;  %v843_v35 = vmul.f32 0.2, %v715_v50 }
 0x135   :  { %v4153_v21 = vsel %vm1105_vm15, %v897_v38, -1e+30  ;;  %v4157_v0 = vsel %vm1106_vm1, %v898_v24, -1e+30  ;;  %vm771_vm12 = vcmp.ge.f32.partialorder %v707_v11, 0.0  ;;  %vm772_vm13 = vcmp.ge.f32.partialorder %v708_v56, 0.0 }
 0x136   :  { %5996 = vst [vmem:[#allocation26_spill] sm:$0xff] %v4153_v21  ;;  %5997 = vst [vmem:[#allocation27_spill] sm:$0xff] %v4157_v0  ;;  %v562_v20 = vpop.permute.xlu1 %561  ;;  %v1269_v5 = vmax.f32 %v4153_v21, %v4157_v0  ;;  %v835_v63 = vmul.f32 0.2, %v707_v11  ;;  %v836_v58 = vmul.f32 0.2, %v708_v56  ;;  %v719_v10 = vadd.f32 %v3990_v46, %v587_v54 }
 0x137   :  { %v709_v14 = vadd.f32 %v3990_v46, %v562_v20  ;;  %v710_v17 = vadd.f32 %v3994_v40, %v562_v20  ;;  %vm779_vm15 = vcmp.ge.f32.partialorder %v715_v50, 0.0  ;;  %vm780_vm1 = vcmp.ge.f32.partialorder %v716_v33, 0.0 }
 0x138   :  { %1270 = vmax.xlane.f32.xlu0 %v1269_v5  ;;  %v899_v41 = vsel %vm771_vm12, %v707_v11, %v835_v63  ;;  %v900_v38 = vsel %vm772_vm13, %v708_v56, %v836_v58  ;;  %v844_v24 = vmul.f32 0.2, %v716_v33  ;;  %v4178_v1 = vpop.permute.xlu0 %606  ;;  %vm1113_vm7 = vcmp.gt.f32.partialorder %v3931_v32, 0.0 }
 0x139   :  { %v4171_v0 = vsel %vm1107_vm4, %v899_v41, -1e+30  ;;  %v4175_v21 = vsel %vm1108_vm5, %v900_v38, -1e+30  ;;  %vm773_vm3 = vcmp.ge.f32.partialorder %v709_v14, 0.0  ;;  %vm774_vm6 = vcmp.ge.f32.partialorder %v710_v17, 0.0 }
 0x13a   :  { %5998 = vst [vmem:[#allocation28_spill] sm:$0xff] %v4171_v0  ;;  %5999 = vst [vmem:[#allocation29_spill] sm:$0xff] %v4175_v21  ;;  %v567_v20 = vpop.permute.xlu1 %566  ;;  %v1272_v11 = vmax.f32 %v4171_v0, %v4175_v21  ;;  %v837_v56 = vmul.f32 0.2, %v709_v14  ;;  %v838_v5 = vmul.f32 0.2, %v710_v17  ;;  %v720_v15 = vadd.f32 %v3994_v40, %v587_v54 }
 0x13b   :  { %vm1114_vm4 = vcmp.gt.f32.partialorder %v3936_v43, 0.0  ;;  %v711_v16 = vadd.f32 %v3990_v46, %v567_v20  ;;  %v712_v63 = vadd.f32 %v3994_v40, %v567_v20  ;;  %v907_v58 = vsel %vm779_vm15, %v715_v50, %v843_v35 }
 0x13c   :  { %vm1119_vm5 = vcmp.gt.f32.partialorder %v3938_v44, 0.0  ;;  %v4191_v41 = vadd.f32 %v3990_v46, %v4159_v55  ;;  %1273 = vmax.xlane.f32.xlu1 %v1272_v11  ;;  %v901_v38 = vsel %vm773_vm3, %v709_v14, %v837_v56  ;;  %v902_v21 = vsel %vm774_vm6, %v710_v17, %v838_v5  ;;  %v4205_v20 = vpop.permute.xlu0 %616 }
 0x13d   :  { %v908_v0 = vsel %vm780_vm1, %v716_v33, %v844_v24  ;;  %v4198_v54 = vsel %vm1109_vm8, %v901_v38, -1e+30  ;;  %v4202_v50 = vsel %vm1110_vm9, %v902_v21, -1e+30  ;;  %vm775_vm12 = vcmp.ge.f32.partialorder %v711_v16, 0.0 }
 0x13e   :  { %6000 = vst [vmem:[#allocation30_spill] sm:$0xff] %v4202_v50  ;;  %vm776_vm13 = vcmp.ge.f32.partialorder %v712_v63, 0.0  ;;  %vm1120_vm15 = vcmp.gt.f32.partialorder %v3943_v13, 0.0  ;;  %v572_v35 = vpop.permute.xlu1 %571  ;;  %v1275_v14 = vmax.f32 %v4198_v54, %v4202_v50  ;;  %v839_v17 = vmul.f32 0.2, %v711_v16  ;;  %v5045_v50 = vld [vmem:[#allocation2 + $0xe0] sm:$0xff] }
 0x13f   :  { %v840_v33 = vmul.f32 0.2, %v712_v63  ;;  %v4211_v23 = vsel %vm1115_vm10, %v907_v58, -1e+30  ;;  %vm1117_vm8 = vcmp.gt.f32.partialorder %v3945_v27, 0.0  ;;  %vm1118_vm9 = vcmp.gt.f32.partialorder %v3947_v31, 0.0 }
 0x140   :  { %6001 = vst [vmem:[#allocation31_spill] sm:$0xff] %v4211_v23  ;;  %v713_v25 = vadd.f32 %v3990_v46, %v572_v35  ;;  %v714_v21 = vadd.f32 %v3994_v40, %v572_v35  ;;  %v4219_v24 = vsel %vm1116_vm11, %v908_v0, -1e+30  ;;  %vm783_vm1 = vcmp.ge.f32.partialorder %v719_v10, 0.0  ;;  %1276 = vmax.xlane.f32.xlu0 %v1275_v14  ;;  %v4231_v0 = vpop.permute.xlu0 %626 }
 0x141   :  { %6002 = vst [vmem:[#allocation32_spill] sm:$0xff] %v4219_v24  ;;  %v903_v11 = vsel %vm775_vm12, %v711_v16, %v839_v17  ;;  %v904_v26 = vsel %vm776_vm13, %v712_v63, %v840_v33  ;;  %vm784_vm10 = vcmp.ge.f32.partialorder %v720_v15, 0.0  ;;  %v847_v56 = vmul.f32 0.2, %v719_v10 }
 0x142   :  { %v4225_v5 = vsel %vm1111_vm14, %v903_v11, -1e+30  ;;  %v4229_v58 = vsel %vm1112_vm2, %v904_v26, -1e+30  ;;  %vm777_vm3 = vcmp.ge.f32.partialorder %v713_v25, 0.0  ;;  %vm778_vm6 = vcmp.ge.f32.partialorder %v714_v21, 0.0  ;;  %v582_v28 = vpop.permute.xlu1 %581 }
 0x143   :  { %6003 = vst [vmem:[#allocation33_spill] sm:$0xff] %v4225_v5  ;;  %6004 = vst [vmem:[#allocation34_spill] sm:$0xff] %v4229_v58  ;;  %v1278_v16 = vmax.f32 %v4225_v5, %v4229_v58  ;;  %v841_v38 = vmul.f32 0.2, %v713_v25  ;;  %v842_v63 = vmul.f32 0.2, %v714_v21  ;;  %v4239_v29 = vadd.f32 %v3994_v40, %v4159_v55 }
 0x144   :  { %v848_v35 = vmul.f32 0.2, %v720_v15  ;;  %vm1121_vm11 = vcmp.gt.f32.partialorder %v3953_v51, 0.0  ;;  %vm1122_vm14 = vcmp.gt.f32.partialorder %v3955_v52, 0.0  ;;  %v717_v30 = vadd.f32 %v3990_v46, %v582_v28 }
 0x145   :  { %v718_v14 = vadd.f32 %v3994_v40, %v582_v28  ;;  %v1284_v17 = vmax.f32 %v4211_v23, %v4219_v24  ;;  %1279 = vmax.xlane.f32.xlu1 %v1278_v16  ;;  %v905_v33 = vsel %vm777_vm3, %v713_v25, %v841_v38  ;;  %v906_v11 = vsel %vm778_vm6, %v714_v21, %v842_v63  ;;  %v4256_v16 = vpop.permute.xlu0 %636 }
 0x146   :  { %v911_v26 = vsel %vm783_vm1, %v719_v10, %v847_v56  ;;  %v912_v58 = vsel %vm784_vm10, %v720_v15, %v848_v35  ;;  %v4249_v5 = vsel %vm1113_vm7, %v905_v33, -1e+30  ;;  %v4253_v55 = vsel %vm1114_vm4, %v906_v11, -1e+30  ;;  %v592_v28 = vpop.permute.xlu1 %591 }
 0x147   :  { %6005 = vst [vmem:[#allocation35_spill] sm:$0xff] %v4249_v5  ;;  %6006 = vst [vmem:[#allocation36_spill] sm:$0xff] %v4253_v55  ;;  %vm781_vm2 = vcmp.ge.f32.partialorder %v717_v30, 0.0  ;;  %vm782_vm12 = vcmp.ge.f32.partialorder %v718_v14, 0.0  ;;  %vm1123_vm13 = vcmp.gt.f32.partialorder %v3949_v34, 0.0  ;;  %v1281_v10 = vmax.f32 %v4249_v5, %v4253_v55 }
 0x148   :  { %v845_v25 = vmul.f32 0.2, %v717_v30  ;;  %v846_v15 = vmul.f32 0.2, %v718_v14  ;;  %v4262_v32 = vsel %vm1119_vm5, %v911_v26, -1e+30  ;;  %v4267_v43 = vadd.f32 %v3990_v46, %v4178_v1 }
 0x149   :  { %6007 = vst [vmem:[#allocation37_spill] sm:$0xff] %v4262_v32  ;;  %vm1124_vm7 = vcmp.gt.f32.partialorder %v3951_v39, 0.0  ;;  %v4271_v21 = vadd.f32 %v3994_v40, %v4178_v1  ;;  %v721_v56 = vadd.f32 %v3990_v46, %v592_v28  ;;  %v722_v38 = vadd.f32 %v3994_v40, %v592_v28  ;;  %1282 = vmax.xlane.f32.xlu0 %v1281_v10  ;;  %v647_v13 = vpop.permute.xlu0 %646 }
 0x14a   :  { %v4277_v63 = vadd.f32 %v3990_v46, %v4205_v20  ;;  %1285 = vmax.xlane.f32.xlu1 %v1284_v17  ;;  %v909_v44 = vsel %vm781_vm2, %v717_v30, %v845_v25  ;;  %v910_v35 = vsel %vm782_vm12, %v718_v14, %v846_v15  ;;  %v4283_v33 = vsel %vm1120_vm15, %v912_v58, -1e+30  ;;  %v602_v30 = vpop.permute.xlu1 %601 }
 0x14b   :  { %6008 = vst [vmem:[#allocation38_spill] sm:$0xff] %v4283_v33  ;;  %v4287_v1 = vsel %vm1117_vm8, %v909_v44, -1e+30  ;;  %v4291_v11 = vsel %vm1118_vm9, %v910_v35, -1e+30  ;;  %v1290_v26 = vmax.f32 %v4262_v32, %v4283_v33  ;;  %vm785_vm4 = vcmp.ge.f32.partialorder %v721_v56, 0.0 }
 0x14c   :  { %6009 = vst [vmem:[#allocation39_spill] sm:$0xff] %v4287_v1  ;;  %6010 = vst [vmem:[#allocation40_spill] sm:$0xff] %v4291_v11  ;;  %vm1125_vm5 = vcmp.gt.f32.partialorder %v3963_v57, 0.0  ;;  %vm1126_vm1 = vcmp.gt.f32.partialorder %v3965_v60, 0.0  ;;  %v1287_v58 = vmax.f32 %v4287_v1, %v4291_v11  ;;  %vm786_vm15 = vcmp.ge.f32.partialorder %v722_v38, 0.0 }
 0x14d   :  { %v849_v27 = vmul.f32 0.2, %v721_v56  ;;  %v850_v14 = vmul.f32 0.2, %v722_v38  ;;  %vm1127_vm8 = vcmp.gt.f32.partialorder %v3967_v61, 0.0  ;;  %vm1128_vm9 = vcmp.gt.f32.partialorder %v3969_v62, 0.0 }
 0x14e   :  { %v4303_v31 = vadd.f32 %v3994_v40, %v4205_v20  ;;  %v725_v17 = vadd.f32 %v3990_v46, %v602_v30  ;;  %v726_v28 = vadd.f32 %v3994_v40, %v602_v30  ;;  %vm787_vm10 = vcmp.ge.f32.partialorder %v4191_v41, 0.0  ;;  %1288 = vmax.xlane.f32.xlu0 %v1287_v58  ;;  %1291 = vmax.xlane.f32.xlu1 %v1290_v26  ;;  %v612_v30 = vpop.permute.xlu1 %611  ;;  %v657_v58 = vpop.permute.xlu0 %656 }
 0x14f   :  { %v913_v10 = vsel %vm785_vm4, %v721_v56, %v849_v27  ;;  %v914_v25 = vsel %vm786_vm15, %v722_v38, %v850_v14  ;;  %vm788_vm3 = vcmp.ge.f32.partialorder %v4239_v29, 0.0  ;;  %v851_v15 = vmul.f32 0.2, %v4191_v41 }
 0x150   :  { %v4313_v44 = vadd.f32 %v3990_v46, %v4231_v0  ;;  %v4317_v20 = vsel %vm1121_vm11, %v913_v10, -1e+30  ;;  %v4321_v35 = vsel %vm1122_vm14, %v914_v25, -1e+30  ;;  %v852_v26 = vmul.f32 0.2, %v4239_v29 }
 0x151   :  { %6011 = vst [vmem:[#allocation41_spill] sm:$0xff] %v4317_v20  ;;  %6012 = vst [vmem:[#allocation42_spill] sm:$0xff] %v4321_v35  ;;  %v4326_v56 = vadd.f32 %v3994_v40, %v4231_v0  ;;  %v4330_v38 = vadd.f32 %v3990_v46, %v4256_v16  ;;  %v1293_v51 = vmax.f32 %v4317_v20, %v4321_v35  ;;  %vm789_vm6 = vcmp.ge.f32.partialorder %v725_v17, 0.0 }
 0x152   :  { %v915_v52 = vsel %vm787_vm10, %v4191_v41, %v851_v15  ;;  %v729_v27 = vadd.f32 %v3990_v46, %v612_v30  ;;  %v730_v14 = vadd.f32 %v3994_v40, %v612_v30  ;;  %vm790_vm11 = vcmp.ge.f32.partialorder %v726_v28, 0.0 }
 0x153   :  { %vm1129_vm14 = vcmp.gt.f32.partialorder %v3971_v2, 0.0  ;;  %vm1130_vm2 = vcmp.gt.f32.partialorder %v3973_v4, 0.0  ;;  %1294 = vmax.xlane.f32.xlu0 %v1293_v51  ;;  %v916_v0 = vsel %vm788_vm3, %v4239_v29, %v852_v26  ;;  %v4346_v10 = vsel %vm1123_vm13, %v915_v52, -1e+30  ;;  %v622_v29 = vpop.permute.xlu1 %621  ;;  %v667_v26 = vpop.permute.xlu0 %666 }
 0x154   :  { %6013 = vst [vmem:[#allocation43_spill] sm:$0xff] %v4346_v10  ;;  %v853_v41 = vmul.f32 0.2, %v725_v17  ;;  %v854_v25 = vmul.f32 0.2, %v726_v28  ;;  %vm791_vm12 = vcmp.ge.f32.partialorder %v4267_v43, 0.0  ;;  %v4363_v39 = vadd.f32 %v3994_v40, %v4256_v16 }
 0x155   :  { %v4350_v15 = vsel %vm1124_vm7, %v916_v0, -1e+30  ;;  %vm792_vm4 = vcmp.ge.f32.partialorder %v4271_v21, 0.0  ;;  %v855_v30 = vmul.f32 0.2, %v4267_v43  ;;  %vm1131_vm13 = vcmp.gt.f32.partialorder %v3975_v6, 0.0 }
 0x156   :  { %6014 = vst [vmem:[#allocation44_spill] sm:$0xff] %v4350_v15  ;;  %v1296_v51 = vmax.f32 %v4346_v10, %v4350_v15  ;;  %v917_v34 = vsel %vm789_vm6, %v725_v17, %v853_v41  ;;  %v918_v52 = vsel %vm790_vm11, %v726_v28, %v854_v25  ;;  %v856_v20 = vmul.f32 0.2, %v4271_v21 }
 0x157   :  { %v4366_v0 = vadd.f32 %v3990_v46, %v647_v13  ;;  %v4369_v35 = vadd.f32 %v3994_v40, %v647_v13  ;;  %v4372_v10 = vadd.f32 %v3990_v46, %v657_v58  ;;  %vm1132_vm7 = vcmp.gt.f32.partialorder %v3984_v36, 0.0  ;;  %v632_v25 = vpop.permute.xlu1 %631 }
 0x158   :  { %1297 = vmax.xlane.f32.xlu1 %v1296_v51  ;;  %v4377_v17 = vsel %vm1125_vm5, %v917_v34, -1e+30  ;;  %v4381_v16 = vsel %vm1126_vm1, %v918_v52, -1e+30  ;;  %v919_v28 = vsel %vm791_vm12, %v4267_v43, %v855_v30  ;;  %v920_v13 = vsel %vm792_vm4, %v4271_v21, %v856_v20  ;;  %v677_v30 = vpop.permute.xlu0 %676 }
 0x159   :  { %6015 = vst [vmem:[#allocation45_spill] sm:$0xff] %v4377_v17  ;;  %6016 = vst [vmem:[#allocation46_spill] sm:$0xff] %v4381_v16  ;;  %v1299_v41 = vmax.f32 %v4377_v17, %v4381_v16  ;;  %v4393_v57 = vsel %vm1127_vm8, %v919_v28, -1e+30  ;;  %v4397_v60 = vsel %vm1128_vm9, %v920_v13, -1e+30  ;;  %v4403_v51 = vadd.f32 %v3994_v40, %v657_v58 }
 0x15a   :  { %6017 = vst [vmem:[#allocation47_spill] sm:$0xff] %v4393_v57  ;;  %6018 = vst [vmem:[#allocation48_spill] sm:$0xff] %v4397_v60  ;;  %vm793_vm5 = vcmp.ge.f32.partialorder %v729_v27, 0.0  ;;  %vm1133_vm1 = vcmp.gt.f32.partialorder %v4005_v53, 0.0  ;;  %v1302_v43 = vmax.f32 %v4393_v57, %v4397_v60  ;;  %vm794_vm15 = vcmp.ge.f32.partialorder %v730_v14, 0.0  ;;  %v6021_v17 = vld [vmem:[#allocation8_spill] sm:$0xff] }
 0x15b   :  { %v857_v21 = vmul.f32 0.2, %v729_v27  ;;  %v858_v20 = vmul.f32 0.2, %v730_v14  ;;  %v733_v61 = vadd.f32 %v3990_v46, %v622_v29  ;;  %1300 = vmax.xlane.f32.xlu0 %v1299_v41  ;;  %v4407_v62 = vadd.f32 %v3990_v46, %v677_v30  ;;  %v6023_v16 = vld [vmem:[#allocation6_spill] sm:$0xff]  ;;  %v6027_v53 = vld [vmem:[#allocation11_spill] sm:$0xff] }
 0x15c   :  { %v4410_v34 = vadd.f32 %v3994_v40, %v677_v30  ;;  %vm1134_vm8 = vcmp.gt.f32.partialorder %v4007_v9, 0.0  ;;  %v734_v52 = vadd.f32 %v3994_v40, %v622_v29  ;;  %v4415_v28 = vadd.f32 %v3990_v46, %v667_v26  ;;  %1303 = vmax.xlane.f32.xlu1 %v1302_v43  ;;  %v642_v43 = vpop.permute.xlu1 %641  ;;  %v687_v30 = vpop.permute.xlu0 %686 }
 0x15d   :  { %v921_v58 = vsel %vm793_vm5, %v729_v27, %v857_v21  ;;  %v922_v13 = vsel %vm794_vm15, %v730_v14, %v858_v20  ;;  %vm1135_vm9 = vcmp.gt.f32.partialorder %v3986_v37, 0.0  ;;  %v4420_v41 = vadd.f32 %v3994_v40, %v667_v26 }
 0x15e   :  { %v4423_v57 = vadd.f32 %v3990_v46, %v632_v25  ;;  %vm795_vm10 = vcmp.ge.f32.partialorder %v4277_v63, 0.0  ;;  %vm796_vm3 = vcmp.ge.f32.partialorder %v4303_v31, 0.0  ;;  %vm1136_vm6 = vcmp.gt.f32.partialorder %v4001_v3, 0.0 }
 0x15f   :  { %v4429_v29 = vadd.f32 %v3994_v40, %v632_v25  ;;  %v4433_v27 = vsel %vm1129_vm14, %v921_v58, -1e+30  ;;  %v4437_v14 = vsel %vm1130_vm2, %v922_v13, -1e+30  ;;  %v859_v26 = vmul.f32 0.2, %v4277_v63 }
 0x160   :  { %6019 = vst [vmem:[#allocation49_spill] sm:$0xff] %v4433_v27  ;;  %6020 = vst [vmem:[#allocation50_spill] sm:$0xff] %v4437_v14  ;;  %v4441_v21 = vmul.f32 0.2, %v4407_v62  ;;  %v4444_v20 = vmul.f32 0.2, %v4410_v34  ;;  %v1305_v25 = vmax.f32 %v4433_v27, %v4437_v14  ;;  %v4452_v58 = vadd.f32 %v3990_v46, %v687_v30  ;;  %v652_v6 = vpop.permute.xlu1 %651 }
 0x161   :  { %v860_v2 = vmul.f32 0.2, %v4303_v31  ;;  %vm1137_vm11 = vcmp.gt.f32.partialorder %v4014_v8, 0.0  ;;  %v923_v4 = vsel %vm795_vm10, %v4277_v63, %v859_v26  ;;  %v4455_v13 = vadd.f32 %v3994_v40, %v687_v30  ;;  %v6024_v30 = vld [vmem:[#allocation7_spill] sm:$0xff] }
 0x162   :  { %vm797_vm14 = vcmp.ge.f32.partialorder %v733_v61, 0.0  ;;  %vm1138_vm2 = vcmp.gt.f32.partialorder %v6021_v17, 0.0  ;;  %1306 = vmax.xlane.f32.xlu0 %v1305_v25  ;;  %v4463_v14 = vsel %vm1131_vm13, %v923_v4, -1e+30  ;;  %v4466_v63 = vadd.f32 %v3990_v46, %v642_v43 }
 0x163   :  { %v924_v27 = vsel %vm796_vm3, %v4303_v31, %v860_v2  ;;  %6022 = vst [vmem:[#allocation8_spill] sm:$0xff] %v4463_v14  ;;  %v861_v26 = vmul.f32 0.2, %v733_v61  ;;  %vm1139_vm12 = vcmp.gt.f32.partialorder %v6023_v16, 0.0  ;;  %vm1140_vm4 = vcmp.gt.f32.partialorder %v6024_v30, 0.0 }
 0x164   :  { %v4472_v60 = vsel %vm1132_vm7, %v924_v27, -1e+30  ;;  %v4475_v25 = vadd.f32 %v3994_v40, %v642_v43  ;;  %v4478_v31 = vmul.f32 0.2, %v4452_v58  ;;  %vm798_vm13 = vcmp.ge.f32.partialorder %v734_v52, 0.0 }
 0x165   :  { %6025 = vst [vmem:[#allocation6_spill] sm:$0xff] %v4472_v60  ;;  %v1308_v2 = vmax.f32 %v4463_v14, %v4472_v60  ;;  %v4483_v4 = vmul.f32 0.2, %v4455_v13  ;;  %v862_v15 = vmul.f32 0.2, %v734_v52  ;;  %v925_v1 = vsel %vm797_vm14, %v733_v61, %v861_v26  ;;  %v6030_v26 = vld [vmem:[#allocation10_spill] sm:$0xff] }
 0x166   :  { %v4488_v36 = vsel %vm1133_vm1, %v925_v1, -1e+30  ;;  %vm799_vm7 = vcmp.ge.f32.partialorder %v4313_v44, 0.0  ;;  %vm800_vm5 = vcmp.ge.f32.partialorder %v4326_v56, 0.0  ;;  %v863_v27 = vmul.f32 0.2, %v4313_v44 }
 0x167   :  { %6026 = vst [vmem:[#allocation7_spill] sm:$0xff] %v4488_v36  ;;  %1309 = vmax.xlane.f32.xlu1 %v1308_v2  ;;  %v926_v43 = vsel %vm798_vm13, %v734_v52, %v862_v15  ;;  %v864_v14 = vmul.f32 0.2, %v4326_v56  ;;  %v4495_v60 = vadd.f32 %v3990_v46, %v652_v6  ;;  %v4498_v32 = vadd.f32 %v3994_v40, %v652_v6  ;;  %v662_v15 = vpop.permute.xlu1 %661  ;;  %v6029_v52 = vld [vmem:[#allocation9_spill] sm:$0xff] }
 0x168   :  { %vm1141_vm15 = vcmp.gt.f32.partialorder %v4026_v22, 0.0  ;;  %vm1142_vm1 = vcmp.gt.f32.partialorder %v6027_v53, 0.0  ;;  %v4504_v1 = vsel %vm1134_vm8, %v926_v43, -1e+30  ;;  %v927_v61 = vsel %vm799_vm7, %v4313_v44, %v863_v27 }
 0x169   :  { %6028 = vst [vmem:[#allocation11_spill] sm:$0xff] %v4504_v1  ;;  %vm801_vm10 = vcmp.ge.f32.partialorder %v4423_v57, 0.0  ;;  %vm802_vm3 = vcmp.ge.f32.partialorder %v4429_v29, 0.0  ;;  %vm1143_vm14 = vcmp.gt.f32.partialorder %v6029_v52, 0.0  ;;  %vm1144_vm13 = vcmp.gt.f32.partialorder %v6030_v26, 0.0  ;;  %v6046_v52 = vld [vmem:[#allocation22_spill] sm:$0xff] }
 0x16a   :  { %v1311_v6 = vmax.f32 %v4488_v36, %v4504_v1  ;;  %v928_v9 = vsel %vm800_vm5, %v4326_v56, %v864_v14  ;;  %v4518_v2 = vsel %vm1135_vm9, %v927_v61, -1e+30  ;;  %v865_v44 = vmul.f32 0.2, %v4423_v57  ;;  %v5031_v1 = vld [vmem:[#allocation2 + $0xd8] sm:$0xff] }
 0x16b   :  { %6031 = vst [vmem:[#allocation9_spill] sm:$0xff] %v4518_v2  ;;  %v4523_v27 = vsel %vm1136_vm6, %v928_v9, -1e+30  ;;  %v866_v43 = vmul.f32 0.2, %v4429_v29  ;;  %vm803_vm8 = vcmp.ge.f32.partialorder %v4330_v38, 0.0  ;;  %v4541_v36 = vadd.f32 %v3990_v46, %v662_v15 }
 0x16c   :  { %6032 = vst [vmem:[#allocation10_spill] sm:$0xff] %v4523_v27  ;;  %vm804_vm7 = vcmp.ge.f32.partialorder %v4363_v39, 0.0  ;;  %1312 = vmax.xlane.f32.xlu0 %v1311_v6  ;;  %v1314_v56 = vmax.f32 %v4518_v2, %v4523_v27  ;;  %v929_v37 = vsel %vm801_vm10, %v4423_v57, %v865_v44  ;;  %v867_v14 = vmul.f32 0.2, %v4330_v38  ;;  %v672_v2 = vpop.permute.xlu1 %671  ;;  %v6034_v57 = vld [vmem:[#allocation13_spill] sm:$0xff] }
 0x16d   :  { %v868_v61 = vmul.f32 0.2, %v4363_v39  ;;  %v930_v3 = vsel %vm802_vm3, %v4429_v29, %v866_v43  ;;  %v4538_v9 = vsel %vm1137_vm11, %v929_v37, -1e+30  ;;  %v4544_v6 = vadd.f32 %v3994_v40, %v662_v15  ;;  %v6035_v44 = vld [vmem:[#allocation17_spill] sm:$0xff]  ;;  %v6037_v15 = vld [vmem:[#allocation12_spill] sm:$0xff] }
 0x16e   :  { %6033 = vst [vmem:[#allocation51_spill] sm:$0xff] %v4538_v9  ;;  %vm1145_vm9 = vcmp.gt.f32.partialorder %v6034_v57, 0.0  ;;  %vm1146_vm6 = vcmp.gt.f32.partialorder %v6035_v44, 0.0  ;;  %1315 = vmax.xlane.f32.xlu1 %v1314_v56  ;;  %v4550_v27 = vsel %vm1138_vm2, %v930_v3, -1e+30  ;;  %v931_v8 = vsel %vm803_vm8, %v4330_v38, %v867_v14  ;;  %v6038_v43 = vld [vmem:[#allocation14_spill] sm:$0xff] }
 0x16f   :  { %6036 = vst [vmem:[#allocation13_spill] sm:$0xff] %v4550_v27  ;;  %v932_v29 = vsel %vm804_vm7, %v4363_v39, %v868_v61  ;;  %vm805_vm11 = vcmp.ge.f32.partialorder %v4466_v63, 0.0  ;;  %vm1147_vm5 = vcmp.gt.f32.partialorder %v6037_v15, 0.0  ;;  %vm1148_vm10 = vcmp.gt.f32.partialorder %v6038_v43, 0.0 }
 0x170   :  { %v1317_v56 = vmax.f32 %v4538_v9, %v4550_v27  ;;  %v4565_v17 = vsel %vm1139_vm12, %v931_v8, -1e+30  ;;  %v4569_v38 = vsel %vm1140_vm4, %v932_v29, -1e+30  ;;  %vm806_vm2 = vcmp.ge.f32.partialorder %v4475_v25, 0.0  ;;  %v5026_v9 = vld [vmem:[#allocation2 + $0xd0] sm:$0xff] }
 0x171   :  { %6039 = vst [vmem:[#allocation17_spill] sm:$0xff] %v4565_v17  ;;  %6040 = vst [vmem:[#allocation12_spill] sm:$0xff] %v4569_v38  ;;  %v1320_v39 = vmax.f32 %v4565_v17, %v4569_v38  ;;  %v869_v37 = vmul.f32 0.2, %v4466_v63  ;;  %v870_v14 = vmul.f32 0.2, %v4475_v25  ;;  %v4581_v61 = vadd.f32 %v3990_v46, %v672_v2 }
 0x172   :  { %vm807_vm3 = vcmp.ge.f32.partialorder %v4366_v0, 0.0  ;;  %1318 = vmax.xlane.f32.xlu0 %v1317_v56  ;;  %vm808_vm8 = vcmp.ge.f32.partialorder %v4369_v35, 0.0  ;;  %v871_v16 = vmul.f32 0.2, %v4366_v0  ;;  %v872_v30 = vmul.f32 0.2, %v4369_v35 }
 0x173   :  { %1321 = vmax.xlane.f32.xlu1 %v1320_v39  ;;  %v933_v3 = vsel %vm805_vm11, %v4466_v63, %v869_v37  ;;  %v934_v8 = vsel %vm806_vm2, %v4475_v25, %v870_v14  ;;  %v4588_v29 = vadd.f32 %v3994_v40, %v672_v2  ;;  %vm809_vm12 = vcmp.ge.f32.partialorder %v4495_v60, 0.0  ;;  %v682_v2 = vpop.permute.xlu1 %681  ;;  %v6043_v37 = vld [vmem:[#allocation18_spill] sm:$0xff] }
 0x174   :  { %vm1149_vm4 = vcmp.gt.f32.partialorder %v4080_v48, 0.0  ;;  %v4595_v56 = vsel %vm1141_vm15, %v933_v3, -1e+30  ;;  %v4599_v39 = vsel %vm1142_vm1, %v934_v8, -1e+30  ;;  %v935_v63 = vsel %vm807_vm3, %v4366_v0, %v871_v16 }
 0x175   :  { %6041 = vst [vmem:[#allocation14_spill] sm:$0xff] %v4595_v56  ;;  %6042 = vst [vmem:[#allocation52_spill] sm:$0xff] %v4599_v39  ;;  %v936_v25 = vsel %vm808_vm8, %v4369_v35, %v872_v30  ;;  %vm1151_vm11 = vcmp.gt.f32.partialorder %v4069_v18, 0.0  ;;  %vm1152_vm2 = vcmp.gt.f32.partialorder %v6043_v37, 0.0  ;;  %v1323_v22 = vmax.f32 %v4595_v56, %v4599_v39  ;;  %v5010_v39 = vld [vmem:[#allocation2 + $0xc0] sm:$0xff]  ;;  %v5015_v56 = vld [vmem:[#allocation2 + $0xc8] sm:$0xff] }
 0x176   :  { %v4611_v53 = vsel %vm1143_vm14, %v935_v63, -1e+30  ;;  %v4615_v0 = vsel %vm1144_vm13, %v936_v25, -1e+30  ;;  %vm810_vm15 = vcmp.ge.f32.partialorder %v4498_v32, 0.0  ;;  %vm811_vm1 = vcmp.ge.f32.partialorder %v4372_v10, 0.0 }
 0x177   :  { %6044 = vst [vmem:[#allocation18_spill] sm:$0xff] %v4611_v53  ;;  %6045 = vst [vmem:[#allocation53_spill] sm:$0xff] %v4615_v0  ;;  %v1326_v35 = vmax.f32 %v4611_v53, %v4615_v0  ;;  %v873_v14 = vmul.f32 0.2, %v4495_v60  ;;  %v874_v16 = vmul.f32 0.2, %v4498_v32  ;;  %1324 = vmax.xlane.f32.xlu0 %v1323_v22  ;;  %v4630_v3 = vadd.f32 %v3990_v46, %v682_v2 }
 0x178   :  { %vm1153_vm3 = vcmp.gt.f32.partialorder %v4117_v42, 0.0  ;;  %vm812_vm13 = vcmp.ge.f32.partialorder %v4403_v51, 0.0  ;;  %v875_v26 = vmul.f32 0.2, %v4372_v10  ;;  %v876_v30 = vmul.f32 0.2, %v4403_v51 }
 0x179   :  { %vm1154_vm7 = vcmp.gt.f32.partialorder %v4119_v7, 0.0  ;;  %vm823_vm0 = vcmp.ge.f32.partialorder %v4452_v58, 0.0  ;;  %1327 = vmax.xlane.f32.xlu1 %v1326_v35  ;;  %v937_v8 = vsel %vm809_vm12, %v4495_v60, %v873_v14  ;;  %v938_v63 = vsel %vm810_vm15, %v4498_v32, %v874_v16 }
 0x17a   :  { %v758_v25 = vadd.f32 %v3994_v40, %v682_v2  ;;  %vm813_vm8 = vcmp.ge.f32.partialorder %v4541_v36, 0.0  ;;  %vm824_vm14 = vcmp.ge.f32.partialorder %v4455_v13, 0.0  ;;  %v4645_v46 = vsel %vm1145_vm9, %v937_v8, -1e+30 }
 0x17b   :  { %6047 = vst [vmem:[#allocation22_spill] sm:$0xff] %v4645_v46  ;;  %v4649_v22 = vsel %vm1146_vm6, %v938_v63, -1e+30  ;;  %v939_v60 = vsel %vm811_vm1, %v4372_v10, %v875_v26  ;;  %v940_v32 = vsel %vm812_vm13, %v4403_v51, %v876_v30  ;;  %vm814_vm9 = vcmp.ge.f32.partialorder %v4544_v6, 0.0 }
 0x17c   :  { %6048 = vst [vmem:[#allocation54_spill] sm:$0xff] %v4649_v22  ;;  %v1329_v40 = vmax.f32 %v4645_v46, %v4649_v22  ;;  %v4659_v2 = vsel %vm1147_vm5, %v939_v60, -1e+30  ;;  %v4663_v57 = vsel %vm1148_vm10, %v940_v32, -1e+30  ;;  %vm1159_vm6 = vcmp.gt.f32.partialorder %v4124_v19, 0.0 }
 0x17d   :  { %6049 = vst [vmem:[#allocation55_spill] sm:$0xff] %v4659_v2  ;;  %6050 = vst [vmem:[#allocation56_spill] sm:$0xff] %v4663_v57  ;;  %vm1160_vm12 = vcmp.gt.f32.partialorder %v4143_v45, 0.0  ;;  %v1332_v10 = vmax.f32 %v4659_v2, %v4663_v57  ;;  %v877_v51 = vmul.f32 0.2, %v4541_v36  ;;  %vm815_vm5 = vcmp.ge.f32.partialorder %v4415_v28, 0.0 }
 0x17e   :  { %v878_v44 = vmul.f32 0.2, %v4544_v6  ;;  %1330 = vmax.xlane.f32.xlu0 %v1329_v40  ;;  %vm816_vm10 = vcmp.ge.f32.partialorder %v4420_v41, 0.0  ;;  %v879_v15 = vmul.f32 0.2, %v4415_v28  ;;  %vm817_vm1 = vcmp.ge.f32.partialorder %v4581_v61, 0.0 }
 0x17f   :  { %v880_v43 = vmul.f32 0.2, %v4420_v41  ;;  %1333 = vmax.xlane.f32.xlu1 %v1332_v10  ;;  %v941_v35 = vsel %vm813_vm8, %v4541_v36, %v877_v51  ;;  %vm818_vm13 = vcmp.ge.f32.partialorder %v4588_v29, 0.0  ;;  %v881_v16 = vmul.f32 0.2, %v4581_v61  ;;  %v4978_v2 = vld [vmem:[#allocation2 + $0xa0] sm:$0xff] }
 0x180   :  { %v942_v14 = vsel %vm814_vm9, %v4544_v6, %v878_v44  ;;  %v4686_v26 = vsel %vm1149_vm4, %v941_v35, -1e+30  ;;  %vm6052_vm15 = vcmp.gt.f32.partialorder %v4091_v49, 0.0  ;;  %v943_v8 = vsel %vm815_vm5, %v4415_v28, %v879_v15  ;;  %v4930_v35 = vld [vmem:[#allocation2 + $0x70] sm:$0xff]  ;;  %v4999_v22 = vld [vmem:[#allocation2 + $0xb8] sm:$0xff] }
 0x181   :  { %6051 = vst [vmem:[#allocation57_spill] sm:$0xff] %v4686_v26  ;;  %v4690_v30 = vsel %vm6052_vm15, %v942_v14, -1e+30  ;;  %v944_v63 = vsel %vm816_vm10, %v4420_v41, %v880_v43  ;;  %v4698_v6 = vsel %vm1151_vm11, %v943_v8, -1e+30  ;;  %v945_v28 = vsel %vm817_vm1, %v4581_v61, %v881_v16  ;;  %v4816_v43 = vld [vmem:[#allocation2 + $0x10] sm:$0xff] }
 0x182   :  { %6053 = vst [vmem:[#allocation58_spill] sm:$0xff] %v4690_v30  ;;  %v1335_v36 = vmax.f32 %v4686_v26, %v4690_v30  ;;  %6054 = vst [vmem:[#allocation59_spill] sm:$0xff] %v4698_v6  ;;  %v4702_v48 = vsel %vm1152_vm2, %v944_v63, -1e+30  ;;  %v882_v60 = vmul.f32 0.2, %v4588_v29 }
 0x183   :  { %6055 = vst [vmem:[#allocation60_spill] sm:$0xff] %v4702_v48  ;;  %v1338_v49 = vmax.f32 %v4698_v6, %v4702_v48  ;;  %vm6056_vm4 = vcmp.ge.f32.partialorder %v4407_v62, 0.0  ;;  %vm6057_vm11 = vcmp.ge.f32.partialorder %v4410_v34, 0.0  ;;  %v4719_v32 = vsel %vm1153_vm3, %v945_v28, -1e+30  ;;  %v4826_v8 = vld [vmem:[#allocation2 + $0x18] sm:$0xff] }
 0x184   :  { %v947_v41 = vsel %vm6056_vm4, %v4407_v62, %v4441_v21  ;;  %v948_v18 = vsel %vm6057_vm11, %v4410_v34, %v4444_v20  ;;  %1336 = vmax.xlane.f32.xlu0 %v1335_v36  ;;  %v946_v37 = vsel %vm818_vm13, %v4588_v29, %v882_v60  ;;  %6058 = vst [vmem:[#allocation61_spill] sm:$0xff] %v4719_v32  ;;  %vm6059_vm2 = vcmp.gt.f32.partialorder %v6046_v52, 0.0  ;;  %v4909_v28 = vld [vmem:[#allocation2 + $0x60] sm:$0xff]  ;;  %v4962_v6 = vld [vmem:[#allocation2 + $0x90] sm:$0xff]  ;;  %v4980_v30 = vld [vmem:[#allocation2 + $0xa8] sm:$0xff] }
 0x185   :  { %v4723_v61 = vsel %vm6059_vm2, %v947_v41, -1e+30  ;;  %vm6061_vm8 = vcmp.gt.f32.partialorder %v4112_v59, 0.0  ;;  %1339 = vmax.xlane.f32.xlu1 %v1338_v49  ;;  %v4731_v62 = vsel %vm1154_vm7, %v946_v37, -1e+30  ;;  %vm821_vm9 = vcmp.ge.f32.partialorder %v4630_v3, 0.0 }
 0x186   :  { %6060 = vst [vmem:[#allocation62_spill] sm:$0xff] %v4723_v61  ;;  %v4727_v40 = vsel %vm6061_vm8, %v948_v18, -1e+30  ;;  %6063 = vst [vmem:[#allocation64_spill] sm:$0xff] %v4731_v62  ;;  %vm822_vm5 = vcmp.ge.f32.partialorder %v758_v25, 0.0  ;;  %vm1158_vm15 = vcmp.gt.f32.partialorder %v4165_v12, 0.0  ;;  %v1341_v42 = vmax.f32 %v4719_v32, %v4731_v62 }
 0x187   :  { %6062 = vst [vmem:[#allocation63_spill] sm:$0xff] %v4727_v40  ;;  %v885_v34 = vmul.f32 0.2, %v4630_v3  ;;  %v886_v21 = vmul.f32 0.2, %v758_v25  ;;  %v951_v59 = vsel %vm823_vm0, %v4452_v58, %v4478_v31  ;;  %v1344_v7 = vmax.f32 %v4723_v61, %v4727_v40  ;;  %v4811_v12 = vld [vmem:[#allocation2 + $0x8] sm:$0xff] }
 0x188   :  { %v952_v20 = vsel %vm824_vm14, %v4455_v13, %v4483_v4  ;;  %1342 = vmax.xlane.f32.xlu0 %v1341_v42  ;;  %v4751_v10 = vsel %vm1159_vm6, %v951_v59, -1e+30  ;;  %v3531_v58 = vmov 0.0   ;;  %vm6066_vm0 = vcmask 7168   ;;  %v4801_v4 = vld [vmem:[#allocation2] sm:$0xff]  ;;  %v4846_v37 = vld [vmem:[#allocation2 + $0x28] sm:$0xff] }
 0x189   :  { %v949_v29 = vsel %vm821_vm9, %v4630_v3, %v885_v34  ;;  %v950_v52 = vsel %vm822_vm5, %v758_v25, %v886_v21  ;;  %6064 = vst [vmem:[#allocation65_spill] sm:$0xff] %v4751_v10  ;;  %v4755_v51 = vsel %vm1160_vm12, %v952_v20, -1e+30  ;;  %65 = vst.msk [vmem:[#allocation3 + $0x8] sm:$0xff] %vm6066_vm0, %v3531_v58  ;;  %1345 = vmax.xlane.f32.xlu1 %v1344_v7  ;;  %v4836_v49 = vld [vmem:[#allocation2 + $0x20] sm:$0xff]  ;;  %v4856_v59 = vld [vmem:[#allocation2 + $0x30] sm:$0xff] }
 0x18a   :  { %6065 = vst [vmem:[#allocation66_spill] sm:$0xff] %v4755_v51  ;;  %vm6067_vm7 = vmmov %vm6066_vm0  ;;  %v4795_v45 = vsel %vm1158_vm15, %v950_v52, -1e+30  ;;  %v1350_v31 = vmax.f32 %v4751_v10, %v4755_v51  ;;  %v4866_v52 = vld [vmem:[#allocation2 + $0x38] sm:$0xff] }
 0x18b   :  { %64 = vst.msk [vmem:[#allocation3] sm:$0xff] %vm6067_vm7, %v3531_v58  ;;  %vm6068_vm3 = vmmov %vm6066_vm0  ;;  %v4932_v51 = vld [vmem:[#allocation2 + $0x78] sm:$0xff] }
 0x18c   :  { %66 = vst.msk [vmem:[#allocation3 + $0x10] sm:$0xff] %vm6068_vm3, %v3531_v58  ;;  %vm6069_vm14 = vmmov %vm6066_vm0  ;;  %v4967_v62 = vld [vmem:[#allocation2 + $0x98] sm:$0xff] }
 0x18d   :  { %67 = vst.msk [vmem:[#allocation3 + $0x18] sm:$0xff] %vm6069_vm14, %v3531_v58  ;;  %vm6070_vm10 = vmmov %vm6066_vm0  ;;  %1351 = vmax.xlane.f32.xlu1 %v1350_v31 }
 0x18e   :  { %68 = vst.msk [vmem:[#allocation3 + $0x20] sm:$0xff] %vm6070_vm10, %v3531_v58  ;;  %vm6071_vm1 = vmmov %vm6066_vm0 }
 0x18f   :  { %69 = vst.msk [vmem:[#allocation3 + $0x28] sm:$0xff] %vm6071_vm1, %v3531_v58  ;;  %vm6072_vm13 = vmmov %vm6066_vm0 }
 0x190   :  { %70 = vst.msk [vmem:[#allocation3 + $0x30] sm:$0xff] %vm6072_vm13, %v3531_v58  ;;  %vm6073_vm6 = vmmov %vm6066_vm0 }
 0x191   :  { %71 = vst.msk [vmem:[#allocation3 + $0x38] sm:$0xff] %vm6073_vm6, %v3531_v58  ;;  %vm6074_vm4 = vmmov %vm6066_vm0 }
 0x192   :  { %72 = vst.msk [vmem:[#allocation3 + $0x40] sm:$0xff] %vm6074_vm4, %v3531_v58  ;;  %vm6075_vm12 = vmmov %vm6066_vm0 }
 0x193   :  { %73 = vst.msk [vmem:[#allocation3 + $0x48] sm:$0xff] %vm6075_vm12, %v3531_v58  ;;  %vm6076_vm11 = vmmov %vm6066_vm0 }
 0x194   :  { %74 = vst.msk [vmem:[#allocation3 + $0x50] sm:$0xff] %vm6076_vm11, %v3531_v58  ;;  %vm6077_vm2 = vmmov %vm6066_vm0 }
 0x195   :  { %75 = vst.msk [vmem:[#allocation3 + $0x58] sm:$0xff] %vm6077_vm2, %v3531_v58  ;;  %vm6078_vm8 = vmmov %vm6066_vm0 }
 0x196   :  { %76 = vst.msk [vmem:[#allocation3 + $0x60] sm:$0xff] %vm6078_vm8, %v3531_v58  ;;  %vm6079_vm9 = vmmov %vm6066_vm0 }
 0x197   :  { %77 = vst.msk [vmem:[#allocation3 + $0x68] sm:$0xff] %vm6079_vm9, %v3531_v58  ;;  %vm6080_vm5 = vmmov %vm6066_vm0 }
 0x198   :  { %78 = vst.msk [vmem:[#allocation3 + $0x70] sm:$0xff] %vm6080_vm5, %v3531_v58  ;;  %vm6081_vm7 = vmmov %vm6066_vm0 }
 0x199   :  { %79 = vst.msk [vmem:[#allocation3 + $0x78] sm:$0xff] %vm6066_vm0, %v3531_v58  ;;  %vm6082_vm3 = vmmov %vm6066_vm0 }
 0x19a   :  { %80 = vst.msk [vmem:[#allocation3 + $0x80] sm:$0xff] %vm6081_vm7, %v3531_v58  ;;  %vm6083_vm14 = vmmov %vm6066_vm0 }
 0x19b   :  { %81 = vst.msk [vmem:[#allocation3 + $0x88] sm:$0xff] %vm6082_vm3, %v3531_v58  ;;  %vm6084_vm10 = vmmov %vm6066_vm0  ;;  %vm6096_vm3 = vcmp.gt.f32.partialorder %v4149_v47, 0.0 }
 0x19c   :  { %82 = vst.msk [vmem:[#allocation3 + $0x90] sm:$0xff] %vm6083_vm14, %v3531_v58  ;;  %vm6085_vm1 = vmmov %vm6066_vm0  ;;  %v4791_v19 = vsel %vm6096_vm3, %v949_v29, -1e+30 }
 0x19d   :  { %83 = vst.msk [vmem:[#allocation3 + $0x98] sm:$0xff] %vm6084_vm10, %v3531_v58  ;;  %vm6086_vm13 = vmmov %vm6066_vm0  ;;  %v1347_v13 = vmax.f32 %v4791_v19, %v4795_v45 }
 0x19e   :  { %84 = vst.msk [vmem:[#allocation3 + $0xa0] sm:$0xff] %vm6085_vm1, %v3531_v58  ;;  %vm6087_vm6 = vmmov %vm6066_vm0 }
 0x19f   :  { %85 = vst.msk [vmem:[#allocation3 + $0xa8] sm:$0xff] %vm6086_vm13, %v3531_v58  ;;  %vm6088_vm4 = vmmov %vm6066_vm0  ;;  %1348 = vmax.xlane.f32.xlu0 %v1347_v13 }
 0x1a0   :  { %86 = vst.msk [vmem:[#allocation3 + $0xb0] sm:$0xff] %vm6087_vm6, %v3531_v58  ;;  %vm6089_vm12 = vmmov %vm6066_vm0 }
 0x1a1   :  { %87 = vst.msk [vmem:[#allocation3 + $0xb8] sm:$0xff] %vm6088_vm4, %v3531_v58  ;;  %vm6090_vm11 = vmmov %vm6066_vm0 }
 0x1a2   :  { %88 = vst.msk [vmem:[#allocation3 + $0xc0] sm:$0xff] %vm6089_vm12, %v3531_v58  ;;  %vm6091_vm2 = vmmov %vm6066_vm0 }
 0x1a3   :  { %89 = vst.msk [vmem:[#allocation3 + $0xc8] sm:$0xff] %vm6090_vm11, %v3531_v58  ;;  %vm6092_vm8 = vmmov %vm6066_vm0 }
 0x1a4   :  { %90 = vst.msk [vmem:[#allocation3 + $0xd0] sm:$0xff] %vm6091_vm2, %v3531_v58  ;;  %vm6093_vm9 = vmmov %vm6066_vm0 }
 0x1a5   :  { %91 = vst.msk [vmem:[#allocation3 + $0xd8] sm:$0xff] %vm6092_vm8, %v3531_v58  ;;  %vm6094_vm5 = vmmov %vm6066_vm0 }
 0x1a6   :  { %92 = vst.msk [vmem:[#allocation3 + $0xe0] sm:$0xff] %vm6093_vm9, %v3531_v58  ;;  %vm6095_vm7 = vmmov %vm6066_vm0 }
 0x1a7   :  { %93 = vst.msk [vmem:[#allocation3 + $0xe8] sm:$0xff] %vm6094_vm5, %v3531_v58  ;;  %6097 = vst [vmem:[#allocation67_spill] sm:$0xff] %v4791_v19  ;;  %v4954_v19 = vld [vmem:[#allocation2 + $0x88] sm:$0xff] }
 0x1a8   :  { %94 = vst.msk [vmem:[#allocation3 + $0xf0] sm:$0xff] %vm6066_vm0, %v3531_v58  ;;  %6098 = vst [vmem:[#allocation68_spill] sm:$0xff] %v4795_v45 }
 0x1a9   :  { %95 = vst.msk [vmem:[#allocation3 + $0xf8] sm:$0xff] %vm6095_vm7, %v3531_v58  ;;  %vm6099_vm15 = vmmov %vm6066_vm0  ;;  %v4893_v58 = vld [vmem:[#allocation2 + $0x58] sm:$0xff] }
 0x1aa   :  { %vm6100_vm14 = vmmov %vm6066_vm0 }
 0x1ab   :  { %vm6101_vm10 = vmmov %vm6066_vm0 }
 0x1ac   :  { %vm6102_vm1 = vmmov %vm6066_vm0 }
 0x1ad   :  { %vm6103_vm13 = vmmov %vm6066_vm0 }
 0x1ae   :  { %vm6104_vm6 = vmmov %vm6066_vm0 }
 0x1af   :  { %vm6105_vm4 = vmmov %vm6066_vm0 }
 0x1b0   :  { %vm6106_vm12 = vmmov %vm6066_vm0 }
 0x1b1   :  { %vm6107_vm11 = vmmov %vm6066_vm0 }
 0x1b2   :  { %vm6108_vm2 = vmmov %vm6066_vm0 }
 0x1b3   :  { %vm6109_vm8 = vmmov %vm6066_vm0 }
 0x1b4   :  { %v1259_v3 = vpop.xlane.xlu1 %1258  ;;  %vm6110_vm9 = vmmov %vm6066_vm0 }
 0x1b5   :  { %v4804_v25 = vmax.f32 %v4801_v4, %v1259_v3  ;;  %v4876_v3 = vld [vmem:[#allocation2 + $0x40] sm:$0xff]  ;;  %vm6111_vm5 = vmmov %vm6066_vm0 }
 0x1b6   :  { %vm6112_vm7 = vmmov %vm6066_vm0 }
 0x1b7   :  { %2539 = vst.msk [vmem:[#allocation2] sm:$0xff] %vm6099_vm15, %v4804_v25  ;;  %1483 = vperm.xlu0 %3255, %v4804_v25   ;;  %vm6113_vm3 = vmmov %vm6066_vm0  ;;  %v6125_v33 = vsub.f32 %v4801_v4, %v4804_v25 }
 0x1b8   :  { %vm6114_vm15 = vmmov %vm6066_vm0 }
 0x1b9   :  { %v1262_v44 = vpop.xlane.xlu0 %1261  ;;  %v1417_v55 = vmul.f32 1.442695, %v6125_v33 }
 0x1ba   :  { %v4814_v15 = vmax.f32 %v4811_v12, %v1262_v44  ;;  %v4878_v44 = vld [vmem:[#allocation2 + $0x48] sm:$0xff] }
 0x1bc   :  { %2540 = vst.msk [vmem:[#allocation2 + $0x8] sm:$0xff] %vm6100_vm14, %v4814_v15  ;;  %1488 = vperm.xlu1 %3256, %v4814_v15   ;;  %vm6115_vm14 = vmmov %vm6066_vm0 }
 0x1bd   :  { %v1265_v14 = vpop.xlane.xlu0 %1264 }
 0x1be   :  { %v4824_v16 = vmax.f32 %v4816_v43, %v1265_v14 }
 0x1c0   :  { %2541 = vst.msk [vmem:[#allocation2 + $0x10] sm:$0xff] %vm6101_vm10, %v4824_v16  ;;  %1493 = vperm.xlu1 %3256, %v4824_v16   ;;  %vm6116_vm10 = vmmov %vm6066_vm0  ;;  %v6127_v33 = vsub.f32 %v4816_v43, %v4824_v16  ;;  %v5067_v43 = vld [vmem:[#allocation2 + $0xf0] sm:$0xff]  ;;  %v5072_v16 = vld [vmem:[#allocation2 + $0xf8] sm:$0xff] }
 0x1c1   :  { %v1268_v36 = vpop.xlane.xlu1 %1267 }
 0x1c2   :  { %v4834_v60 = vmax.f32 %v4826_v8, %v1268_v36  ;;  %v1421_v4 = vmul.f32 1.442695, %v6127_v33 }
 0x1c4   :  { %2542 = vst.msk [vmem:[#allocation2 + $0x18] sm:$0xff] %vm6102_vm1, %v4834_v60  ;;  %1498 = vperm.xlu0 %3255, %v4834_v60   ;;  %vm6117_vm1 = vmmov %vm6066_vm0  ;;  %v6129_v25 = vsub.f32 %v4826_v8, %v4834_v60 }
 0x1c5   :  { %v1271_v41 = vpop.xlane.xlu0 %1270 }
 0x1c6   :  { %v4844_v18 = vmax.f32 %v4836_v49, %v1271_v41 }
 0x1c8   :  { %2543 = vst.msk [vmem:[#allocation2 + $0x20] sm:$0xff] %vm6103_vm13, %v4844_v18  ;;  %1503 = vperm.xlu1 %3256, %v4844_v18   ;;  %vm6118_vm13 = vmmov %vm6066_vm0 }
 0x1c9   :  { %v1274_v34 = vpop.xlane.xlu1 %1273 }
 0x1ca   :  { %v4854_v21 = vmax.f32 %v4846_v37, %v1274_v34 }
 0x1cc   :  { %2544 = vst.msk [vmem:[#allocation2 + $0x28] sm:$0xff] %vm6104_vm6, %v4854_v21  ;;  %1508 = vperm.xlu0 %3255, %v4854_v21   ;;  %vm6119_vm6 = vmmov %vm6066_vm0  ;;  %v6132_v33 = vsub.f32 %v4846_v37, %v4854_v21  ;;  %v6170_v21 = vld [vmem:[#allocation42_spill] sm:$0xff] }
 0x1cd   :  { %v1277_v20 = vpop.xlane.xlu0 %1276 }
 0x1ce   :  { %v4864_v29 = vmax.f32 %v4856_v59, %v1277_v20 }
 0x1d0   :  { %2545 = vst.msk [vmem:[#allocation2 + $0x30] sm:$0xff] %vm6105_vm4, %v4864_v29  ;;  %1513 = vperm.xlu1 %3256, %v4864_v29   ;;  %vm6120_vm4 = vmmov %vm6066_vm0 }
 0x1d2   :  { %v1280_v13 = vpop.xlane.xlu1 %1279 }
 0x1d3   :  { %v4874_v31 = vmax.f32 %v4866_v52, %v1280_v13  ;;  %v4891_v13 = vld [vmem:[#allocation2 + $0x50] sm:$0xff] }
 0x1d5   :  { %2546 = vst.msk [vmem:[#allocation2 + $0x38] sm:$0xff] %vm6106_vm12, %v4874_v31  ;;  %1518 = vperm.xlu0 %3255, %v4874_v31   ;;  %vm6121_vm12 = vmmov %vm6066_vm0 }
 0x1d6   :  { %v1283_v36 = vpop.xlane.xlu0 %1282 }
 0x1d7   :  { %v1286_v41 = vpop.xlane.xlu1 %1285  ;;  %v4886_v34 = vmax.f32 %v4876_v3, %v1283_v36 }
 0x1d8   :  { %v4889_v20 = vmax.f32 %v4878_v44, %v1286_v41 }
 0x1d9   :  { %2547 = vst.msk [vmem:[#allocation2 + $0x40] sm:$0xff] %vm6107_vm11, %v4886_v34  ;;  %1523 = vperm.xlu1 %3256, %v4886_v34   ;;  %vm6122_vm11 = vmmov %vm6066_vm0  ;;  %v1393_v37 = vsub.f32 %v4876_v3, %v4886_v34 }
 0x1da   :  { %2548 = vst.msk [vmem:[#allocation2 + $0x48] sm:$0xff] %vm6108_vm2, %v4889_v20  ;;  %1528 = vperm.xlu0 %3255, %v4889_v20   ;;  %vm6123_vm2 = vmmov %vm6066_vm0  ;;  %v6137_v34 = vsub.f32 %v4878_v44, %v4889_v20 }
 0x1db   :  { %v1289_v36 = vpop.xlane.xlu0 %1288  ;;  %v1292_v41 = vpop.xlane.xlu1 %1291 }
 0x1dc   :  { %v4904_v7 = vmax.f32 %v4891_v13, %v1289_v36  ;;  %v4907_v42 = vmax.f32 %v4893_v58, %v1292_v41  ;;  %v4922_v41 = vld [vmem:[#allocation2 + $0x68] sm:$0xff] }
 0x1de   :  { %2549 = vst.msk [vmem:[#allocation2 + $0x50] sm:$0xff] %vm6109_vm8, %v4904_v7  ;;  %1533 = vperm.xlu1 %3256, %v4904_v7   ;;  %1538 = vperm.xlu0 %3255, %v4907_v42   ;;  %vm6126_vm8 = vmmov %vm6066_vm0  ;;  %v1395_v3 = vsub.f32 %v4891_v13, %v4904_v7  ;;  %v6138_v7 = vsub.f32 %v4893_v58, %v4907_v42 }
 0x1df   :  { %2550 = vst.msk [vmem:[#allocation2 + $0x58] sm:$0xff] %vm6110_vm9, %v4907_v42  ;;  %vm6128_vm9 = vmmov %vm6066_vm0 }
 0x1e0   :  { %v1295_v36 = vpop.xlane.xlu0 %1294  ;;  %v1439_v13 = vmul.f32 1.442695, %v6138_v7 }
 0x1e1   :  { %v4920_v63 = vmax.f32 %v4909_v28, %v1295_v36 }
 0x1e3   :  { %2551 = vst.msk [vmem:[#allocation2 + $0x60] sm:$0xff] %vm6111_vm5, %v4920_v63  ;;  %1543 = vperm.xlu1 %3256, %v4920_v63   ;;  %vm6130_vm5 = vmmov %vm6066_vm0 }
 0x1e5   :  { %v1298_v47 = vpop.xlane.xlu1 %1297 }
 0x1e6   :  { %v4928_v14 = vmax.f32 %v4922_v41, %v1298_v47  ;;  %v4949_v47 = vld [vmem:[#allocation2 + $0x80] sm:$0xff] }
 0x1e8   :  { %2552 = vst.msk [vmem:[#allocation2 + $0x68] sm:$0xff] %vm6066_vm0, %v4928_v14  ;;  %1548 = vperm.xlu0 %3255, %v4928_v14   ;;  %v1301_v36 = vpop.xlane.xlu0 %1300  ;;  %v1398_v44 = vsub.f32 %v4922_v41, %v4928_v14 }
 0x1e9   :  { %v4938_v10 = vmax.f32 %v4930_v35, %v1301_v36  ;;  %v1304_v40 = vpop.xlane.xlu1 %1303 }
 0x1ea   :  { %v4941_v61 = vmax.f32 %v4932_v51, %v1304_v40 }
 0x1eb   :  { %2553 = vst.msk [vmem:[#allocation2 + $0x70] sm:$0xff] %vm6112_vm7, %v4938_v10  ;;  %1553 = vperm.xlu1 %3256, %v4938_v10   ;;  %vm6133_vm7 = vmmov %vm6066_vm0 }
 0x1ec   :  { %2554 = vst.msk [vmem:[#allocation2 + $0x78] sm:$0xff] %vm6113_vm3, %v4941_v61  ;;  %1558 = vperm.xlu0 %3255, %v4941_v61   ;;  %vm6135_vm3 = vmmov %vm6066_vm0  ;;  %v1400_v42 = vsub.f32 %v4932_v51, %v4941_v61 }
 0x1ef   :  { %v1307_v45 = vpop.xlane.xlu0 %1306 }
 0x1f0   :  { %v4952_v36 = vmax.f32 %v4949_v47, %v1307_v45 }
 0x1f2   :  { %2555 = vst.msk [vmem:[#allocation2 + $0x80] sm:$0xff] %vm6114_vm15, %v4952_v36  ;;  %1563 = vperm.xlu1 %3256, %v4952_v36   ;;  %vm6216_vm15 = vmmov %vm6066_vm0 }
 0x1f4   :  { %v1310_v40 = vpop.xlane.xlu1 %1309 }
 0x1f5   :  { %v4960_v48 = vmax.f32 %v4954_v19, %v1310_v40 }
 0x1f7   :  { %2556 = vst.msk [vmem:[#allocation2 + $0x88] sm:$0xff] %vm6115_vm14, %v4960_v48  ;;  %1568 = vperm.xlu0 %3255, %v4960_v48   ;;  %vm6217_vm14 = vmmov %vm6066_vm0 }
 0x1f9   :  { %v1313_v45 = vpop.xlane.xlu0 %1312 }
 0x1fa   :  { %v4970_v32 = vmax.f32 %v4962_v6, %v1313_v45 }
 0x1fb   :  { %v1316_v57 = vpop.xlane.xlu1 %1315 }
 0x1fc   :  { %2557 = vst.msk [vmem:[#allocation2 + $0x90] sm:$0xff] %vm6116_vm10, %v4970_v32  ;;  %v4975_v40 = vmax.f32 %v4967_v62, %v1316_v57  ;;  %1573 = vperm.xlu1 %3256, %v4970_v32   ;;  %v4994_v57 = vld [vmem:[#allocation2 + $0xb0] sm:$0xff]  ;;  %vm6218_vm10 = vmmov %vm6066_vm0 }
 0x1fe   :  { %2558 = vst.msk [vmem:[#allocation2 + $0x98] sm:$0xff] %vm6117_vm1, %v4975_v40  ;;  %1578 = vperm.xlu0 %3255, %v4975_v40   ;;  %vm6219_vm1 = vmmov %vm6066_vm0 }
 0x1ff   :  { %v1319_v45 = vpop.xlane.xlu0 %1318 }
 0x200   :  { %v4986_v26 = vmax.f32 %v4978_v2, %v1319_v45  ;;  %v1322_v0 = vpop.xlane.xlu1 %1321 }
 0x201   :  { %v4989_v53 = vmax.f32 %v4980_v30, %v1322_v0 }
 0x202   :  { %2559 = vst.msk [vmem:[#allocation2 + $0xa0] sm:$0xff] %vm6118_vm13, %v4986_v26  ;;  %1583 = vperm.xlu1 %3256, %v4986_v26   ;;  %vm6220_vm13 = vmmov %vm6066_vm0 }
 0x203   :  { %2560 = vst.msk [vmem:[#allocation2 + $0xa8] sm:$0xff] %vm6119_vm6, %v4989_v53  ;;  %1588 = vperm.xlu0 %3255, %v4989_v53   ;;  %vm6221_vm6 = vmmov %vm6066_vm0 }
 0x204   :  { %v1325_v45 = vpop.xlane.xlu0 %1324 }
 0x205   :  { %v5002_v46 = vmax.f32 %v4994_v57, %v1325_v45 }
 0x206   :  { %v1328_v0 = vpop.xlane.xlu1 %1327 }
 0x207   :  { %v5005_v17 = vmax.f32 %v4999_v22, %v1328_v0  ;;  %2561 = vst.msk [vmem:[#allocation2 + $0xb0] sm:$0xff] %vm6120_vm4, %v5002_v46  ;;  %1593 = vperm.xlu1 %3256, %v5002_v46   ;;  %vm6222_vm4 = vmmov %vm6066_vm0 }
 0x209   :  { %2562 = vst.msk [vmem:[#allocation2 + $0xb8] sm:$0xff] %vm6121_vm12, %v5005_v17  ;;  %1598 = vperm.xlu0 %3255, %v5005_v17   ;;  %vm6223_vm12 = vmmov %vm6066_vm0 }
 0x20b   :  { %v1331_v45 = vpop.xlane.xlu0 %1330 }
 0x20c   :  { %v5018_v38 = vmax.f32 %v5010_v39, %v1331_v45  ;;  %v1334_v0 = vpop.xlane.xlu1 %1333  ;;  %v6124_v45 = vsub.f32 %v4811_v12, %v4814_v15  ;;  %v5050_v12 = vld [vmem:[#allocation2 + $0xe8] sm:$0xff]  ;;  %v1423_v15 = vmul.f32 1.442695, %v6129_v25 }
 0x20d   :  { %v5021_v27 = vmax.f32 %v5015_v56, %v1334_v0 }
 0x20e   :  { %2563 = vst.msk [vmem:[#allocation2 + $0xc0] sm:$0xff] %vm6122_vm11, %v5018_v38  ;;  %1603 = vperm.xlu1 %3256, %v5018_v38   ;;  %v1419_v11 = vmul.f32 1.442695, %v6124_v45  ;;  %vm6224_vm11 = vmmov %vm6066_vm0 }
 0x20f   :  { %2564 = vst.msk [vmem:[#allocation2 + $0xc8] sm:$0xff] %vm6123_vm2, %v5021_v27  ;;  %1608 = vperm.xlu0 %3255, %v5021_v27   ;;  %vm6225_vm2 = vmmov %vm6066_vm0 }
 0x210   :  { %3273 = vpow2.f32 %v1419_v11 }
 0x211   :  { %v1337_v0 = vpop.xlane.xlu0 %1336  ;;  %3275 = vpow2.f32 %v1417_v55  ;;  %v6131_v55 = vsub.f32 %v4836_v49, %v4844_v18  ;;  %v6134_v49 = vsub.f32 %v4856_v59, %v4864_v29  ;;  %v1433_v29 = vmul.f32 1.442695, %v1393_v37 }
 0x212   :  { %v5040_v5 = vmax.f32 %v5026_v9, %v1337_v0  ;;  %v1340_v24 = vpop.xlane.xlu1 %1339  ;;  %3277 = vpow2.f32 %v1421_v4 }
 0x213   :  { %v5043_v23 = vmax.f32 %v5031_v1, %v1340_v24  ;;  %v1425_v8 = vmul.f32 1.442695, %v6131_v55  ;;  %3279 = vpow2.f32 %v1423_v15  ;;  %v1429_v18 = vmul.f32 1.442695, %v6134_v49 }
 0x214   :  { %2565 = vst.msk [vmem:[#allocation2 + $0xd0] sm:$0xff] %vm6126_vm8, %v5040_v5  ;;  %1613 = vperm.xlu1 %3256, %v5040_v5   ;;  %v6136_v15 = vsub.f32 %v4866_v52, %v4874_v31  ;;  %vm6226_vm8 = vmmov %vm6066_vm0 }
 0x215   :  { %2566 = vst.msk [vmem:[#allocation2 + $0xd8] sm:$0xff] %vm6128_vm9, %v5043_v23  ;;  %1618 = vperm.xlu0 %3255, %v5043_v23   ;;  %v1343_v24 = vpop.xlane.xlu0 %1342  ;;  %3281 = vpow2.f32 %v1425_v8  ;;  %v1412_v7 = vsub.f32 %v5031_v1, %v5043_v23  ;;  %vm6227_vm9 = vmmov %vm6066_vm0 }
 0x216   :  { %v5062_v45 = vmax.f32 %v5045_v50, %v1343_v24  ;;  %v1346_v0 = vpop.xlane.xlu1 %1345  ;;  %v1427_v24 = vmul.f32 1.442695, %v6132_v33  ;;  %v1431_v55 = vmul.f32 1.442695, %v6136_v15  ;;  %v1437_v33 = vmul.f32 1.442695, %v1395_v3 }
 0x217   :  { %v5065_v11 = vmax.f32 %v5050_v12, %v1346_v0  ;;  %v1403_v15 = vsub.f32 %v4962_v6, %v4970_v32  ;;  %v1406_v32 = vsub.f32 %v4980_v30, %v4989_v53 }
 0x218   :  { %2567 = vst.msk [vmem:[#allocation2 + $0xe0] sm:$0xff] %vm6130_vm5, %v5062_v45  ;;  %1623 = vperm.xlu1 %3256, %v5062_v45   ;;  %3283 = vpow2.f32 %v1427_v24  ;;  %v1397_v24 = vsub.f32 %v4909_v28, %v4920_v63  ;;  %v1399_v63 = vsub.f32 %v4930_v35, %v4938_v10  ;;  %v1443_v28 = vmul.f32 1.442695, %v1398_v44  ;;  %v6140_v44 = vld [vmem:[#allocation16_spill] sm:$0xff]  ;;  %vm6228_vm5 = vmmov %vm6066_vm0 }
 0x219   :  { %2568 = vst.msk [vmem:[#allocation2 + $0xe8] sm:$0xff] %vm6066_vm0, %v5065_v11  ;;  %1628 = vperm.xlu0 %3255, %v5065_v11   ;;  %3285 = vpow2.f32 %v1429_v18  ;;  %v1401_v18 = vsub.f32 %v4949_v47, %v4952_v36  ;;  %v1447_v10 = vmul.f32 1.442695, %v1400_v42  ;;  %v1402_v35 = vsub.f32 %v4954_v19, %v4960_v48 }
 0x21a   :  { %v1352_v0 = vpop.xlane.xlu1 %1351  ;;  %v5105_v8 = vpop.eup %3273  ;;  %3287 = vpow2.f32 %v1431_v55  ;;  %v1441_v49 = vmul.f32 1.442695, %v1397_v24  ;;  %v1445_v41 = vmul.f32 1.442695, %v1399_v63  ;;  %v1404_v36 = vsub.f32 %v4967_v62, %v4975_v40 }
 0x21b   :  { %v5087_v4 = vmax.f32 %v5072_v16, %v1352_v0  ;;  %v5107_v59 = vpop.eup %3275  ;;  %3289 = vpow2.f32 %v1433_v29  ;;  %v1449_v51 = vmul.f32 1.442695, %v1401_v18  ;;  %v1451_v47 = vmul.f32 1.442695, %v1402_v35  ;;  %v6141_v35 = vld [vmem:[#allocation19_spill] sm:$0xff] }
 0x21c   :  { %v5116_v52 = vpop.eup %3277  ;;  %v1453_v19 = vmul.f32 1.442695, %v1403_v15  ;;  %v1405_v29 = vsub.f32 %v4978_v2, %v4986_v26  ;;  %v1455_v6 = vmul.f32 1.442695, %v1404_v36  ;;  %v1459_v2 = vmul.f32 1.442695, %v1406_v32 }
 0x21d   :  { %2570 = vst.msk [vmem:[#allocation2 + $0xf8] sm:$0xff] %vm6135_vm3, %v5087_v4  ;;  %1638 = vperm.xlu0 %3255, %v5087_v4   ;;  %v5118_v31 = vpop.eup %3279  ;;  %v1408_v26 = vsub.f32 %v4999_v22, %v5005_v17  ;;  %v1411_v17 = vsub.f32 %v5026_v9, %v5040_v5  ;;  %v1413_v23 = vsub.f32 %v5045_v50, %v5062_v45  ;;  %v6142_v15 = vld [vmem:[#allocation20_spill] sm:$0xff]  ;;  %v6144_v32 = vld [vmem:[#allocation21_spill] sm:$0xff]  ;;  %vm6230_vm3 = vmmov %vm6066_vm0 }
 0x21e   :  { %v1457_v40 = vmul.f32 1.442695, %v1405_v29  ;;  %v1414_v42 = vsub.f32 %v5050_v12, %v5065_v11 }
 0x21f   :  { %v5129_v20 = vpop.eup %3281  ;;  %v1469_v5 = vmul.f32 1.442695, %v1411_v17  ;;  %v1473_v45 = vmul.f32 1.442695, %v1413_v23 }
 0x221   :  { %2092 = vperm.xlu0 %3255, %v5107_v59  }
 0x222   :  { %v5131_v0 = vpop.eup %3283 }
 0x223   :  { %v5139_v58 = vpop.eup %3285 }
 0x224   :  { %v5141_v14 = vpop.eup %3287 }
 0x225   :  { %2107 = vperm.xlu0 %3255, %v5118_v31   ;;  %v5149_v37 = vpop.eup %3289 }
 0x229   :  { %2117 = vperm.xlu0 %3255, %v5131_v0  }
 0x22c   :  { %v1349_v60 = vpop.xlane.xlu0 %1348 }
 0x22d   :  { %v5084_v25 = vmax.f32 %v5067_v43, %v1349_v60  ;;  %v1435_v60 = vmul.f32 1.442695, %v6137_v34  ;;  %2127 = vperm.xlu0 %3255, %v5141_v14   ;;  %v1407_v34 = vsub.f32 %v4994_v57, %v5002_v46  ;;  %v1463_v46 = vmul.f32 1.442695, %v1408_v26 }
 0x22e   :  { %v1410_v57 = vsub.f32 %v5015_v56, %v5021_v27  ;;  %v6139_v27 = vld [vmem:[#allocation15_spill] sm:$0xff] }
 0x22f   :  { %2569 = vst.msk [vmem:[#allocation2 + $0xf0] sm:$0xff] %vm6133_vm7, %v5084_v25  ;;  %1633 = vperm.xlu1 %3256, %v5084_v25   ;;  %3291 = vpow2.f32 %v1435_v60  ;;  %v1461_v30 = vmul.f32 1.442695, %v1407_v34  ;;  %v1415_v50 = vsub.f32 %v5067_v43, %v5084_v25  ;;  %v6145_v34 = vld [vmem:[#allocation23_spill] sm:$0xff]  ;;  %vm6229_vm7 = vmmov %vm6066_vm0 }
 0x230   :  { %3293 = vpow2.f32 %v1437_v33  ;;  %v1409_v33 = vsub.f32 %v5010_v39, %v5018_v38 }
 0x231   :  { %3295 = vpow2.f32 %v1439_v13  ;;  %v1467_v13 = vmul.f32 1.442695, %v1410_v57  ;;  %v1477_v43 = vmul.f32 1.442695, %v1415_v50  ;;  %v6147_v57 = vld [vmem:[#allocation24_spill] sm:$0xff] }
 0x232   :  { %3297 = vpow2.f32 %v1441_v49  ;;  %v1465_v38 = vmul.f32 1.442695, %v1409_v33 }
 0x233   :  { %2097 = vperm.xlu1 %3256, %v5105_v8   ;;  %3299 = vpow2.f32 %v1443_v28  ;;  %v1471_v28 = vmul.f32 1.442695, %v1412_v7  ;;  %v6148_v7 = vld [vmem:[#allocation25_spill] sm:$0xff] }
 0x234   :  { %3301 = vpow2.f32 %v1445_v41 }
 0x235   :  { %3303 = vpow2.f32 %v1447_v10 }
 0x236   :  { %3305 = vpow2.f32 %v1449_v51  ;;  %v1484_v39 = vpop.permute.xlu0 %1483 }
 0x237   :  { %2102 = vperm.xlu1 %3256, %v5116_v52   ;;  %3307 = vpow2.f32 %v1451_v47  ;;  %v1641_v56 = vsub.f32 %v6139_v27, %v1484_v39  ;;  %v1642_v49 = vsub.f32 %v6140_v44, %v1484_v39 }
 0x238   :  { %3309 = vpow2.f32 %v1453_v19  ;;  %v1475_v19 = vmul.f32 1.442695, %v1414_v42 }
 0x239   :  { %v5151_v61 = vpop.eup %3291  ;;  %3311 = vpow2.f32 %v1455_v6  ;;  %v1705_v1 = vmul.f32 1.442695, %v1641_v56  ;;  %v1707_v41 = vmul.f32 1.442695, %v1642_v49 }
 0x23a   :  { %2137 = vperm.xlu0 %3255, %v5151_v61   ;;  %v5159_v55 = vpop.eup %3293  ;;  %3313 = vpow2.f32 %v1457_v40 }
 0x23b   :  { %2112 = vperm.xlu1 %3256, %v5129_v20   ;;  %v5161_v48 = vpop.eup %3295  ;;  %3315 = vpow2.f32 %v1459_v2  ;;  %v1489_v18 = vpop.permute.xlu1 %1488 }
 0x23c   :  { %v5169_v3 = vpop.eup %3297  ;;  %3317 = vpow2.f32 %v1461_v30  ;;  %v1643_v51 = vsub.f32 %v6141_v35, %v1489_v18  ;;  %v1644_v47 = vsub.f32 %v6142_v15, %v1489_v18 }
 0x23d   :  { %v5171_v62 = vpop.eup %3299  ;;  %3319 = vpow2.f32 %v1463_v46 }
 0x23e   :  { %2147 = vperm.xlu0 %3255, %v5161_v48   ;;  %v5179_v60 = vpop.eup %3301  ;;  %3321 = vpow2.f32 %v1465_v38  ;;  %v1709_v12 = vmul.f32 1.442695, %v1643_v51  ;;  %v1711_v11 = vmul.f32 1.442695, %v1644_v47 }
 0x23f   :  { %2122 = vperm.xlu1 %3256, %v5139_v58   ;;  %v5181_v53 = vpop.eup %3303  ;;  %3323 = vpow2.f32 %v1467_v13  ;;  %v1494_v29 = vpop.permute.xlu1 %1493 }
 0x240   :  { %v5189_v24 = vpop.eup %3305  ;;  %3325 = vpow2.f32 %v1469_v5  ;;  %v1645_v40 = vsub.f32 %v6144_v32, %v1494_v29  ;;  %v1646_v2 = vsub.f32 %v6145_v34, %v1494_v29 }
 0x241   :  { %v5193_v22 = vpop.eup %3307  ;;  %3327 = vpow2.f32 %v1471_v28  ;;  %v6152_v28 = vld [vmem:[#allocation26_spill] sm:$0xff] }
 0x242   :  { %2157 = vperm.xlu0 %3255, %v5171_v62   ;;  %v5201_v63 = vpop.eup %3309  ;;  %3329 = vpow2.f32 %v1705_v1  ;;  %v1713_v25 = vmul.f32 1.442695, %v1645_v40  ;;  %v1715_v30 = vmul.f32 1.442695, %v1646_v2 }
 0x243   :  { %2132 = vperm.xlu1 %3256, %v5149_v37   ;;  %v5203_v9 = vpop.eup %3311  ;;  %3331 = vpow2.f32 %v1707_v41  ;;  %v1499_v33 = vpop.permute.xlu0 %1498  ;;  %v6153_v41 = vld [vmem:[#allocation27_spill] sm:$0xff] }
 0x244   :  { %v5211_v10 = vpop.eup %3313  ;;  %3333 = vpow2.f32 %v1709_v12  ;;  %v1647_v17 = vsub.f32 %v6147_v57, %v1499_v33  ;;  %v1648_v38 = vsub.f32 %v6148_v7, %v1499_v33  ;;  %v6159_v57 = vld [vmem:[#allocation30_spill] sm:$0xff] }
 0x245   :  { %v5215_v36 = vpop.eup %3315  ;;  %3335 = vpow2.f32 %v1711_v11  ;;  %v6156_v11 = vld [vmem:[#allocation29_spill] sm:$0xff] }
 0x246   :  { %2167 = vperm.xlu0 %3255, %v5181_v53   ;;  %6143 = vst [vmem:[#allocation15_spill] sm:$0xff] %v5215_v36  ;;  %v5221_v6 = vpop.eup %3317  ;;  %3337 = vpow2.f32 %v1473_v45  ;;  %v1717_v27 = vmul.f32 1.442695, %v1647_v17  ;;  %v1719_v56 = vmul.f32 1.442695, %v1648_v38  ;;  %v6155_v45 = vld [vmem:[#allocation28_spill] sm:$0xff] }
 0x247   :  { %2142 = vperm.xlu1 %3256, %v5159_v55   ;;  %v5225_v26 = vpop.eup %3319  ;;  %3339 = vpow2.f32 %v1475_v19  ;;  %v1504_v49 = vpop.permute.xlu1 %1503 }
 0x248   :  { %6146 = vst [vmem:[#allocation16_spill] sm:$0xff] %v5225_v26  ;;  %v5229_v46 = vpop.eup %3321  ;;  %3341 = vpow2.f32 %v1477_v43  ;;  %v1649_v23 = vsub.f32 %v6152_v28, %v1504_v49  ;;  %v1650_v18 = vsub.f32 %v6153_v41, %v1504_v49  ;;  %v6160_v41 = vld [vmem:[#allocation33_spill] sm:$0xff] }
 0x249   :  { %v5233_v39 = vpop.eup %3323  ;;  %3343 = vpow2.f32 %v1713_v25 }
 0x24a   :  { %2177 = vperm.xlu0 %3255, %v5193_v22   ;;  %6149 = vst [vmem:[#allocation19_spill] sm:$0xff] %v5233_v39  ;;  %v5236_v13 = vpop.eup %3325  ;;  %3345 = vpow2.f32 %v1715_v30  ;;  %v1721_v51 = vmul.f32 1.442695, %v1649_v23  ;;  %v1723_v40 = vmul.f32 1.442695, %v1650_v18  ;;  %v6161_v18 = vld [vmem:[#allocation34_spill] sm:$0xff] }
 0x24b   :  { %2152 = vperm.xlu1 %3256, %v5169_v3   ;;  %6150 = vst [vmem:[#allocation20_spill] sm:$0xff] %v5236_v13  ;;  %v5239_v44 = vpop.eup %3327  ;;  %3347 = vpow2.f32 %v1717_v27  ;;  %v1509_v15 = vpop.permute.xlu0 %1508 }
 0x24c   :  { %6151 = vst [vmem:[#allocation21_spill] sm:$0xff] %v5239_v44  ;;  %v5241_v5 = vpop.eup %3329  ;;  %3349 = vpow2.f32 %v1719_v56  ;;  %v1651_v12 = vsub.f32 %v6155_v45, %v1509_v15  ;;  %v1652_v19 = vsub.f32 %v6156_v11, %v1509_v15 }
 0x24d   :  { %v5244_v1 = vpop.eup %3331  ;;  %3351 = vpow2.f32 %v1721_v51 }
 0x24e   :  { %2187 = vperm.xlu0 %3255, %v5203_v9   ;;  %v5247_v42 = vpop.eup %3333  ;;  %v1725_v34 = vmul.f32 1.442695, %v1651_v12  ;;  %v1727_v2 = vmul.f32 1.442695, %v1652_v19  ;;  %v6162_v19 = vld [vmem:[#allocation31_spill] sm:$0xff] }
 0x24f   :  { %2162 = vperm.xlu1 %3256, %v5179_v60   ;;  %v5251_v35 = vpop.eup %3335  ;;  %v2282_v47 = vpack.c.bf16 %v5247_v42, %v5241_v5  ;;  %v1514_v25 = vpop.permute.xlu1 %1513 }
 0x250   :  { %v5255_v50 = vpop.eup %3337  ;;  %v2283_v29 = vpack.c.bf16 %v5251_v35, %v5244_v1  ;;  %3353 = vpow2.f32 %v1725_v34  ;;  %v1653_v33 = vsub.f32 %v4198_v54, %v1514_v25  ;;  %v1654_v17 = vsub.f32 %v6159_v57, %v1514_v25  ;;  %v6165_v57 = vld [vmem:[#allocation36_spill] sm:$0xff] }
 0x251   :  { %6154 = vst [vmem:[#allocation23_spill] sm:$0xff] %v5255_v50  ;;  %v5261_v32 = vpop.eup %3339  ;;  %3355 = vpow2.f32 %v1727_v2  ;;  %v6164_v2 = vld [vmem:[#allocation35_spill] sm:$0xff] }
 0x252   :  { %2197 = vperm.xlu0 %3255, %v5215_v36   ;;  %6157 = vst [vmem:[#allocation24_spill] sm:$0xff] %v5261_v32  ;;  %2346 = vmatprep.mubr.bf16.mxu0 %v2283_v29  ;;  %v5265_v43 = vpop.eup %3341  ;;  %3357 = vpow2.f32 %v1723_v40  ;;  %v1729_v27 = vmul.f32 1.442695, %v1653_v33  ;;  %v1731_v49 = vmul.f32 1.442695, %v1654_v17  ;;  %v6163_v40 = vld [vmem:[#allocation32_spill] sm:$0xff] }
 0x253   :  { %2172 = vperm.xlu1 %3256, %v5189_v24   ;;  %6158 = vst [vmem:[#allocation25_spill] sm:$0xff] %v5265_v43  ;;  %2347 = vmatmul.mubr.bf16.vlgmr.msra.gmra.mrb[4].mxu0 %v2282_v47  ;;  %v5267_v30 = vpop.eup %3343 }
 0x254   :  { %v5271_v7 = vpop.eup %3345  ;;  %v1519_v28 = vpop.permute.xlu0 %1518  ;;  %3359 = vpow2.f32 %v1729_v27 }
 0x255   :  { %v5274_v38 = vpop.eup %3347  ;;  %v1655_v54 = vsub.f32 %v6160_v41, %v1519_v28  ;;  %v1656_v51 = vsub.f32 %v6161_v18, %v1519_v28  ;;  %3361 = vpow2.f32 %v1731_v49 }
 0x256   :  { %2207 = vperm.xlu0 %3255, %v5225_v26   ;;  %v5276_v56 = vpop.eup %3349  ;;  %v2284_v23 = vpack.c.bf16 %v5274_v38, %v5267_v30 }
 0x257   :  { %2182 = vperm.xlu1 %3256, %v5201_v63   ;;  %v2285_v15 = vpack.c.bf16 %v5276_v56, %v5271_v7  ;;  %v1733_v47 = vmul.f32 1.442695, %v1655_v54  ;;  %v1735_v45 = vmul.f32 1.442695, %v1656_v51  ;;  %v5287_v33 = vpop.eup %3351 }
 0x258   :  { %v1524_v11 = vpop.permute.xlu1 %1523 }
 0x259   :  { %2354 = vmatprep.mubr.bf16.mxu0 %v2285_v15  ;;  %v1529_v12 = vpop.permute.xlu0 %1528  ;;  %3363 = vpow2.f32 %v1733_v47  ;;  %v1657_v25 = vsub.f32 %v6164_v2, %v1524_v11  ;;  %v1658_v17 = vsub.f32 %v6165_v57, %v1524_v11  ;;  %v6166_v47 = vld [vmem:[#allocation38_spill] sm:$0xff]  ;;  %v6167_v11 = vld [vmem:[#allocation40_spill] sm:$0xff] }
 0x25a   :  { %2217 = vperm.xlu0 %3255, %v5233_v39   ;;  %v1659_v29 = vsub.f32 %v6162_v19, %v1529_v12  ;;  %v1660_v34 = vsub.f32 %v6163_v40, %v1529_v12  ;;  %3365 = vpow2.f32 %v1735_v45  ;;  %v5290_v27 = vpop.eup %3353  ;;  %v6168_v40 = vld [vmem:[#allocation37_spill] sm:$0xff]  ;;  %v6174_v39 = vld [vmem:[#allocation48_spill] sm:$0xff] }
 0x25b   :  { %2192 = vperm.xlu1 %3256, %v5211_v10   ;;  %2355 = vmatmul.mubr.bf16.gmra.mrb[8].mxu0 %v2284_v23  ;;  %v1737_v49 = vmul.f32 1.442695, %v1657_v25  ;;  %v5292_v23 = vpop.eup %3355  ;;  %v1739_v54 = vmul.f32 1.442695, %v1658_v17  ;;  %v2286_v45 = vpack.c.bf16 %v5290_v27, %v5287_v33  ;;  %v6169_v25 = vld [vmem:[#allocation39_spill] sm:$0xff] }
 0x25c   :  { %v1741_v28 = vmul.f32 1.442695, %v1659_v29  ;;  %v1743_v41 = vmul.f32 1.442695, %v1660_v34  ;;  %v5294_v15 = vpop.eup %3357 }
 0x25d   :  { %v1539_v18 = vpop.permute.xlu0 %1538  ;;  %v1534_v51 = vpop.permute.xlu1 %1533  ;;  %v2287_v29 = vpack.c.bf16 %v5292_v23, %v5294_v15 }
 0x25e   :  { %2227 = vperm.xlu0 %3255, %v5239_v44   ;;  %3367 = vpow2.f32 %v1741_v28  ;;  %v1664_v12 = vsub.f32 %v6166_v47, %v1539_v18  ;;  %v1662_v19 = vsub.f32 %v6167_v11, %v1534_v51  ;;  %v1663_v34 = vsub.f32 %v6168_v40, %v1539_v18  ;;  %v5304_v47 = vpop.eup %3359 }
 0x25f   :  { %2202 = vperm.xlu1 %3256, %v5221_v6   ;;  %3369 = vpow2.f32 %v1743_v41  ;;  %v1661_v57 = vsub.f32 %v6169_v25, %v1534_v51  ;;  %2362 = vmatprep.mubr.bf16.mxu0 %v2287_v29  ;;  %v6171_v51 = vld [vmem:[#allocation44_spill] sm:$0xff] }
 0x260   :  { %3371 = vpow2.f32 %v1737_v49  ;;  %v1751_v2 = vmul.f32 1.442695, %v1664_v12  ;;  %v1747_v17 = vmul.f32 1.442695, %v1662_v19  ;;  %v1749_v49 = vmul.f32 1.442695, %v1663_v34 }
 0x261   :  { %3373 = vpow2.f32 %v1739_v54  ;;  %v1745_v18 = vmul.f32 1.442695, %v1661_v57  ;;  %v6173_v34 = vld [vmem:[#allocation43_spill] sm:$0xff] }
 0x262   :  { %2237 = vperm.xlu0 %3255, %v5261_v32   ;;  %v1544_v28 = vpop.permute.xlu1 %1543  ;;  %v5307_v32 = vpop.eup %3361  ;;  %3375 = vpow2.f32 %v1751_v2 }
 0x263   :  { %2212 = vperm.xlu1 %3256, %v5229_v46   ;;  %2363 = vmatmul.mubr.bf16.gmra.mrb[12].mxu0 %v2286_v45  ;;  %v1666_v41 = vsub.f32 %v6170_v21, %v1544_v28  ;;  %v5309_v11 = vpop.eup %3363  ;;  %3377 = vpow2.f32 %v1747_v17  ;;  %v6172_v45 = vld [vmem:[#allocation41_spill] sm:$0xff] }
 0x264   :  { %v2288_v21 = vpack.c.bf16 %v5309_v11, %v5304_v47  ;;  %v1665_v40 = vsub.f32 %v6172_v45, %v1544_v28  ;;  %3379 = vpow2.f32 %v1749_v49 }
 0x265   :  { %v1755_v19 = vmul.f32 1.442695, %v1666_v41  ;;  %3381 = vpow2.f32 %v1745_v18 }
 0x266   :  { %v1753_v49 = vmul.f32 1.442695, %v1665_v40 }
 0x267   :  { %2222 = vperm.xlu1 %3256, %v5236_v13   ;;  %v1549_v54 = vpop.permute.xlu0 %1548  ;;  %3383 = vpow2.f32 %v1755_v19  ;;  %v6175_v13 = vld [vmem:[#allocation46_spill] sm:$0xff]  ;;  %v1900_v19 = vadd.f32 %v5251_v35, %v5247_v42  ;;  %v1903_v42 = vadd.f32 %v5271_v7, %v5267_v30  ;;  %v1909_v30 = vadd.f32 %v5294_v15, %v5287_v33 }
 0x268   :  { %v1668_v12 = vsub.f32 %v6171_v51, %v1549_v54  ;;  %v1667_v25 = vsub.f32 %v6173_v34, %v1549_v54  ;;  %v6177_v34 = vld [vmem:[#allocation47_spill] sm:$0xff] }
 0x26a   :  { %v1759_v44 = vmul.f32 1.442695, %v1668_v12  ;;  %v1554_v57 = vpop.permute.xlu1 %1553  ;;  %v1757_v12 = vmul.f32 1.442695, %v1667_v25 }
 0x26b   :  { %2232 = vperm.xlu1 %3256, %v5255_v50   ;;  %v1559_v41 = vpop.permute.xlu0 %1558  ;;  %v1670_v26 = vsub.f32 %v6175_v13, %v1554_v57 }
 0x26c   :  { %v1672_v50 = vsub.f32 %v6174_v39, %v1559_v41  ;;  %3385 = vpow2.f32 %v1759_v44  ;;  %v6176_v44 = vld [vmem:[#allocation45_spill] sm:$0xff]  ;;  %v1671_v25 = vsub.f32 %v6177_v34, %v1559_v41 }
 0x26d   :  { %v1763_v45 = vmul.f32 1.442695, %v1670_v26  ;;  %3387 = vpow2.f32 %v1753_v49  ;;  %v1669_v40 = vsub.f32 %v6176_v44, %v1554_v57  ;;  %v6178_v26 = vld [vmem:[#allocation50_spill] sm:$0xff] }
 0x26e   :  { %v1767_v39 = vmul.f32 1.442695, %v1672_v50  ;;  %3389 = vpow2.f32 %v1757_v12 }
 0x26f   :  { %2242 = vperm.xlu1 %3256, %v5265_v43   ;;  %v5311_v43 = vpop.eup %3365  ;;  %v1761_v57 = vmul.f32 1.442695, %v1669_v40  ;;  %v6180_v40 = vld [vmem:[#allocation49_spill] sm:$0xff] }
 0x270   :  { %v2289_v29 = vpack.c.bf16 %v5311_v43, %v5307_v32  ;;  %v5319_v2 = vpop.eup %3367  ;;  %3391 = vpow2.f32 %v1767_v39  ;;  %v1897_v39 = vadd.f32 %v5244_v1, %v5241_v5  ;;  %v1915_v5 = vadd.f32 %v5307_v32, %v5304_v47  ;;  %v6182_v1 = vld [vmem:[#allocation11_spill] sm:$0xff] }
 0x271   :  { %v5322_v17 = vpop.eup %3369  ;;  %v1564_v13 = vpop.permute.xlu1 %1563  ;;  %3393 = vpow2.f32 %v1763_v45  ;;  %v6184_v32 = vld [vmem:[#allocation7_spill] sm:$0xff] }
 0x272   :  { %2370 = vmatprep.mubr.bf16.mxu0 %v2289_v29  ;;  %v5324_v51 = vpop.eup %3371  ;;  %v1674_v35 = vsub.f32 %v6178_v26, %v1564_v13  ;;  %3395 = vpow2.f32 %v1761_v57  ;;  %v6181_v26 = vld [vmem:[#allocation8_spill] sm:$0xff]  ;;  %v1906_v57 = vadd.f32 %v5276_v56, %v5274_v38  ;;  %v1912_v56 = vadd.f32 %v5292_v23, %v5290_v27 }
 0x273   :  { %2371 = vmatmul.mubr.bf16.gmra.mrb[16].mxu0 %v2288_v21  ;;  %v5328_v28 = vpop.eup %3373  ;;  %v2290_v54 = vpack.c.bf16 %v5319_v2, %v5324_v51 }
 0x274   :  { %v2291_v18 = vpack.c.bf16 %v5322_v17, %v5328_v28  ;;  %v5334_v29 = vpop.eup %3375  ;;  %v1771_v7 = vmul.f32 1.442695, %v1674_v35  ;;  %v1921_v38 = vadd.f32 %v5328_v28, %v5324_v51  ;;  %v6187_v28 = vld [vmem:[#allocation9_spill] sm:$0xff] }
 0x275   :  { %v5338_v21 = vpop.eup %3377 }
 0x276   :  { %2378 = vmatprep.mubr.bf16.mxu1 %v2291_v18  ;;  %v2293_v36 = vpack.c.bf16 %v5334_v29, %v5338_v21  ;;  %v5347_v50 = vpop.eup %3379  ;;  %v1569_v18 = vpop.permute.xlu0 %1568 }
 0x277   :  { %2379 = vmatmul.mubr.bf16.vlgmr.msra.gmra.mrb[0].mxu1 %v2290_v54  ;;  %v3382_v49 = vpop.eup %3381  ;;  %v6179_v54 = vld [vmem:[#allocation6_spill] sm:$0xff] }
 0x278   :  { %2386 = vmatprep.mubr.bf16.mxu1 %v2293_v36  ;;  %v1676_v12 = vsub.f32 %v6179_v54, %v1569_v18  ;;  %v5350_v41 = vpop.eup %3383  ;;  %v2292_v36 = vpack.c.bf16 %v5347_v50, %v3382_v49  ;;  %v1675_v54 = vsub.f32 %v6181_v26, %v1569_v18  ;;  %v1927_v23 = vadd.f32 %v3382_v49, %v5338_v21  ;;  %v6190_v21 = vld [vmem:[#allocation52_spill] sm:$0xff] }
 0x279   :  { %v5352_v44 = vpop.eup %3385 }
 0x27a   :  { %v1775_v45 = vmul.f32 1.442695, %v1676_v12  ;;  %v3388_v15 = vpop.eup %3387  ;;  %v6183_v12 = vld [vmem:[#allocation10_spill] sm:$0xff] }
 0x27b   :  { %v1574_v34 = vpop.permute.xlu1 %1573 }
 0x27c   :  { %v1678_v35 = vsub.f32 %v6182_v1, %v1574_v34  ;;  %v1677_v47 = vsub.f32 %v6184_v32, %v1574_v34  ;;  %v6186_v1 = vld [vmem:[#allocation13_spill] sm:$0xff] }
 0x27d   :  { %v1579_v33 = vpop.permute.xlu0 %1578 }
 0x27e   :  { %v1779_v26 = vmul.f32 1.442695, %v1678_v35  ;;  %v1777_v34 = vmul.f32 1.442695, %v1677_v47 }
 0x27f   :  { %2387 = vmatmul.mubr.bf16.gmra.mrb[4].mxu1 %v2292_v36  ;;  %v1773_v36 = vmul.f32 1.442695, %v1675_v54 }
 0x281   :  { %1901 = vadd.xlane.f32.xlu0 %v1900_v19  ;;  %v1765_v19 = vmul.f32 1.442695, %v1671_v25  ;;  %v2295_v25 = vpack.c.bf16 %v5352_v44, %v5350_v41 }
 0x283   :  { %3397 = vpow2.f32 %v1765_v19  ;;  %2394 = vmatprep.mubr.bf16.mxu1 %v2295_v25  ;;  %v1680_v19 = vsub.f32 %v6183_v12, %v1579_v33  ;;  %v1679_v12 = vsub.f32 %v6187_v28, %v1579_v33 }
 0x284   :  { %3399 = vpow2.f32 %v1771_v7  ;;  %v1584_v7 = vpop.permute.xlu1 %1583 }
 0x285   :  { %1904 = vadd.xlane.f32.xlu0 %v1903_v42  ;;  %v1673_v42 = vsub.f32 %v6180_v40, %v1564_v13  ;;  %v5368_v13 = vpop.eup %3389  ;;  %3401 = vpow2.f32 %v1775_v45  ;;  %v1589_v40 = vpop.permute.xlu0 %1588  ;;  %v1783_v45 = vmul.f32 1.442695, %v1680_v19  ;;  %v1682_v35 = vsub.f32 %v6186_v1, %v1584_v7 }
 0x286   :  { %v2294_v25 = vpack.c.bf16 %v5368_v13, %v3388_v15  ;;  %v1918_v19 = vadd.f32 %v5311_v43, %v5309_v11  ;;  %v1933_v43 = vadd.f32 %v3388_v15, %v5350_v41  ;;  %v6193_v15 = vld [vmem:[#allocation54_spill] sm:$0xff] }
 0x287   :  { %v1769_v18 = vmul.f32 1.442695, %v1673_v42  ;;  %v6185_v42 = vld [vmem:[#allocation51_spill] sm:$0xff] }
 0x288   :  { %2395 = vmatmul.mubr.bf16.gmra.mrb[8].mxu1 %v2294_v25  ;;  %v1781_v25 = vmul.f32 1.442695, %v1679_v12 }
 0x289   :  { %1910 = vadd.xlane.f32.xlu0 %v1909_v30  ;;  %v5371_v30 = vpop.eup %3391  ;;  %3403 = vpow2.f32 %v1769_v18  ;;  %v1599_v27 = vpop.permute.xlu0 %1598 }
 0x28a   :  { %3405 = vpow2.f32 %v1773_v36  ;;  %v6188_v36 = vld [vmem:[#allocation12_spill] sm:$0xff] }
 0x28b   :  { %3407 = vpow2.f32 %v1779_v26  ;;  %v1684_v32 = vsub.f32 %v6188_v36, %v1589_v40  ;;  %v1787_v26 = vmul.f32 1.442695, %v1682_v35  ;;  %v1930_v36 = vadd.f32 %v5347_v50, %v5334_v29  ;;  %v6197_v50 = vld [vmem:[#allocation58_spill] sm:$0xff] }
 0x28c   :  { %3409 = vpow2.f32 %v1783_v45  ;;  %v1924_v45 = vadd.f32 %v5322_v17, %v5319_v2  ;;  %v6194_v17 = vld [vmem:[#allocation18_spill] sm:$0xff] }
 0x28d   :  { %1916 = vadd.xlane.f32.xlu0 %v1915_v5  ;;  %v1681_v5 = vsub.f32 %v6185_v42, %v1584_v7  ;;  %3411 = vpow2.f32 %v1777_v34  ;;  %v6191_v42 = vld [vmem:[#allocation17_spill] sm:$0xff]  ;;  %v6192_v34 = vld [vmem:[#allocation22_spill] sm:$0xff] }
 0x28e   :  { %v5397_v1 = vpop.permute.xlu0 %1608 }
 0x28f   :  { %v1785_v7 = vmul.f32 1.442695, %v1681_v5  ;;  %v1791_v5 = vmul.f32 1.442695, %v1684_v32 }
 0x291   :  { %1922 = vadd.xlane.f32.xlu0 %v1921_v38  ;;  %v6189_v38 = vld [vmem:[#allocation14_spill] sm:$0xff]  ;;  %3413 = vpow2.f32 %v1785_v7 }
 0x292   :  { %3415 = vpow2.f32 %v1787_v26 }
 0x293   :  { %1898 = vadd.xlane.f32.xlu1 %v1897_v39  ;;  %v3394_v39 = vpop.eup %3393  ;;  %3417 = vpow2.f32 %v1781_v25 }
 0x294   :  { %v2297_v54 = vpack.c.bf16 %v5371_v30, %v3394_v39  ;;  %v3396_v51 = vpop.eup %3395  ;;  %3419 = vpow2.f32 %v1791_v5  ;;  %v1619_v29 = vpop.permute.xlu0 %1618  ;;  %v1936_v5 = vadd.f32 %v5368_v13, %v5352_v44  ;;  %v6201_v44 = vld [vmem:[#allocation64_spill] sm:$0xff] }
 0x295   :  { %v5386_v18 = vpop.eup %3397  ;;  %1928 = vadd.xlane.f32.xlu0 %v1927_v23 }
 0x296   :  { %2402 = vmatprep.mubr.bf16.mxu1 %v2297_v54  ;;  %v3400_v47 = vpop.eup %3399  ;;  %v1683_v54 = vsub.f32 %v6191_v42, %v1589_v40  ;;  %v2296_v28 = vpack.c.bf16 %v5386_v18, %v3396_v51  ;;  %v1687_v40 = vsub.f32 %v6194_v17, %v1599_v27  ;;  %v6198_v42 = vld [vmem:[#allocation55_spill] sm:$0xff] }
 0x297   :  { %1907 = vadd.xlane.f32.xlu1 %v1906_v57  ;;  %v1594_v57 = vpop.permute.xlu1 %1593  ;;  %v5390_v33 = vpop.eup %3401 }
 0x298   :  { %v1686_v49 = vsub.f32 %v6190_v21, %v1594_v57  ;;  %2403 = vmatmul.mubr.bf16.gmra.mrb[12].mxu1 %v2296_v28  ;;  %v3404_v2 = vpop.eup %3403  ;;  %v1789_v7 = vmul.f32 1.442695, %v1683_v54  ;;  %v1691_v54 = vsub.f32 %v6198_v42, %v5397_v1 }
 0x299   :  { %1934 = vadd.xlane.f32.xlu0 %v1933_v43  ;;  %v5406_v32 = vpop.eup %3405  ;;  %v6196_v43 = vld [vmem:[#allocation57_spill] sm:$0xff] }
 0x29a   :  { %v1795_v41 = vmul.f32 1.442695, %v1686_v49  ;;  %v3408_v21 = vpop.eup %3407 }
 0x29b   :  { %1913 = vadd.xlane.f32.xlu1 %v1912_v56  ;;  %v1685_v56 = vsub.f32 %v6189_v38, %v1594_v57  ;;  %v1604_v11 = vpop.permute.xlu1 %1603  ;;  %v2299_v57 = vpack.c.bf16 %v5390_v33, %v3400_v47  ;;  %v6195_v38 = vld [vmem:[#allocation53_spill] sm:$0xff] }
 0x29c   :  { %v1689_v35 = vsub.f32 %v6192_v34, %v1604_v11  ;;  %v1690_v12 = vsub.f32 %v6193_v15, %v1604_v11  ;;  %v5410_v11 = vpop.eup %3409  ;;  %v6199_v34 = vld [vmem:[#allocation56_spill] sm:$0xff] }
 0x29d   :  { %v1793_v23 = vmul.f32 1.442695, %v1685_v56  ;;  %2410 = vmatprep.mubr.bf16.mxu1 %v2299_v57  ;;  %v1688_v56 = vsub.f32 %v6195_v38, %v1599_v27  ;;  %v1945_v27 = vadd.f32 %v3404_v2, %v3400_v47  ;;  %v3412_v28 = vpop.eup %3411  ;;  %v2301_v47 = vpack.c.bf16 %v5410_v11, %v3408_v21 }
 0x29e   :  { %v1801_v49 = vmul.f32 1.442695, %v1689_v35  ;;  %v1692_v35 = vsub.f32 %v6199_v34, %v5397_v1  ;;  %v5425_v1 = vpop.eup %3413  ;;  %v1951_v38 = vadd.f32 %v3412_v28, %v3408_v21 }
 0x29f   :  { %1919 = vadd.xlane.f32.xlu1 %v1918_v19  ;;  %v1939_v19 = vadd.f32 %v3396_v51, %v3394_v39  ;;  %v1614_v26 = vpop.permute.xlu1 %1613  ;;  %3421 = vpow2.f32 %v1793_v23  ;;  %v1803_v39 = vmul.f32 1.442695, %v1690_v12  ;;  %v1799_v23 = vmul.f32 1.442695, %v1688_v56  ;;  %v6200_v12 = vld [vmem:[#allocation61_spill] sm:$0xff]  ;;  %v3416_v56 = vpop.eup %3415 }
 0x2a0   :  { %v1693_v25 = vsub.f32 %v6196_v43, %v1614_v26  ;;  %3423 = vpow2.f32 %v1795_v41  ;;  %v1694_v51 = vsub.f32 %v6197_v50, %v1614_v26  ;;  %v2298_v41 = vpack.c.bf16 %v5406_v32, %v3404_v2  ;;  %v3418_v50 = vpop.eup %3417 }
 0x2a1   :  { %1940 = vadd.xlane.f32.xlu0 %v1939_v19  ;;  %3425 = vpow2.f32 %v1789_v7  ;;  %v1942_v19 = vadd.f32 %v5386_v18, %v5371_v30  ;;  %v1805_v2 = vmul.f32 1.442695, %v1691_v54  ;;  %v1807_v26 = vmul.f32 1.442695, %v1692_v35  ;;  %v6204_v30 = vld [vmem:[#allocation67_spill] sm:$0xff]  ;;  %v6205_v54 = vld [vmem:[#allocation68_spill] sm:$0xff] }
 0x2a2   :  { %3427 = vpow2.f32 %v1801_v49  ;;  %v1809_v15 = vmul.f32 1.442695, %v1693_v25  ;;  %2411 = vmatmul.mubr.bf16.gmra.mrb[16].mxu1 %v2298_v41  ;;  %v6203_v49 = vld [vmem:[#allocation60_spill] sm:$0xff]  ;;  %v1629_v25 = vpop.permute.xlu0 %1628  ;;  %v6206_v41 = vld [vmem:[#allocation62_spill] sm:$0xff] }
 0x2a3   :  { %1925 = vadd.xlane.f32.xlu1 %v1924_v45  ;;  %v1797_v45 = vmul.f32 1.442695, %v1687_v40  ;;  %v1624_v57 = vpop.permute.xlu1 %1623  ;;  %3429 = vpow2.f32 %v1803_v39  ;;  %v1811_v40 = vmul.f32 1.442695, %v1694_v51  ;;  %2418 = vmatprep.mubr.bf16.mxu1 %v2301_v47  ;;  %v1696_v43 = vsub.f32 %v6203_v49, %v1619_v29 }
 0x2a4   :  { %v1697_v17 = vsub.f32 %v6200_v12, %v1624_v57  ;;  %v1698_v13 = vsub.f32 %v6201_v44, %v1624_v57  ;;  %v2300_v57 = vpack.c.bf16 %v3418_v50, %v3412_v28 }
 0x2a5   :  { %1946 = vadd.xlane.f32.xlu0 %v1945_v27  ;;  %3431 = vpow2.f32 %v1797_v45  ;;  %v3420_v45 = vpop.eup %3419  ;;  %v1815_v35 = vmul.f32 1.442695, %v1696_v43  ;;  %v6209_v43 = vld [vmem:[#allocation66_spill] sm:$0xff] }
 0x2a6   :  { %3433 = vpow2.f32 %v1799_v23  ;;  %v1817_v51 = vmul.f32 1.442695, %v1697_v17  ;;  %v1819_v42 = vmul.f32 1.442695, %v1698_v13  ;;  %v1948_v23 = vadd.f32 %v5406_v32, %v5390_v33  ;;  %v1639_v13 = vpop.permute.xlu0 %1638 }
 0x2a7   :  { %1931 = vadd.xlane.f32.xlu1 %v1930_v36  ;;  %v6202_v36 = vld [vmem:[#allocation59_spill] sm:$0xff]  ;;  %3435 = vpow2.f32 %v1809_v15  ;;  %v1699_v15 = vsub.f32 %v6206_v41, %v1629_v25  ;;  %v2303_v17 = vpack.c.bf16 %v3420_v45, %v3416_v56  ;;  %v1954_v32 = vadd.f32 %v3418_v50, %v5410_v11 }
 0x2a8   :  { %v1695_v7 = vsub.f32 %v6202_v36, %v1619_v29  ;;  %3437 = vpow2.f32 %v1811_v40  ;;  %v1957_v29 = vadd.f32 %v3416_v56, %v5425_v1  ;;  %v6207_v40 = vld [vmem:[#allocation63_spill] sm:$0xff] }
 0x2a9   :  { %1952 = vadd.xlane.f32.xlu0 %v1951_v38  ;;  %v5431_v27 = vpop.eup %3421  ;;  %3439 = vpow2.f32 %v1805_v2  ;;  %v1700_v44 = vsub.f32 %v6207_v40, %v1629_v25  ;;  %v6208_v38 = vld [vmem:[#allocation65_spill] sm:$0xff]  ;;  %v1704_v25 = vsub.f32 %v6209_v43, %v1639_v13 }
 0x2aa   :  { %v3424_v34 = vpop.eup %3423  ;;  %3441 = vpow2.f32 %v1807_v26  ;;  %2419 = vmatmul.mubr.bf16.gmra.mrb[20].mxu1 %v2300_v57  ;;  %v1703_v56 = vsub.f32 %v6208_v38, %v1639_v13  ;;  %v5449_v41 = vpop.permute.xlu0 %2092 }
 0x2ab   :  { %1937 = vadd.xlane.f32.xlu1 %v1936_v5  ;;  %v1813_v5 = vmul.f32 1.442695, %v1695_v7  ;;  %3443 = vpow2.f32 %v1817_v51  ;;  %v3426_v47 = vpop.eup %3425  ;;  %v1963_v33 = vadd.f32 %v3424_v34, %v5431_v27  ;;  %2426 = vmatprep.mubr.bf16.mxu1 %v2303_v17  ;;  %v1821_v7 = vmul.f32 1.442695, %v1699_v15 }
 0x2ac   :  { %3445 = vpow2.f32 %v1819_v42  ;;  %v5438_v2 = vpop.eup %3427  ;;  %v1823_v49 = vmul.f32 1.442695, %v1700_v44  ;;  %v1960_v11 = vadd.f32 %v3426_v47, %v3420_v45  ;;  %v1829_v42 = vmul.f32 1.442695, %v1703_v56 }
 0x2ad   :  { %1958 = vadd.xlane.f32.xlu0 %v1957_v29  ;;  %3447 = vpow2.f32 %v1813_v5  ;;  %v3430_v28 = vpop.eup %3429  ;;  %v1831_v5 = vmul.f32 1.442695, %v1704_v25  ;;  %v6210_v25 = vsub.f32 %v5072_v16, %v5087_v4 }
 0x2ae   :  { %v1634_v39 = vpop.permute.xlu1 %1633  ;;  %3449 = vpow2.f32 %v1815_v35  ;;  %v1969_v51 = vadd.f32 %v3430_v28, %v5438_v2 }
 0x2af   :  { %v1701_v18 = vsub.f32 %v6204_v30, %v1634_v39  ;;  %1943 = vadd.xlane.f32.xlu1 %v1942_v19  ;;  %v1702_v21 = vsub.f32 %v6205_v54, %v1634_v39  ;;  %v3432_v36 = vpop.eup %3431  ;;  %v2302_v30 = vpack.c.bf16 %v3426_v47, %v5425_v1 }
 0x2b0   :  { %v3434_v26 = vpop.eup %3433  ;;  %v2304_v40 = vpack.c.bf16 %v3432_v36, %v5431_v27 }
 0x2b1   :  { %v1825_v12 = vmul.f32 1.442695, %v1701_v18  ;;  %v1827_v19 = vmul.f32 1.442695, %v1702_v21  ;;  %1964 = vadd.xlane.f32.xlu0 %v1963_v33  ;;  %v5444_v39 = vpop.eup %3435  ;;  %v2305_v54 = vpack.c.bf16 %v3434_v26, %v3424_v34  ;;  %v1966_v35 = vadd.f32 %v3434_v26, %v3432_v36 }
 0x2b2   :  { %v3438_v50 = vpop.eup %3437  ;;  %2427 = vmatmul.mubr.bf16.gmra.mrb[24].mxu1 %v2302_v30  ;;  %v5451_v47 = vpop.permute.xlu1 %2097 }
 0x2b3   :  { %1949 = vadd.xlane.f32.xlu1 %v1948_v23  ;;  %3451 = vpow2.f32 %v1825_v12  ;;  %v3440_v18 = vpop.eup %3439  ;;  %v1975_v23 = vadd.f32 %v3438_v50, %v5444_v39  ;;  %2434 = vmatprep.mubr.bf16.mxu1 %v2305_v54 }
 0x2b4   :  { %3453 = vpow2.f32 %v1827_v19  ;;  %v3442_v21 = vpop.eup %3441  ;;  %v2306_v27 = vpack.c.bf16 %v3440_v18, %v5438_v2 }
 0x2b5   :  { %3455 = vpow2.f32 %v1821_v7  ;;  %1970 = vadd.xlane.f32.xlu0 %v1969_v51  ;;  %v3444_v29 = vpop.eup %3443  ;;  %v1972_v12 = vadd.f32 %v3442_v21, %v3440_v18  ;;  %v2307_v44 = vpack.c.bf16 %v3442_v21, %v3430_v28  ;;  %v5454_v7 = vpop.permute.xlu0 %2107  ;;  %v1479_v51 = vmul.f32 1.442695, %v6210_v25  ;;  %v1835_v25 = vld [vmem:[#allocation3 + $0x10] sm:$0xff] }
 0x2b6   :  { %3457 = vpow2.f32 %v1823_v49  ;;  %v3446_v57 = vpop.eup %3445  ;;  %v5456_v38 = vpop.permute.xlu1 %2102 }
 0x2b7   :  { %1955 = vadd.xlane.f32.xlu1 %v1954_v32  ;;  %v3448_v45 = vpop.eup %3447  ;;  %3459 = vpow2.f32 %v1829_v42  ;;  %v1981_v34 = vadd.f32 %v3446_v57, %v3444_v29 }
 0x2b8   :  { %v3450_v1 = vpop.eup %3449  ;;  %3461 = vpow2.f32 %v1831_v5  ;;  %v2308_v42 = vpack.c.bf16 %v3448_v45, %v5444_v39 }
 0x2b9   :  { %1976 = vadd.xlane.f32.xlu0 %v1975_v23  ;;  %v1978_v33 = vadd.f32 %v3450_v1, %v3448_v45  ;;  %v2309_v36 = vpack.c.bf16 %v3450_v1, %v3438_v50  ;;  %v5459_v28 = vpop.permute.xlu0 %2117  ;;  %3463 = vpow2.f32 %v1479_v51 }
 0x2ba   :  { %2435 = vmatmul.mubr.bf16.gmra.mrb[28].mxu1 %v2304_v40 }
 0x2bb   :  { %1961 = vadd.xlane.f32.xlu1 %v1960_v11  ;;  %2442 = vmatprep.mubr.bf16.mxu1 %v2307_v44  ;;  %v5464_v11 = vpop.permute.xlu1 %2112 }
 0x2bd   :  { %v3452_v15 = vpop.eup %3451  ;;  %1982 = vadd.xlane.f32.xlu0 %v1981_v34  ;;  %v5466_v30 = vpop.permute.xlu0 %2127 }
 0x2be   :  { %v3454_v17 = vpop.eup %3453 }
 0x2bf   :  { %1967 = vadd.xlane.f32.xlu1 %v1966_v35  ;;  %v3456_v13 = vpop.eup %3455  ;;  %v1987_v19 = vadd.f32 %v3454_v17, %v3452_v15  ;;  %v5469_v18 = vpop.permute.xlu1 %2122 }
 0x2c0   :  { %v3458_v32 = vpop.eup %3457  ;;  %v2310_v21 = vpack.c.bf16 %v3456_v13, %v3444_v29 }
 0x2c1   :  { %1988 = vadd.xlane.f32.xlu0 %v1987_v19  ;;  %v3460_v56 = vpop.eup %3459  ;;  %v1984_v26 = vadd.f32 %v3458_v32, %v3456_v13  ;;  %v2311_v2 = vpack.c.bf16 %v3458_v32, %v3446_v57  ;;  %v5471_v50 = vpop.permute.xlu0 %2137 }
 0x2c2   :  { %v3462_v49 = vpop.eup %3461  ;;  %2443 = vmatmul.mubr.bf16.gmra.mrb[32].mxu1 %v2306_v27  ;;  %v2312_v23 = vpack.c.bf16 %v3460_v56, %v3452_v15 }
 0x2c3   :  { %1973 = vadd.xlane.f32.xlu1 %v1972_v12  ;;  %v1990_v43 = vadd.f32 %v3462_v49, %v3460_v56  ;;  %2450 = vmatprep.mubr.bf16.mxu1 %v2309_v36  ;;  %v5473_v54 = vpop.permute.xlu1 %2132  ;;  %v2313_v16 = vpack.c.bf16 %v3462_v49, %v3454_v17  ;;  %v5475_v4 = vpop.eup %3463  ;;  %v1834_v49 = vld [vmem:[#allocation3 + $0x8] sm:$0xff] }
 0x2c4   :  { %v1866_v36 = vmul.f32 %v5105_v8, %v1834_v49 }
 0x2c5   :  { %v5478_v5 = vpop.permute.xlu0 %2147 }
 0x2c7   :  { %1979 = vadd.xlane.f32.xlu1 %v1978_v33  ;;  %v5480_v39 = vpop.permute.xlu1 %2142 }
 0x2c9   :  { %v5482_v35 = vpop.permute.xlu0 %2157 }
 0x2ca   :  { %2451 = vmatmul.mubr.bf16.gmra.mrb[36].mxu1 %v2308_v42  ;;  %v1867_v42 = vmul.f32 %v5116_v52, %v1835_v25 }
 0x2cb   :  { %1985 = vadd.xlane.f32.xlu1 %v1984_v26  ;;  %2458 = vmatprep.mubr.bf16.mxu1 %v2311_v2  ;;  %v5484_v57 = vpop.permute.xlu1 %2152 }
 0x2cd   :  { %v5486_v45 = vpop.permute.xlu0 %2167 }
 0x2cf   :  { %1991 = vadd.xlane.f32.xlu1 %v1990_v43  ;;  %v5488_v29 = vpop.permute.xlu1 %2162 }
 0x2d1   :  { %v5490_v1 = vpop.permute.xlu0 %2177 }
 0x2d2   :  { %2459 = vmatmul.mubr.bf16.gmra.mrb[40].mxu1 %v2310_v21 }
 0x2d3   :  { %2466 = vmatprep.mubr.bf16.mxu1 %v2313_v16  ;;  %v5492_v34 = vpop.permute.xlu1 %2172  ;;  %v1837_v16 = vld [vmem:[#allocation3 + $0x20] sm:$0xff] }
 0x2d5   :  { %v5494_v12 = vpop.permute.xlu0 %2187 }
 0x2d7   :  { %2247 = vperm.xlu0 %3255, %v5475_v4   ;;  %v5496_v17 = vpop.permute.xlu1 %2182 }
 0x2d9   :  { %v5498_v40 = vpop.permute.xlu0 %2197 }
 0x2da   :  { %2467 = vmatmul.mubr.bf16.gmra.mrb[44].mxu1 %v2312_v23  ;;  %v1833_v23 = vld [vmem:[#allocation3] sm:$0xff] }
 0x2db   :  { %v5500_v15 = vpop.permute.xlu1 %2192 }
 0x2dd   :  { %v5502_v44 = vpop.permute.xlu0 %2207 }
 0x2df   :  { %v5504_v13 = vpop.permute.xlu1 %2202 }
 0x2e1   :  { %v5506_v19 = vpop.permute.xlu0 %2217 }
 0x2e2   :  { %6211 = vst [vmem:[#allocation26_spill] sm:$0xff] %v5506_v19 }
 0x2e3   :  { %v5508_v33 = vpop.permute.xlu1 %2212 }
 0x2e5   :  { %v5510_v32 = vpop.permute.xlu0 %2227 }
 0x2e6   :  { %6212 = vst [vmem:[#allocation27_spill] sm:$0xff] %v5510_v32 }
 0x2e7   :  { %v5512_v56 = vpop.permute.xlu1 %2222 }
 0x2e8   :  { %6213 = vst [vmem:[#allocation28_spill] sm:$0xff] %v5512_v56  ;;  %v1839_v56 = vld [vmem:[#allocation3 + $0x30] sm:$0xff] }
 0x2e9   :  { %v5514_v26 = vpop.permute.xlu0 %2237  ;;  %v1871_v52 = vmul.f32 %v5139_v58, %v1839_v56  ;;  %v1840_v58 = vld [vmem:[#allocation3 + $0x38] sm:$0xff] }
 0x2ea   :  { %6214 = vst [vmem:[#allocation29_spill] sm:$0xff] %v5514_v26  ;;  %v1869_v26 = vmul.f32 %v5129_v20, %v1837_v16 }
 0x2eb   :  { %v5516_v27 = vpop.permute.xlu1 %2232 }
 0x2ec   :  { %6215 = vst [vmem:[#allocation30_spill] sm:$0xff] %v5516_v27  ;;  %v1865_v27 = vmul.f32 %v5107_v59, %v1833_v23  ;;  %v1838_v59 = vld [vmem:[#allocation3 + $0x28] sm:$0xff] }
 0x2ef   :  { %v5521_v2 = vpop.permute.xlu1 %2242 }
 0x30e   :  { %v1902_v43 = vpop.xlane.xlu0 %1901 }
 0x30f   :  { %v1994_v51 = vadd.f32 %v1902_v43, %v1866_v36  ;;  %v1836_v36 = vld [vmem:[#allocation3 + $0x18] sm:$0xff] }
 0x311   :  { %2027 = vst.msk [vmem:[#allocation3 + $0x8] sm:$0xff] %vm6216_vm15, %v1994_v51  ;;  %vm6231_vm15 = vmmov %vm6066_vm0 }
 0x312   :  { %v1905_v21 = vpop.xlane.xlu0 %1904 }
 0x313   :  { %v1995_v32 = vadd.f32 %v1905_v21, %v1867_v42  ;;  %v1841_v42 = vld [vmem:[#allocation3 + $0x40] sm:$0xff] }
 0x315   :  { %2028 = vst.msk [vmem:[#allocation3 + $0x10] sm:$0xff] %vm6217_vm14, %v1995_v32  ;;  %v1868_v32 = vmul.f32 %v5118_v31, %v1836_v36  ;;  %vm6232_vm14 = vmmov %vm6066_vm0 }
 0x316   :  { %v1911_v8 = vpop.xlane.xlu0 %1910 }
 0x317   :  { %v1997_v43 = vadd.f32 %v1911_v8, %v1869_v26  ;;  %v1870_v26 = vmul.f32 %v5131_v0, %v1838_v59  ;;  %v1843_v8 = vld [vmem:[#allocation3 + $0x50] sm:$0xff]  ;;  %v1845_v0 = vld [vmem:[#allocation3 + $0x60] sm:$0xff] }
 0x318   :  { %v2607_v19 = vld [vmem:[#allocation3 + $0x8] sm:$0xff]  ;;  %v1875_v36 = vmul.f32 %v5159_v55, %v1843_v8  ;;  %v1877_v55 = vmul.f32 %v5169_v3, %v1845_v0 }
 0x319   :  { %3465 = vrcp.f32 %v2607_v19  ;;  %2030 = vst.msk [vmem:[#allocation3 + $0x20] sm:$0xff] %vm6218_vm10, %v1997_v43  ;;  %v1873_v19 = vmul.f32 %v5149_v37, %v1841_v42  ;;  %v1872_v43 = vmul.f32 %v5141_v14, %v1840_v58  ;;  %vm6233_vm10 = vmmov %vm6066_vm0 }
 0x31a   :  { %v1917_v25 = vpop.xlane.xlu0 %1916 }
 0x31b   :  { %v1999_v21 = vadd.f32 %v1917_v25, %v1871_v52 }
 0x31d   :  { %2032 = vst.msk [vmem:[#allocation3 + $0x30] sm:$0xff] %vm6220_vm13, %v1999_v21  ;;  %vm6235_vm13 = vmmov %vm6066_vm0 }
 0x320   :  { %v1899_v49 = vpop.xlane.xlu1 %1898  ;;  %v2610_v21 = vld [vmem:[#allocation3 + $0x20] sm:$0xff] }
 0x321   :  { %v1993_v51 = vadd.f32 %v1899_v49, %v1865_v27  ;;  %v1923_v27 = vpop.xlane.xlu0 %1922 }
 0x322   :  { %v2001_v56 = vadd.f32 %v1923_v27, %v1873_v19  ;;  %v1844_v27 = vld [vmem:[#allocation3 + $0x58] sm:$0xff] }
 0x323   :  { %2026 = vst.msk [vmem:[#allocation3] sm:$0xff] %vm6219_vm1, %v1993_v51  ;;  %v2608_v51 = vld [vmem:[#allocation3 + $0x10] sm:$0xff]  ;;  %v3466_v25 = vpop.eup %3465  ;;  %v1876_v3 = vmul.f32 %v5161_v48, %v1844_v27  ;;  %vm6234_vm1 = vmmov %vm6066_vm0 }
 0x324   :  { %v1908_v20 = vpop.xlane.xlu1 %1907  ;;  %2034 = vst.msk [vmem:[#allocation3 + $0x40] sm:$0xff] %vm6222_vm4, %v2001_v56  ;;  %2677 = vperm.xlu0 %3255, %v3466_v25   ;;  %vm6239_vm4 = vmmov %vm6066_vm0 }
 0x325   :  { %v1996_v16 = vadd.f32 %v1908_v20, %v1868_v32  ;;  %v1929_v37 = vpop.xlane.xlu0 %1928  ;;  %v1842_v32 = vld [vmem:[#allocation3 + $0x48] sm:$0xff] }
 0x326   :  { %v2003_v20 = vadd.f32 %v1929_v37, %v1875_v36  ;;  %v1874_v14 = vmul.f32 %v5151_v61, %v1842_v32  ;;  %v1849_v36 = vld [vmem:[#allocation3 + $0x80] sm:$0xff] }
 0x327   :  { %2029 = vst.msk [vmem:[#allocation3 + $0x18] sm:$0xff] %vm6221_vm6, %v1996_v16  ;;  %vm6236_vm6 = vmmov %vm6066_vm0 }
 0x328   :  { %v1914_v23 = vpop.xlane.xlu1 %1913  ;;  %2036 = vst.msk [vmem:[#allocation3 + $0x50] sm:$0xff] %vm6224_vm11, %v2003_v20  ;;  %vm6242_vm11 = vmmov %vm6066_vm0 }
 0x329   :  { %v1998_v31 = vadd.f32 %v1914_v23, %v1870_v26  ;;  %v1935_v16 = vpop.xlane.xlu0 %1934  ;;  %v1847_v26 = vld [vmem:[#allocation3 + $0x70] sm:$0xff] }
 0x32a   :  { %v2606_v49 = vld [vmem:[#allocation3] sm:$0xff]  ;;  %v2005_v23 = vadd.f32 %v1935_v16, %v1877_v55  ;;  %v1879_v56 = vmul.f32 %v5179_v60, %v1847_v26  ;;  %v1881_v60 = vmul.f32 %v5189_v24, %v1849_v36  ;;  %v1852_v36 = vld [vmem:[#allocation3 + $0x98] sm:$0xff] }
 0x32b   :  { %2031 = vst.msk [vmem:[#allocation3 + $0x28] sm:$0xff] %vm6223_vm12, %v1998_v31  ;;  %3467 = vrcp.f32 %v2606_v49  ;;  %v2612_v31 = vld [vmem:[#allocation3 + $0x30] sm:$0xff]  ;;  %v2614_v32 = vld [vmem:[#allocation3 + $0x40] sm:$0xff]  ;;  %vm6240_vm12 = vmmov %vm6066_vm0 }
 0x32c   :  { %v1920_v52 = vpop.xlane.xlu1 %1919  ;;  %3469 = vrcp.f32 %v2608_v51  ;;  %2038 = vst.msk [vmem:[#allocation3 + $0x60] sm:$0xff] %vm6226_vm8, %v2005_v23  ;;  %vm6247_vm8 = vmmov %vm6066_vm0 }
 0x32d   :  { %v2000_v42 = vadd.f32 %v1920_v52, %v1872_v43  ;;  %v1846_v43 = vld [vmem:[#allocation3 + $0x68] sm:$0xff] }
 0x32e   :  { %v2609_v59 = vld [vmem:[#allocation3 + $0x18] sm:$0xff]  ;;  %v1941_v61 = vpop.xlane.xlu0 %1940  ;;  %v1878_v48 = vmul.f32 %v5171_v62, %v1846_v43 }
 0x32f   :  { %2033 = vst.msk [vmem:[#allocation3 + $0x38] sm:$0xff] %vm6225_vm2, %v2000_v42  ;;  %3471 = vrcp.f32 %v2609_v59  ;;  %v2007_v51 = vadd.f32 %v1941_v61, %v1879_v56  ;;  %v1851_v42 = vld [vmem:[#allocation3 + $0x90] sm:$0xff]  ;;  %v1848_v59 = vld [vmem:[#allocation3 + $0x78] sm:$0xff]  ;;  %vm6243_vm2 = vmmov %vm6066_vm0 }
 0x330   :  { %v1926_v19 = vpop.xlane.xlu1 %1925  ;;  %3473 = vrcp.f32 %v2610_v21  ;;  %v1883_v62 = vmul.f32 %v5201_v63, %v1851_v42  ;;  %v1880_v24 = vmul.f32 %v5181_v53, %v1848_v59  ;;  %v2616_v26 = vld [vmem:[#allocation3 + $0x50] sm:$0xff]  ;;  %v1884_v42 = vmul.f32 %v5203_v9, %v1852_v36  ;;  %v1854_v9 = vld [vmem:[#allocation3 + $0xa8] sm:$0xff] }
 0x331   :  { %v2002_v8 = vadd.f32 %v1926_v19, %v1874_v14  ;;  %2040 = vst.msk [vmem:[#allocation3 + $0x70] sm:$0xff] %vm6228_vm5, %v2007_v51  ;;  %vm6250_vm5 = vmmov %vm6066_vm0 }
 0x332   :  { %v2611_v58 = vld [vmem:[#allocation3 + $0x28] sm:$0xff]  ;;  %v1947_v25 = vpop.xlane.xlu0 %1946 }
 0x333   :  { %2035 = vst.msk [vmem:[#allocation3 + $0x48] sm:$0xff] %vm6227_vm9, %v2002_v8  ;;  %3475 = vrcp.f32 %v2611_v58  ;;  %v2009_v14 = vadd.f32 %v1947_v25, %v1881_v60  ;;  %v1853_v8 = vld [vmem:[#allocation3 + $0xa0] sm:$0xff]  ;;  %v1850_v58 = vld [vmem:[#allocation3 + $0x88] sm:$0xff]  ;;  %vm6248_vm9 = vmmov %vm6066_vm0 }
 0x334   :  { %v1932_v49 = vpop.xlane.xlu1 %1931  ;;  %3477 = vrcp.f32 %v2612_v31  ;;  %v1885_v53 = vmul.f32 %v5211_v10, %v1853_v8  ;;  %v1882_v63 = vmul.f32 %v5193_v22, %v1850_v58  ;;  %v2618_v43 = vld [vmem:[#allocation3 + $0x60] sm:$0xff]  ;;  %v2251_v58 = vmul.f32 0.0, %v5451_v47 }
 0x335   :  { %v2004_v37 = vadd.f32 %v1932_v49, %v1876_v3  ;;  %v3468_v52 = vpop.eup %3467  ;;  %2042 = vst.msk [vmem:[#allocation3 + $0x80] sm:$0xff] %vm6229_vm7, %v2009_v14  ;;  %vm6252_vm7 = vmmov %vm6066_vm0 }
 0x336   :  { %v2613_v0 = vld [vmem:[#allocation3 + $0x38] sm:$0xff]  ;;  %2672 = vperm.xlu1 %3256, %v3468_v52   ;;  %v3470_v55 = vpop.eup %3469  ;;  %v1953_v27 = vpop.xlane.xlu0 %1952  ;;  %v1855_v52 = vld [vmem:[#allocation3 + $0xb0] sm:$0xff] }
 0x337   :  { %2037 = vst.msk [vmem:[#allocation3 + $0x58] sm:$0xff] %vm6066_vm0, %v2004_v37  ;;  %3479 = vrcp.f32 %v2613_v0  ;;  %v2011_v3 = vadd.f32 %v1953_v27, %v1883_v62  ;;  %v1887_v22 = vmul.f32 %v5221_v6, %v1855_v52  ;;  %v1857_v62 = vld [vmem:[#allocation3 + $0xc0] sm:$0xff] }
 0x338   :  { %v1938_v20 = vpop.xlane.xlu1 %1937  ;;  %3481 = vrcp.f32 %v2614_v32  ;;  %v3140_v32 = vpop.f32.mrb[4].mxu0  ;;  %v1889_v6 = vmul.f32 %v5229_v46, %v1857_v62  ;;  %v2252_v46 = vmul.f32 0.0, %v5456_v38 }
 0x339   :  { %v2006_v21 = vadd.f32 %v1938_v20, %v1878_v48  ;;  %v3472_v16 = vpop.eup %3471  ;;  %2044 = vst.msk [vmem:[#allocation3 + $0x90] sm:$0xff] %vm6231_vm15, %v2011_v3  ;;  %v3141_v59 = vpop.f32.mrb[5].mxu0 }
 0x33a   :  { %v2615_v19 = vld [vmem:[#allocation3 + $0x48] sm:$0xff]  ;;  %2682 = vperm.xlu1 %3256, %v3470_v55   ;;  %2687 = vperm.xlu0 %3255, %v3472_v16   ;;  %v3474_v56 = vpop.eup %3473  ;;  %v1959_v51 = vpop.xlane.xlu0 %1958  ;;  %v2250_v55 = vmul.f32 0.0, %v5449_v41  ;;  %v3142_v10 = vadd.f32 %v3141_v59, %v3140_v32  ;;  %v6238_v32 = vld [vmem:[#allocation16_spill] sm:$0xff] }
 0x33b   :  { %2039 = vst.msk [vmem:[#allocation3 + $0x68] sm:$0xff] %vm6230_vm3, %v2006_v21  ;;  %3483 = vrcp.f32 %v2615_v19  ;;  %v2013_v60 = vadd.f32 %v1959_v51, %v1885_v53  ;;  %v3143_v14 = vpop.f32.mrb[6].mxu0  ;;  %v2620_v21 = vld [vmem:[#allocation3 + $0x70] sm:$0xff]  ;;  %vm6253_vm3 = vmmov %vm6066_vm0 }
 0x33c   :  { %v1944_v23 = vpop.xlane.xlu1 %1943  ;;  %3485 = vrcp.f32 %v2616_v26  ;;  %v3144_v27 = vpop.f32.mrb[7].mxu0  ;;  %v2622_v53 = vld [vmem:[#allocation3 + $0x80] sm:$0xff] }
 0x33d   :  { %v2008_v31 = vadd.f32 %v1944_v23, %v1880_v24  ;;  %v3476_v61 = vpop.eup %3475  ;;  %2046 = vst.msk [vmem:[#allocation3 + $0xa0] sm:$0xff] %vm6233_vm10, %v2013_v60  ;;  %v5563_v23 = vadd.f32 %v3142_v10, %v2250_v55  ;;  %v3145_v3 = vadd.f32 %v3144_v27, %v3143_v14  ;;  %v2253_v27 = vmul.f32 0.0, %v5454_v7 }
 0x33e   :  { %v2617_v49 = vld [vmem:[#allocation3 + $0x58] sm:$0xff]  ;;  %2692 = vperm.xlu1 %3256, %v3474_v56   ;;  %2697 = vperm.xlu0 %3255, %v3476_v61   ;;  %v3478_v0 = vpop.eup %3477  ;;  %v1965_v16 = vpop.xlane.xlu0 %1964 }
 0x33f   :  { %2041 = vst.msk [vmem:[#allocation3 + $0x78] sm:$0xff] %vm6232_vm14, %v2008_v31  ;;  %3487 = vrcp.f32 %v2617_v49  ;;  %v2015_v26 = vadd.f32 %v1965_v16, %v1887_v22  ;;  %v6237_v31 = vld [vmem:[#allocation15_spill] sm:$0xff]  ;;  %v1856_v49 = vld [vmem:[#allocation3 + $0xb8] sm:$0xff]  ;;  %v5570_v47 = vadd.f32 %v3145_v3, %v2251_v58  ;;  %v1861_v16 = vld [vmem:[#allocation3 + $0xe0] sm:$0xff] }
 0x340   :  { %v1950_v37 = vpop.xlane.xlu1 %1949  ;;  %3489 = vrcp.f32 %v2618_v43  ;;  %v1886_v61 = vmul.f32 %v6237_v31, %v1854_v9  ;;  %v1859_v43 = vld [vmem:[#allocation3 + $0xd0] sm:$0xff] }
 0x341   :  { %v2010_v48 = vadd.f32 %v1950_v37, %v1882_v63  ;;  %v3480_v25 = vpop.eup %3479  ;;  %2048 = vst.msk [vmem:[#allocation3 + $0xb0] sm:$0xff] %vm6235_vm13, %v2015_v26  ;;  %v2624_v10 = vld [vmem:[#allocation3 + $0x90] sm:$0xff] }
 0x342   :  { %v2619_v20 = vld [vmem:[#allocation3 + $0x68] sm:$0xff]  ;;  %2702 = vperm.xlu1 %3256, %v3478_v0   ;;  %2707 = vperm.xlu0 %3255, %v3480_v25   ;;  %v3482_v24 = vpop.eup %3481  ;;  %v1971_v63 = vpop.xlane.xlu0 %1970  ;;  %v1888_v25 = vmul.f32 %v6238_v32, %v1856_v49 }
 0x343   :  { %2043 = vst.msk [vmem:[#allocation3 + $0x88] sm:$0xff] %vm6234_vm1, %v2010_v48  ;;  %3491 = vrcp.f32 %v2619_v20  ;;  %v2017_v37 = vadd.f32 %v1971_v63, %v1889_v6  ;;  %v3146_v0 = vpop.f32.mrb[8].mxu0  ;;  %v6245_v6 = vld [vmem:[#allocation19_spill] sm:$0xff] }
 0x344   :  { %v1956_v19 = vpop.xlane.xlu1 %1955  ;;  %3493 = vrcp.f32 %v2620_v21  ;;  %v3147_v20 = vpop.f32.mrb[9].mxu0  ;;  %v2626_v49 = vld [vmem:[#allocation3 + $0xa0] sm:$0xff] }
 0x345   :  { %v2012_v41 = vadd.f32 %v1956_v19, %v1884_v42  ;;  %v3484_v8 = vpop.eup %3483  ;;  %2050 = vst.msk [vmem:[#allocation3 + $0xc0] sm:$0xff] %vm6239_vm4, %v2017_v37  ;;  %v6241_v42 = vld [vmem:[#allocation20_spill] sm:$0xff]  ;;  %v3148_v55 = vadd.f32 %v3147_v20, %v3146_v0  ;;  %v3149_v22 = vpop.f32.mrb[10].mxu0  ;;  %v1858_v19 = vld [vmem:[#allocation3 + $0xc8] sm:$0xff]  ;;  %v2254_v20 = vmul.f32 0.0, %v5464_v11 }
 0x346   :  { %v2621_v56 = vld [vmem:[#allocation3 + $0x78] sm:$0xff]  ;;  %2712 = vperm.xlu1 %3256, %v3482_v24   ;;  %2717 = vperm.xlu0 %3255, %v3484_v8   ;;  %v3486_v51 = vpop.eup %3485  ;;  %v1891_v59 = vmul.f32 %v6241_v42, %v1859_v43  ;;  %v1977_v14 = vpop.xlane.xlu0 %1976  ;;  %v1890_v31 = vmul.f32 %v6245_v6, %v1858_v19 }
 0x347   :  { %2045 = vst.msk [vmem:[#allocation3 + $0x98] sm:$0xff] %vm6236_vm6, %v2012_v41  ;;  %3495 = vrcp.f32 %v2621_v56  ;;  %v3150_v24 = vpop.f32.mrb[11].mxu0  ;;  %v5577_v26 = vadd.f32 %v3148_v55, %v2252_v46  ;;  %v6244_v56 = vld [vmem:[#allocation23_spill] sm:$0xff]  ;;  %v6249_v46 = vld [vmem:[#allocation25_spill] sm:$0xff] }
 0x348   :  { %v1962_v36 = vpop.xlane.xlu1 %1961  ;;  %3497 = vrcp.f32 %v2622_v53  ;;  %v2019_v9 = vadd.f32 %v1977_v14, %v1891_v59  ;;  %v3151_v58 = vadd.f32 %v3150_v24, %v3149_v22  ;;  %v1893_v3 = vmul.f32 %v6244_v56, %v1861_v16  ;;  %v2628_v22 = vld [vmem:[#allocation3 + $0xb0] sm:$0xff]  ;;  %v1864_v6 = vld [vmem:[#allocation3 + $0xf8] sm:$0xff] }
 0x349   :  { %v2014_v52 = vadd.f32 %v1962_v36, %v1886_v61  ;;  %v3488_v60 = vpop.eup %3487  ;;  %v1860_v61 = vld [vmem:[#allocation3 + $0xd8] sm:$0xff]  ;;  %v1863_v36 = vld [vmem:[#allocation3 + $0xf0] sm:$0xff]  ;;  %v2255_v24 = vmul.f32 0.0, %v5459_v28 }
 0x34a   :  { %v2623_v48 = vld [vmem:[#allocation3 + $0x88] sm:$0xff]  ;;  %2722 = vperm.xlu1 %3256, %v3486_v51   ;;  %2727 = vperm.xlu0 %3255, %v3488_v60   ;;  %v3490_v62 = vpop.eup %3489  ;;  %2052 = vst.msk [vmem:[#allocation3 + $0xd0] sm:$0xff] %vm6242_vm11, %v2019_v9  ;;  %v1983_v53 = vpop.xlane.xlu0 %1982  ;;  %v5584_v7 = vadd.f32 %v3151_v58, %v2253_v27  ;;  %v1895_v42 = vmul.f32 %v6249_v46, %v1863_v36 }
 0x34b   :  { %2047 = vst.msk [vmem:[#allocation3 + $0xa8] sm:$0xff] %vm6240_vm12, %v2014_v52  ;;  %3499 = vrcp.f32 %v2623_v48  ;;  %v2021_v51 = vadd.f32 %v1983_v53, %v1893_v3  ;;  %v3152_v52 = vpop.f32.mrb[12].mxu0  ;;  %v6246_v48 = vld [vmem:[#allocation21_spill] sm:$0xff] }
 0x34c   :  { %v1968_v21 = vpop.xlane.xlu1 %1967  ;;  %3501 = vrcp.f32 %v2624_v10  ;;  %v1892_v32 = vmul.f32 %v6246_v48, %v1860_v61  ;;  %v2630_v56 = vld [vmem:[#allocation3 + $0xc0] sm:$0xff] }
 0x34d   :  { %v2016_v38 = vadd.f32 %v1968_v21, %v1888_v25  ;;  %v3492_v41 = vpop.eup %3491  ;;  %v3153_v25 = vpop.f32.mrb[13].mxu0  ;;  %2054 = vst.msk [vmem:[#allocation3 + $0xe0] sm:$0xff] %vm6247_vm8, %v2021_v51  ;;  %v1862_v21 = vld [vmem:[#allocation3 + $0xe8] sm:$0xff]  ;;  %v1896_v51 = vmul.f32 %v5475_v4, %v1864_v6 }
 0x34e   :  { %v2625_v8 = vld [vmem:[#allocation3 + $0x98] sm:$0xff]  ;;  %2732 = vperm.xlu1 %3256, %v3490_v62   ;;  %2737 = vperm.xlu0 %3255, %v3492_v41   ;;  %v3494_v43 = vpop.eup %3493  ;;  %v3154_v59 = vadd.f32 %v3153_v25, %v3152_v52  ;;  %v3155_v55 = vpop.f32.mrb[14].mxu0 }
 0x34f   :  { %2049 = vst.msk [vmem:[#allocation3 + $0xb8] sm:$0xff] %vm6243_vm2, %v2016_v38  ;;  %3503 = vrcp.f32 %v2625_v8  ;;  %v1989_v10 = vpop.xlane.xlu0 %1988  ;;  %v3156_v11 = vpop.f32.mrb[15].mxu0  ;;  %v6251_v8 = vld [vmem:[#allocation24_spill] sm:$0xff] }
 0x350   :  { %v1974_v63 = vpop.xlane.xlu1 %1973  ;;  %3505 = vrcp.f32 %v2626_v49  ;;  %v2023_v19 = vadd.f32 %v1989_v10, %v1895_v42  ;;  %v5591_v9 = vadd.f32 %v3154_v59, %v2254_v20  ;;  %v3157_v27 = vadd.f32 %v3156_v11, %v3155_v55  ;;  %v3158_v28 = vpop.f32.mrb[16].mxu0 }
 0x351   :  { %v2018_v37 = vadd.f32 %v1974_v63, %v1890_v31  ;;  %v3496_v0 = vpop.eup %3495  ;;  %v1894_v58 = vmul.f32 %v6251_v8, %v1862_v21  ;;  %v3159_v36 = vpop.f32.mrb[17].mxu0  ;;  %v2259_v11 = vmul.f32 0.0, %v5471_v50 }
 0x352   :  { %v2627_v60 = vld [vmem:[#allocation3 + $0xa8] sm:$0xff]  ;;  %2742 = vperm.xlu1 %3256, %v3494_v43   ;;  %2747 = vperm.xlu0 %3255, %v3496_v0   ;;  %v3498_v16 = vpop.eup %3497  ;;  %2056 = vst.msk [vmem:[#allocation3 + $0xf0] sm:$0xff] %vm6250_vm5, %v2023_v19  ;;  %v5597_v31 = vadd.f32 %v3157_v27, %v2255_v24  ;;  %v2256_v43 = vmul.f32 0.0, %v5469_v18  ;;  %v3161_v52 = vpop.f32.mrb[18].mxu0  ;;  %v2632_v0 = vld [vmem:[#allocation3 + $0xd0] sm:$0xff]  ;;  %v2257_v18 = vmul.f32 0.0, %v5466_v30 }
 0x353   :  { %2051 = vst.msk [vmem:[#allocation3 + $0xc8] sm:$0xff] %vm6248_vm9, %v2018_v37  ;;  %3507 = vrcp.f32 %v2627_v60  ;;  %v3160_v37 = vadd.f32 %v3159_v36, %v3158_v28  ;;  %v3162_v25 = vpop.f32.mrb[19].mxu0  ;;  %v3164_v55 = vpop.f32.mrb[0].mxu1  ;;  %v2261_v36 = vmul.f32 0.0, %v5478_v5 }
 0x354   :  { %v1980_v14 = vpop.xlane.xlu1 %1979  ;;  %3509 = vrcp.f32 %v2628_v22  ;;  %v3163_v59 = vadd.f32 %v3162_v25, %v3161_v52  ;;  %v3165_v4 = vpop.f32.mrb[1].mxu1  ;;  %v2258_v22 = vmul.f32 0.0, %v5473_v54  ;;  %v2634_v19 = vld [vmem:[#allocation3 + $0xe0] sm:$0xff] }
 0x355   :  { %v2020_v62 = vadd.f32 %v1980_v14, %v1892_v32  ;;  %v3500_v38 = vpop.eup %3499  ;;  %v5602_v20 = vadd.f32 %v3160_v37, %v2256_v43  ;;  %v3166_v10 = vadd.f32 %v3165_v4, %v3164_v55  ;;  %v3167_v14 = vpop.f32.mrb[2].mxu1 }
 0x356   :  { %v2629_v41 = vld [vmem:[#allocation3 + $0xb8] sm:$0xff]  ;;  %2752 = vperm.xlu1 %3256, %v3498_v16   ;;  %2757 = vperm.xlu0 %3255, %v3500_v38   ;;  %v3502_v61 = vpop.eup %3501  ;;  %v5607_v21 = vadd.f32 %v3163_v59, %v2257_v18 }
 0x357   :  { %2053 = vst.msk [vmem:[#allocation3 + $0xd8] sm:$0xff] %vm6066_vm0, %v2020_v62  ;;  %3511 = vrcp.f32 %v2629_v41  ;;  %v3168_v62 = vpop.f32.mrb[3].mxu1  ;;  %v5610_v41 = vadd.f32 %v3166_v10, %v2258_v22 }
 0x358   :  { %v1986_v3 = vpop.xlane.xlu1 %1985  ;;  %3513 = vrcp.f32 %v2630_v56  ;;  %v3169_v24 = vadd.f32 %v3168_v62, %v3167_v14  ;;  %v2264_v14 = vmul.f32 0.0, %v5488_v29  ;;  %v2265_v62 = vmul.f32 0.0, %v5486_v45 }
 0x359   :  { %v2022_v49 = vadd.f32 %v1986_v3, %v1894_v58  ;;  %v3504_v53 = vpop.eup %3503  ;;  %v2636_v8 = vld [vmem:[#allocation3 + $0xf0] sm:$0xff]  ;;  %v3170_v3 = vpop.f32.mrb[4].mxu1 }
 0x35a   :  { %v2631_v63 = vld [vmem:[#allocation3 + $0xc8] sm:$0xff]  ;;  %2762 = vperm.xlu1 %3256, %v3502_v61   ;;  %2767 = vperm.xlu0 %3255, %v3504_v53   ;;  %v3506_v48 = vpop.eup %3505  ;;  %v5612_v54 = vadd.f32 %v3169_v24, %v2259_v11  ;;  %v3171_v50 = vpop.f32.mrb[5].mxu1  ;;  %v2260_v61 = vmul.f32 0.0, %v5480_v39 }
 0x35b   :  { %2055 = vst.msk [vmem:[#allocation3 + $0xe8] sm:$0xff] %vm6252_vm7, %v2022_v49  ;;  %3515 = vrcp.f32 %v2631_v63  ;;  %v3172_v49 = vadd.f32 %v3171_v50, %v3170_v3  ;;  %v3173_v28 = vpop.f32.mrb[6].mxu1  ;;  %v2267_v3 = vmul.f32 0.0, %v5490_v1 }
 0x35c   :  { %v1992_v60 = vpop.xlane.xlu1 %1991  ;;  %3517 = vrcp.f32 %v2632_v0  ;;  %v3174_v63 = vpop.f32.mrb[7].mxu1 }
 0x35d   :  { %v2024_v32 = vadd.f32 %v1992_v60, %v1896_v51  ;;  %v3508_v46 = vpop.eup %3507  ;;  %v3175_v43 = vadd.f32 %v3174_v63, %v3173_v28  ;;  %v5616_v51 = vadd.f32 %v3172_v49, %v2260_v61  ;;  %v3176_v60 = vpop.f32.mrb[8].mxu1  ;;  %v2268_v49 = vmul.f32 0.0, %v5496_v17 }
 0x35e   :  { %v2633_v42 = vld [vmem:[#allocation3 + $0xd8] sm:$0xff]  ;;  %2772 = vperm.xlu1 %3256, %v3506_v48   ;;  %2777 = vperm.xlu0 %3255, %v3508_v46   ;;  %v3510_v16 = vpop.eup %3509  ;;  %v3177_v48 = vpop.f32.mrb[9].mxu1 }
 0x35f   :  { %2057 = vst.msk [vmem:[#allocation3 + $0xf8] sm:$0xff] %vm6253_vm3, %v2024_v32  ;;  %3519 = vrcp.f32 %v2633_v42  ;;  %v5618_v52 = vadd.f32 %v3175_v43, %v2261_v36  ;;  %v2262_v32 = vmul.f32 0.0, %v5484_v57  ;;  %v3178_v25 = vadd.f32 %v3177_v48, %v3176_v60  ;;  %v3179_v46 = vpop.f32.mrb[10].mxu1 }
 0x360   :  { %v3180_v5 = vpop.f32.mrb[11].mxu1  ;;  %v2263_v42 = vmul.f32 0.0, %v5482_v35  ;;  %v2269_v36 = vmul.f32 0.0, %v5494_v12  ;;  %v2270_v60 = vmul.f32 0.0, %v5500_v15 }
 0x361   :  { %v3512_v30 = vpop.eup %3511  ;;  %v3181_v59 = vadd.f32 %v3180_v5, %v3179_v46  ;;  %v5622_v55 = vadd.f32 %v3178_v25, %v2262_v32  ;;  %v2271_v25 = vmul.f32 0.0, %v5498_v40 }
 0x362   :  { %v2635_v38 = vld [vmem:[#allocation3 + $0xe8] sm:$0xff]  ;;  %2782 = vperm.xlu1 %3256, %v3510_v16   ;;  %2787 = vperm.xlu0 %3255, %v3512_v30   ;;  %v3514_v27 = vpop.eup %3513 }
 0x363   :  { %3521 = vrcp.f32 %v2635_v38  ;;  %v5624_v4 = vadd.f32 %v3181_v59, %v2263_v42  ;;  %v2272_v42 = vmul.f32 0.0, %v5504_v13 }
 0x364   :  { %3523 = vrcp.f32 %v2634_v19 }
 0x365   :  { %v3516_v58 = vpop.eup %3515 }
 0x366   :  { %v2637_v56 = vld [vmem:[#allocation3 + $0xf8] sm:$0xff]  ;;  %2792 = vperm.xlu1 %3256, %v3514_v27   ;;  %2797 = vperm.xlu0 %3255, %v3516_v58   ;;  %v3518_v6 = vpop.eup %3517  ;;  %v2266_v27 = vmul.f32 0.0, %v5492_v34 }
 0x367   :  { %3525 = vrcp.f32 %v2637_v56 }
 0x368   :  { %3527 = vrcp.f32 %v2636_v8 }
 0x369   :  { %v3520_v53 = vpop.eup %3519 }
 0x36a   :  { %2802 = vperm.xlu1 %3256, %v3518_v6   ;;  %2807 = vperm.xlu0 %3255, %v3520_v53  }
 0x36b   :  { %v3182_v22 = vpop.f32.mrb[12].mxu1 }
 0x36c   :  { %v3183_v10 = vpop.f32.mrb[13].mxu1 }
 0x36d   :  { %v3522_v37 = vpop.eup %3521  ;;  %v3184_v16 = vadd.f32 %v3183_v10, %v3182_v22  ;;  %v3185_v19 = vpop.f32.mrb[14].mxu1 }
 0x36e   :  { %v3524_v0 = vpop.eup %3523  ;;  %2817 = vperm.xlu0 %3255, %v3522_v37   ;;  %v3186_v57 = vpop.f32.mrb[15].mxu1 }
 0x36f   :  { %2812 = vperm.xlu1 %3256, %v3524_v0   ;;  %v3187_v30 = vadd.f32 %v3186_v57, %v3185_v19  ;;  %v5628_v11 = vadd.f32 %v3184_v16, %v2264_v14  ;;  %v2273_v14 = vmul.f32 0.0, %v5502_v44 }
 0x371   :  { %v3526_v39 = vpop.eup %3525  ;;  %v5630_v35 = vadd.f32 %v3187_v30, %v2265_v62  ;;  %v2274_v62 = vmul.f32 0.0, %v5508_v33  ;;  %v6256_v33 = vld [vmem:[#allocation27_spill] sm:$0xff] }
 0x372   :  { %v3528_v18 = vpop.eup %3527  ;;  %2827 = vperm.xlu0 %3255, %v3526_v39  }
 0x373   :  { %2822 = vperm.xlu1 %3256, %v3528_v18  }
 0x375   :  { %v3188_v38 = vpop.f32.mrb[16].mxu1 }
 0x376   :  { %v3189_v24 = vpop.f32.mrb[17].mxu1 }
 0x377   :  { %v3190_v8 = vadd.f32 %v3189_v24, %v3188_v38  ;;  %v3191_v58 = vpop.f32.mrb[18].mxu1 }
 0x378   :  { %v3192_v56 = vpop.f32.mrb[19].mxu1 }
 0x379   :  { %v3193_v29 = vadd.f32 %v3192_v56, %v3191_v58  ;;  %v5634_v50 = vadd.f32 %v3190_v8, %v2266_v27  ;;  %v6254_v27 = vld [vmem:[#allocation26_spill] sm:$0xff] }
 0x37a   :  { %v2275_v8 = vmul.f32 0.0, %v6254_v27 }
 0x37b   :  { %v5636_v6 = vadd.f32 %v3193_v29, %v2267_v3  ;;  %v6255_v29 = vld [vmem:[#allocation28_spill] sm:$0xff] }
 0x37d   :  { %v3194_v45 = vpop.f32.mrb[20].mxu1 }
 0x37e   :  { %v3195_v61 = vpop.f32.mrb[21].mxu1 }
 0x37f   :  { %v3196_v28 = vadd.f32 %v3195_v61, %v3194_v45  ;;  %v3197_v53 = vpop.f32.mrb[22].mxu1  ;;  %v2276_v45 = vmul.f32 0.0, %v6255_v29  ;;  %v5663_v61 = vpop.permute.xlu0 %2247 }
 0x380   :  { %v3198_v63 = vpop.f32.mrb[23].mxu1 }
 0x381   :  { %v3199_v34 = vadd.f32 %v3198_v63, %v3197_v53  ;;  %v5640_v43 = vadd.f32 %v3196_v28, %v2268_v49  ;;  %v2277_v63 = vmul.f32 0.0, %v6256_v33 }
 0x383   :  { %v5642_v37 = vadd.f32 %v3199_v34, %v2269_v36 }
 0x385   :  { %v3200_v1 = vpop.f32.mrb[24].mxu1 }
 0x386   :  { %v3201_v0 = vpop.f32.mrb[25].mxu1 }
 0x387   :  { %v3202_v48 = vadd.f32 %v3201_v0, %v3200_v1  ;;  %v3203_v39 = vpop.f32.mrb[26].mxu1  ;;  %v5671_v1 = vld [vmem:[%s5889_s5] ss:$0 sm:$0xff] }
 0x388   :  { %v3204_v32 = vpop.f32.mrb[27].mxu1 }
 0x389   :  { %v3205_v17 = vadd.f32 %v3204_v32, %v3203_v39  ;;  %v5646_v46 = vadd.f32 %v3202_v48, %v2270_v60  ;;  %v5679_v39 = vld [vmem:[%s5890_s6] ss:$0 sm:$0xff] }
 0x38b   :  { %v5648_v18 = vadd.f32 %v3205_v17, %v2271_v25 }
 0x38d   :  { %v3206_v12 = vpop.f32.mrb[28].mxu1 }
 0x38e   :  { %v3207_v5 = vpop.f32.mrb[29].mxu1 }
 0x38f   :  { %v3208_v59 = vadd.f32 %v3207_v5, %v3206_v12  ;;  %v3209_v22 = vpop.f32.mrb[30].mxu1  ;;  %v6257_v12 = vld [vmem:[#allocation30_spill] sm:$0xff] }
 0x390   :  { %v3210_v10 = vpop.f32.mrb[31].mxu1  ;;  %v2278_v5 = vmul.f32 0.0, %v6257_v12 }
 0x391   :  { %v3211_v15 = vadd.f32 %v3210_v10, %v3209_v22  ;;  %v5652_v16 = vadd.f32 %v3208_v59, %v2272_v42 }
 0x393   :  { %v5654_v19 = vadd.f32 %v3211_v15, %v2273_v14  ;;  %v6258_v14 = vld [vmem:[#allocation29_spill] sm:$0xff] }
 0x394   :  { %v2279_v15 = vmul.f32 0.0, %v6258_v14 }
 0x395   :  { %v3212_v40 = vpop.f32.mrb[32].mxu1 }
 0x396   :  { %v3213_v57 = vpop.f32.mrb[33].mxu1 }
 0x397   :  { %v3214_v30 = vadd.f32 %v3213_v57, %v3212_v40  ;;  %v3215_v38 = vpop.f32.mrb[34].mxu1 }
 0x398   :  { %v3216_v24 = vpop.f32.mrb[35].mxu1 }
 0x399   :  { %v3217_v13 = vadd.f32 %v3216_v24, %v3215_v38  ;;  %v5658_v58 = vadd.f32 %v3214_v30, %v2274_v62 }
 0x39b   :  { %v5660_v56 = vadd.f32 %v3217_v13, %v2275_v8  ;;  %v2280_v8 = vmul.f32 0.0, %v5521_v2 }
 0x39d   :  { %v3218_v44 = vpop.f32.mrb[36].mxu1 }
 0x39e   :  { %v3219_v3 = vpop.f32.mrb[37].mxu1 }
 0x39f   :  { %v3220_v49 = vadd.f32 %v3219_v3, %v3218_v44  ;;  %v3221_v28 = vpop.f32.mrb[38].mxu1 }
 0x3a0   :  { %v3222_v53 = vpop.f32.mrb[39].mxu1 }
 0x3a1   :  { %v3223_v36 = vadd.f32 %v3222_v53, %v3221_v28  ;;  %v5666_v34 = vadd.f32 %v3220_v49, %v2276_v45 }
 0x3a3   :  { %v2678_v0 = vpop.permute.xlu0 %2677  ;;  %v5673_v60 = vadd.f32 %v3223_v36, %v2277_v63 }
 0x3a4   :  { %v2831_v48 = vmul.f32 %v2678_v0, %v5570_v47 }
 0x3a5   :  { %v3224_v32 = vpop.f32.mrb[40].mxu1 }
 0x3a6   :  { %v2870_v25 = vmul.f32 %v5671_v1, %v2831_v48  ;;  %v3225_v17 = vpop.f32.mrb[41].mxu1 }
 0x3a7   :  { %v3226_v42 = vadd.f32 %v3225_v17, %v3224_v32  ;;  %v3227_v59 = vpop.f32.mrb[42].mxu1 }
 0x3a8   :  { %v2909_v22 = vadd.f32 %v5679_v39, %v2870_v25  ;;  %v3228_v10 = vpop.f32.mrb[43].mxu1 }
 0x3a9   :  { %v3229_v40 = vadd.f32 %v3228_v10, %v3227_v59  ;;  %v5685_v47 = vadd.f32 %v3226_v42, %v2278_v5 }
 0x3aa   :  { %v2941_v57 = vmax.f32 %v2909_v22, 0.0 }
 0x3ab   :  { %v5687_v62 = vadd.f32 %v3229_v40, %v2279_v15 }
 0x3ac   :  { %2973 = vst [vmem:[%s5891_s7 + $0x8] sm:$0xff] %v2941_v57 }
 0x3ad   :  { %v3230_v24 = vpop.f32.mrb[44].mxu1 }
 0x3ae   :  { %v3231_v27 = vpop.f32.mrb[45].mxu1 }
 0x3af   :  { %v3232_v44 = vadd.f32 %v3231_v27, %v3230_v24  ;;  %v3233_v3 = vpop.f32.mrb[46].mxu1 }
 0x3b0   :  { %v3234_v33 = vpop.f32.mrb[47].mxu1 }
 0x3b1   :  { %v5698_v63 = vadd.f32 %v3232_v44, %v2280_v8 }
 0x3b5   :  { %v2673_v30 = vpop.permute.xlu1 %2672 }
 0x3b6   :  { %v2830_v38 = vmul.f32 %v2673_v30, %v5563_v23  ;;  %v5700_v23 = vadd.f32 %v3234_v33, %v3233_v3 }
 0x3b8   :  { %v2869_v13 = vmul.f32 %v5671_v1, %v2830_v38 }
 0x3b9   :  { %v2688_v29 = vpop.permute.xlu0 %2687  ;;  %v2683_v45 = vpop.permute.xlu1 %2682 }
 0x3ba   :  { %v2908_v49 = vadd.f32 %v5679_v39, %v2869_v13  ;;  %v2833_v28 = vmul.f32 %v2688_v29, %v5584_v7  ;;  %v2832_v53 = vmul.f32 %v2683_v45, %v5577_v26 }
 0x3bc   :  { %v2940_v36 = vmax.f32 %v2908_v49, 0.0  ;;  %v2872_v2 = vmul.f32 %v5671_v1, %v2833_v28  ;;  %v2871_v0 = vmul.f32 %v5671_v1, %v2832_v53 }
 0x3bd   :  { %v2698_v48 = vpop.permute.xlu0 %2697  ;;  %v2693_v32 = vpop.permute.xlu1 %2692 }
 0x3be   :  { %2972 = vst [vmem:[%s5891_s7] sm:$0xff] %v2940_v36  ;;  %v2911_v7 = vadd.f32 %v5679_v39, %v2872_v2  ;;  %v2910_v26 = vadd.f32 %v5679_v39, %v2871_v0  ;;  %v2835_v25 = vmul.f32 %v2698_v48, %v5597_v31  ;;  %v2834_v17 = vmul.f32 %v2693_v32, %v5591_v9 }
 0x3c0   :  { %v2943_v12 = vmax.f32 %v2911_v7, 0.0  ;;  %v2942_v5 = vmax.f32 %v2910_v26, 0.0  ;;  %v2874_v42 = vmul.f32 %v5671_v1, %v2835_v25  ;;  %v2873_v59 = vmul.f32 %v5671_v1, %v2834_v17 }
 0x3c1   :  { %v2708_v22 = vpop.permute.xlu0 %2707  ;;  %v2703_v10 = vpop.permute.xlu1 %2702 }
 0x3c2   :  { %2975 = vst [vmem:[%s5891_s7 + $0x18] sm:$0xff] %v2943_v12  ;;  %2974 = vst [vmem:[%s5891_s7 + $0x10] sm:$0xff] %v2942_v5  ;;  %v2913_v31 = vadd.f32 %v5679_v39, %v2874_v42  ;;  %v2912_v9 = vadd.f32 %v5679_v39, %v2873_v59  ;;  %v2837_v14 = vmul.f32 %v2708_v22, %v5607_v21 }
 0x3c3   :  { %v2836_v15 = vmul.f32 %v2703_v10, %v5602_v20 }
 0x3c4   :  { %v2945_v40 = vmax.f32 %v2913_v31, 0.0  ;;  %v2944_v57 = vmax.f32 %v2912_v9, 0.0  ;;  %v2876_v30 = vmul.f32 %v5671_v1, %v2837_v14 }
 0x3c5   :  { %v2875_v38 = vmul.f32 %v5671_v1, %v2836_v15  ;;  %v2718_v24 = vpop.permute.xlu0 %2717  ;;  %v2713_v27 = vpop.permute.xlu1 %2712 }
 0x3c6   :  { %2977 = vst [vmem:[%s5891_s7 + $0x28] sm:$0xff] %v2945_v40  ;;  %2976 = vst [vmem:[%s5891_s7 + $0x20] sm:$0xff] %v2944_v57  ;;  %v2915_v21 = vadd.f32 %v5679_v39, %v2876_v30  ;;  %v2839_v8 = vmul.f32 %v2718_v24, %v5612_v54  ;;  %v2838_v13 = vmul.f32 %v2713_v27, %v5610_v41 }
 0x3c7   :  { %v2914_v20 = vadd.f32 %v5679_v39, %v2875_v38 }
 0x3c8   :  { %v2947_v44 = vmax.f32 %v2915_v21, 0.0  ;;  %v2878_v29 = vmul.f32 %v5671_v1, %v2839_v8  ;;  %v2877_v45 = vmul.f32 %v5671_v1, %v2838_v13 }
 0x3c9   :  { %v2946_v3 = vmax.f32 %v2914_v20, 0.0  ;;  %v2728_v49 = vpop.permute.xlu0 %2727  ;;  %v2723_v28 = vpop.permute.xlu1 %2722 }
 0x3ca   :  { %2979 = vst [vmem:[%s5891_s7 + $0x38] sm:$0xff] %v2947_v44  ;;  %v2917_v54 = vadd.f32 %v5679_v39, %v2878_v29  ;;  %v2916_v41 = vadd.f32 %v5679_v39, %v2877_v45  ;;  %v2841_v53 = vmul.f32 %v2728_v49, %v5618_v52  ;;  %v2840_v33 = vmul.f32 %v2723_v28, %v5616_v51 }
 0x3cb   :  { %2978 = vst [vmem:[%s5891_s7 + $0x30] sm:$0xff] %v2946_v3 }
 0x3cc   :  { %v2949_v36 = vmax.f32 %v2917_v54, 0.0  ;;  %v2948_v2 = vmax.f32 %v2916_v41, 0.0  ;;  %v2880_v0 = vmul.f32 %v5671_v1, %v2841_v53  ;;  %v2879_v48 = vmul.f32 %v5671_v1, %v2840_v33 }
 0x3cd   :  { %v2738_v32 = vpop.permute.xlu0 %2737  ;;  %v2733_v7 = vpop.permute.xlu1 %2732 }
 0x3ce   :  { %2981 = vst [vmem:[%s5891_s7 + $0x48] sm:$0xff] %v2949_v36  ;;  %2980 = vst [vmem:[%s5891_s7 + $0x40] sm:$0xff] %v2948_v2  ;;  %v2919_v52 = vadd.f32 %v5679_v39, %v2880_v0  ;;  %v2918_v51 = vadd.f32 %v5679_v39, %v2879_v48  ;;  %v2843_v26 = vmul.f32 %v2738_v32, %v5624_v4 }
 0x3cf   :  { %v2842_v25 = vmul.f32 %v2733_v7, %v5622_v55 }
 0x3d0   :  { %v2951_v17 = vmax.f32 %v2919_v52, 0.0  ;;  %v2950_v12 = vmax.f32 %v2918_v51, 0.0  ;;  %v2882_v5 = vmul.f32 %v5671_v1, %v2843_v26 }
 0x3d1   :  { %v2881_v42 = vmul.f32 %v5671_v1, %v2842_v25  ;;  %v2748_v59 = vpop.permute.xlu0 %2747  ;;  %v2743_v22 = vpop.permute.xlu1 %2742 }
 0x3d2   :  { %2983 = vst [vmem:[%s5891_s7 + $0x58] sm:$0xff] %v2951_v17  ;;  %2982 = vst [vmem:[%s5891_s7 + $0x50] sm:$0xff] %v2950_v12  ;;  %v2921_v4 = vadd.f32 %v5679_v39, %v2882_v5  ;;  %v2845_v10 = vmul.f32 %v2748_v59, %v5630_v35  ;;  %v2844_v31 = vmul.f32 %v2743_v22, %v5628_v11 }
 0x3d3   :  { %v2920_v55 = vadd.f32 %v5679_v39, %v2881_v42 }
 0x3d4   :  { %v2953_v9 = vmax.f32 %v2921_v4, 0.0  ;;  %v2884_v15 = vmul.f32 %v5671_v1, %v2845_v10  ;;  %v2883_v40 = vmul.f32 %v5671_v1, %v2844_v31 }
 0x3d5   :  { %v2952_v14 = vmax.f32 %v2920_v55, 0.0  ;;  %v2758_v57 = vpop.permute.xlu0 %2757  ;;  %v2753_v30 = vpop.permute.xlu1 %2752 }
 0x3d6   :  { %2985 = vst [vmem:[%s5891_s7 + $0x68] sm:$0xff] %v2953_v9  ;;  %v2923_v35 = vadd.f32 %v5679_v39, %v2884_v15  ;;  %v2922_v11 = vadd.f32 %v5679_v39, %v2883_v40  ;;  %v2847_v38 = vmul.f32 %v2758_v57, %v5636_v6  ;;  %v2846_v24 = vmul.f32 %v2753_v30, %v5634_v50 }
 0x3d7   :  { %2984 = vst [vmem:[%s5891_s7 + $0x60] sm:$0xff] %v2952_v14 }
 0x3d8   :  { %v2955_v27 = vmax.f32 %v2923_v35, 0.0  ;;  %v2954_v21 = vmax.f32 %v2922_v11, 0.0  ;;  %v2886_v20 = vmul.f32 %v5671_v1, %v2847_v38  ;;  %v2885_v8 = vmul.f32 %v5671_v1, %v2846_v24 }
 0x3d9   :  { %v2768_v13 = vpop.permute.xlu0 %2767  ;;  %v2763_v44 = vpop.permute.xlu1 %2762  ;;  %v2281_v24 = vmul.f32 0.0, %v5663_v61 }
 0x3da   :  { %2987 = vst [vmem:[%s5891_s7 + $0x78] sm:$0xff] %v2955_v27  ;;  %2986 = vst [vmem:[%s5891_s7 + $0x70] sm:$0xff] %v2954_v21  ;;  %v2925_v6 = vadd.f32 %v5679_v39, %v2886_v20  ;;  %v2924_v50 = vadd.f32 %v5679_v39, %v2885_v8  ;;  %v2849_v3 = vmul.f32 %v2768_v13, %v5642_v37 }
 0x3db   :  { %v2848_v29 = vmul.f32 %v2763_v44, %v5640_v43  ;;  %v2506_v61 = vadd.f32 %v5700_v23, %v2281_v24 }
 0x3dc   :  { %v2957_v45 = vmax.f32 %v2925_v6, 0.0  ;;  %v2956_v49 = vmax.f32 %v2924_v50, 0.0  ;;  %v2888_v28 = vmul.f32 %v5671_v1, %v2849_v3 }
 0x3dd   :  { %v2887_v54 = vmul.f32 %v5671_v1, %v2848_v29  ;;  %v2778_v41 = vpop.permute.xlu0 %2777  ;;  %v2773_v53 = vpop.permute.xlu1 %2772 }
 0x3de   :  { %2989 = vst [vmem:[%s5891_s7 + $0x88] sm:$0xff] %v2957_v45  ;;  %2988 = vst [vmem:[%s5891_s7 + $0x80] sm:$0xff] %v2956_v49  ;;  %v2927_v37 = vadd.f32 %v5679_v39, %v2888_v28  ;;  %v2851_v33 = vmul.f32 %v2778_v41, %v5648_v18  ;;  %v2850_v36 = vmul.f32 %v2773_v53, %v5646_v46 }
 0x3df   :  { %v2926_v43 = vadd.f32 %v5679_v39, %v2887_v54 }
 0x3e0   :  { %v2959_v2 = vmax.f32 %v2927_v37, 0.0  ;;  %v2890_v48 = vmul.f32 %v5671_v1, %v2851_v33  ;;  %v2889_v32 = vmul.f32 %v5671_v1, %v2850_v36 }
 0x3e1   :  { %v2958_v0 = vmax.f32 %v2926_v43, 0.0  ;;  %v2788_v7 = vpop.permute.xlu0 %2787  ;;  %v2783_v52 = vpop.permute.xlu1 %2782 }
 0x3e2   :  { %2991 = vst [vmem:[%s5891_s7 + $0x98] sm:$0xff] %v2959_v2  ;;  %v2929_v18 = vadd.f32 %v5679_v39, %v2890_v48  ;;  %v2928_v46 = vadd.f32 %v5679_v39, %v2889_v32  ;;  %v2853_v51 = vmul.f32 %v2788_v7, %v5654_v19  ;;  %v2852_v26 = vmul.f32 %v2783_v52, %v5652_v16 }
 0x3e3   :  { %2990 = vst [vmem:[%s5891_s7 + $0x90] sm:$0xff] %v2958_v0 }
 0x3e4   :  { %v2961_v25 = vmax.f32 %v2929_v18, 0.0  ;;  %v2960_v17 = vmax.f32 %v2928_v46, 0.0  ;;  %v2892_v12 = vmul.f32 %v5671_v1, %v2853_v51  ;;  %v2891_v5 = vmul.f32 %v5671_v1, %v2852_v26 }
 0x3e5   :  { %v2798_v42 = vpop.permute.xlu0 %2797  ;;  %v2793_v59 = vpop.permute.xlu1 %2792 }
 0x3e6   :  { %2993 = vst [vmem:[%s5891_s7 + $0xa8] sm:$0xff] %v2961_v25  ;;  %2992 = vst [vmem:[%s5891_s7 + $0xa0] sm:$0xff] %v2960_v17  ;;  %v2931_v19 = vadd.f32 %v5679_v39, %v2892_v12  ;;  %v2930_v16 = vadd.f32 %v5679_v39, %v2891_v5  ;;  %v2855_v22 = vmul.f32 %v2798_v42, %v5660_v56 }
 0x3e7   :  { %v2854_v4 = vmul.f32 %v2793_v59, %v5658_v58 }
 0x3e8   :  { %v2963_v55 = vmax.f32 %v2931_v19, 0.0  ;;  %v2962_v10 = vmax.f32 %v2930_v16, 0.0  ;;  %v2894_v31 = vmul.f32 %v5671_v1, %v2855_v22 }
 0x3e9   :  { %v2893_v9 = vmul.f32 %v5671_v1, %v2854_v4  ;;  %v2808_v14 = vpop.permute.xlu0 %2807  ;;  %v2803_v15 = vpop.permute.xlu1 %2802 }
 0x3ea   :  { %2995 = vst [vmem:[%s5891_s7 + $0xb8] sm:$0xff] %v2963_v55  ;;  %2994 = vst [vmem:[%s5891_s7 + $0xb0] sm:$0xff] %v2962_v10  ;;  %v2933_v56 = vadd.f32 %v5679_v39, %v2894_v31  ;;  %v2857_v40 = vmul.f32 %v2808_v14, %v5673_v60  ;;  %v2856_v57 = vmul.f32 %v2803_v15, %v5666_v34 }
 0x3eb   :  { %v2932_v58 = vadd.f32 %v5679_v39, %v2893_v9 }
 0x3ec   :  { %v2965_v30 = vmax.f32 %v2933_v56, 0.0  ;;  %v2896_v11 = vmul.f32 %v5671_v1, %v2857_v40  ;;  %v2895_v38 = vmul.f32 %v5671_v1, %v2856_v57 }
 0x3ed   :  { %v2964_v35 = vmax.f32 %v2932_v58, 0.0  ;;  %v2818_v27 = vpop.permute.xlu0 %2817 }
 0x3ee   :  { %v2813_v21 = vpop.permute.xlu1 %2812  ;;  %2997 = vst [vmem:[%s5891_s7 + $0xc8] sm:$0xff] %v2965_v30  ;;  %v2935_v34 = vadd.f32 %v5679_v39, %v2896_v11  ;;  %v2934_v60 = vadd.f32 %v5679_v39, %v2895_v38  ;;  %v2859_v20 = vmul.f32 %v2818_v27, %v5687_v62 }
 0x3ef   :  { %2996 = vst [vmem:[%s5891_s7 + $0xc0] sm:$0xff] %v2964_v35  ;;  %v2858_v8 = vmul.f32 %v2813_v21, %v5685_v47 }
 0x3f0   :  { %v2967_v13 = vmax.f32 %v2935_v34, 0.0  ;;  %v2966_v44 = vmax.f32 %v2934_v60, 0.0  ;;  %v2898_v6 = vmul.f32 %v5671_v1, %v2859_v20 }
 0x3f1   :  { %v2897_v50 = vmul.f32 %v5671_v1, %v2858_v8  ;;  %v2828_v3 = vpop.permute.xlu0 %2827 }
 0x3f2   :  { %v2823_v29 = vpop.permute.xlu1 %2822  ;;  %2999 = vst [vmem:[%s5891_s7 + $0xd8] sm:$0xff] %v2967_v13  ;;  %2998 = vst [vmem:[%s5891_s7 + $0xd0] sm:$0xff] %v2966_v44  ;;  %v2937_v47 = vadd.f32 %v5679_v39, %v2898_v6  ;;  %v2861_v23 = vmul.f32 %v2828_v3, %v2506_v61 }
 0x3f3   :  { %v2936_v62 = vadd.f32 %v5679_v39, %v2897_v50  ;;  %v2860_v45 = vmul.f32 %v2823_v29, %v5698_v63 }
 0x3f4   :  { %v2969_v49 = vmax.f32 %v2937_v47, 0.0  ;;  %v2900_v54 = vmul.f32 %v5671_v1, %v2861_v23 }
 0x3f5   :  { %v2968_v28 = vmax.f32 %v2936_v62, 0.0  ;;  %v2899_v41 = vmul.f32 %v5671_v1, %v2860_v45 }
 0x3f6   :  { %3001 = vst [vmem:[%s5891_s7 + $0xe8] sm:$0xff] %v2969_v49  ;;  %v2939_v53 = vadd.f32 %v5679_v39, %v2900_v54 }
 0x3f7   :  { %3000 = vst [vmem:[%s5891_s7 + $0xe0] sm:$0xff] %v2968_v28  ;;  %v2938_v37 = vadd.f32 %v5679_v39, %v2899_v41 }
 0x3f8   :  { %v2971_v43 = vmax.f32 %v2939_v53, 0.0 }
 0x3f9   :  { %v2970_v63 = vmax.f32 %v2938_v37, 0.0 }
 0x3fa   :  { %3003 = vst [vmem:[%s5891_s7 + $0xf8] sm:$0xff] %v2971_v43 }
 0x3fb   :  { %3002 = vst [vmem:[%s5891_s7 + $0xf0] sm:$0xff] %v2970_v63 }

</bundles_post_ra>
